<compile_context>
chip_gen: v6e
topology: v6e:2x2x1
jax: 0.10.0
libtpu: 0.0.40
codegen_flags: <defaults>
</compile_context>

<pallas_src>
import jax
import jax.numpy as jnp
from jax.experimental import pallas as pl
from jax.experimental.pallas import tpu as pltpu


# ----------------------------- Pallas kernel ------------------------------ #
def _ff_encode_kernel(x_ref, wt_ref, o_ref):
    # x_ref : (tile_n, 3)           VMEM
    # wt_ref: (3, ff_dim)           VMEM, lane-dense, resident across the grid
    # o_ref : (tile_n, 2 * ff_dim)  VMEM
    x = x_ref[...].astype(jnp.float32)      # (tile_n, 3)
    wt = wt_ref[...].astype(jnp.float32)    # (3, ff_dim)

    # K=3 contraction as three VPU broadcast MACs; avoids the MXU entirely
    # (a K=3 f32 dot uses ~2% of the systolic array) and the per-step
    # transpose that x @ W.T would need.
    proj = (x[:, 0:1] * wt[0:1, :]
            + x[:, 1:2] * wt[1:2, :]
            + x[:, 2:3] * wt[2:3, :])       # (tile_n, ff_dim) f32

    # Build the full-width [sin | cos] tile in registers and store it once:
    # a single lane-dense vst instead of two masked half-width stores.
    feats = jnp.concatenate([jnp.sin(proj), jnp.cos(proj)], axis=-1)
    o_ref[...] = feats.astype(o_ref.dtype)


# ------------------------------ host wrapper ------------------------------- #
def fourier_feature_encode(x, gauss_matrix_t, *, tile_n=1024, out_dtype=None):
    """Pallas implementation of BaseSDF.encode for the ff_dim > 0 branch.

    x               : (N, 3) points.
    gauss_matrix_t  : (3, ff_dim) pre-transposed Gaussian matrix.
    out_dtype       : output dtype (e.g. jnp.bfloat16 to halve write bandwidth
                      on v5e/v6e); defaults to x.dtype.
    """
    n, in_dim = x.shape
    in_dim_w, ff_dim = gauss_matrix_t.shape
    assert in_dim == 3 and in_dim_w == 3
    out_dtype = x.dtype if out_dtype is None else jnp.dtype(out_dtype)
    out_width = 2 * ff_dim

    # ---- tile selection ----------------------------------------------------
    # Big tiles amortize the ~0.35us/step overhead; for small N shrink the tile
    # so the grid still has >= 2 steps (lets "parallel" shard across v7x's two
    # TensorCores).  tile rows stay a multiple of 8 (sublane alignment).
    tile_n = max(8, (int(tile_n) // 8) * 8)
    if n <= tile_n:
        half_rows = (n + 1) // 2
        tile_n = max(8, min(tile_n, -(-half_rows // 8) * 8))
    grid_n = pl.cdiv(n, tile_n)  # ragged tail handled by masked writeback

    # ---- VMEM budget (double-buffered tiles + resident weight) -------------
    vmem_est = (2 * tile_n * 3 * x.dtype.itemsize
                + 2 * tile_n * out_width * out_dtype.itemsize
                + 2 * 3 * ff_dim * gauss_matrix_t.dtype.itemsize)
    cp_kwargs = dict(dimension_semantics=("parallel",))
    if vmem_est > (12 << 20):
        # Only needed when tile_n is pushed very large; keep headroom and stay
        # under v7x's 64 MiB physical VMEM.
        cp_kwargs["vmem_limit_bytes"] = min(int(vmem_est * 3 // 2) + (2 << 20),
                                            48 << 20)

    return pl.pallas_call(
        _ff_encode_kernel,
        out_shape=jax.ShapeDtypeStruct((n, out_width), out_dtype),
        grid_spec=pltpu.PrefetchScalarGridSpec(
            num_scalar_prefetch=0,
            grid=(grid_n,),
            in_specs=[
                pl.BlockSpec((tile_n, 3), lambda i: (i, 0)),
                pl.BlockSpec((3, ff_dim), lambda i: (0, 0)),   # resident weight
            ],
            out_specs=pl.BlockSpec((tile_n, out_width), lambda i: (i, 0)),
        ),
        compiler_params=pltpu.CompilerParams(**cp_kwargs),
    )(x, gauss_matrix_t)


# ------------------------------ Module wrapper ----------------------------- #
class BaseSDFPallas:
    """JAX/Pallas port of sdf-net BaseSDF."""

    def __init__(self, pos_enc=False, ff_dim=64, ff_width=16.0, key=None):
        self.pos_enc = pos_enc
        self.ff_dim = ff_dim
        self.ff_width = ff_width
        self.input_dim = 3
        self.out_dim = 1
        self.gauss_matrix = None
        self.gauss_matrix_t = None
        if self.ff_dim > 0:
            key = jax.random.PRNGKey(0) if key is None else key
            # torch.randn([ff_dim, 3]) * ff_width  (deterministic synthetic init)
            self.gauss_matrix = (
                jax.random.normal(key, (self.ff_dim, 3), dtype=jnp.float32)
                * self.ff_width
            )
            # Pre-transpose ONCE at init: (3, ff_dim) is lane-dense in VMEM and
            # removes any per-grid-step transpose work inside the kernel.
            self.gauss_matrix_t = jnp.asarray(self.gauss_matrix.T)
            self.input_dim += self.ff_dim * 2 - 3
        elif self.pos_enc:
            self.input_dim = self.input_dim * 13

    def encode(self, x):
        if self.ff_dim > 0:
            return fourier_feature_encode(x, self.gauss_matrix_t)
        elif self.pos_enc:
            # TODO(synk): positional_encoding path (13x expansion) not exercised
            # by defaults; not implemented here.
            return x
        return x

    def sdf(self, x, lod=None):
        # Base class returns None; subclasses implement the MLP head.
        return None

    def forward(self, x, lod=None):
        x = self.encode(x)
        return self.sdf(x)  # None, matching BaseSDF semantics


# ---------------------------------- main ----------------------------------- #
if __name__ == "__main__":
    key = jax.random.PRNGKey(0)
    k_pts1, k_pts2, k_mat = jax.random.split(key, 3)

    FF_DIM = 64  # Gaussian Fourier feature dim -> output last dim 128
    model = BaseSDFPallas(pos_enc=False, ff_dim=FF_DIM, ff_width=16.0, key=k_mat)

    def reference(x):
        proj = jnp.dot(x, model.gauss_matrix.T,
                       precision=jax.lax.Precision.HIGHEST)
        return jnp.concatenate([jnp.sin(proj), jnp.cos(proj)], axis=-1)

    # Case 1: small tile-aligned batch (grid has 2 steps -> both v7x TCs busy).
    N1 = 256
    x1 = jax.random.normal(k_pts1, (N1, 3), dtype=jnp.float32)
    feats1 = jax.block_until_ready(model.encode(x1))
    assert feats1.shape == (N1, 2 * FF_DIM)
    assert jnp.allclose(feats1, reference(x1), atol=1e-4, rtol=1e-4)

    # Case 2: ragged N exercising the cdiv grid / masked tail writeback
    # (no wrapper-side pad or slice anymore).
    N2 = 200
    x2 = jax.random.normal(k_pts2, (N2, 3), dtype=jnp.float32)
    feats2 = jax.block_until_ready(model.encode(x2))
    assert feats2.shape == (N2, 2 * FF_DIM)
    assert jnp.allclose(feats2, reference(x2), atol=1e-4, rtol=1e-4)

    out = model.forward(x1)
    assert out is None  # BaseSDF.sdf returns None

    print("KERNEL_OK")
</pallas_src>

<mosaic_0001>
module attributes {stable_mosaic.version = 11 : i64} {
  func.func @_ff_encode_kernel(%arg0: i32, %arg1: memref<128x3xf32, #tpu.memory_space<vmem>>, %arg2: memref<3x64xf32, #tpu.memory_space<vmem>>, %arg3: memref<128x128xf32, #tpu.memory_space<vmem>>) attributes {dimension_semantics = [#tpu.dimension_semantics<parallel>], iteration_bounds = array<i64: 2>, scalar_prefetch = 0 : i64, scratch_operands = 0 : i64, tpu.core_type = #tpu.core_type<tc>, window_params = [{transform_indices = @transform_0, window_bounds = array<i64: 128, 3>}, {pipeline_mode = #tpu.pipeline_mode<synchronous>, transform_indices = @transform_1, window_bounds = array<i64: 3, 64>}, {transform_indices = @transform_2, window_bounds = array<i64: 128, 128>}]} {
    %c0 = arith.constant 0 : index
    %c0_0 = arith.constant 0 : index
    %0 = vector.load %arg1[%c0, %c0_0] : memref<128x3xf32, #tpu.memory_space<vmem>>, vector<128x3xf32>
    %c0_1 = arith.constant 0 : index
    %c0_2 = arith.constant 0 : index
    %1 = vector.load %arg2[%c0_1, %c0_2] : memref<3x64xf32, #tpu.memory_space<vmem>>, vector<3x64xf32>
    %2 = vector.extract_strided_slice %0 {offsets = [0, 0], sizes = [128, 1], strides = [1, 1]} : vector<128x3xf32> to vector<128x1xf32>
    %3 = vector.extract_strided_slice %1 {offsets = [0, 0], sizes = [1, 64], strides = [1, 1]} : vector<3x64xf32> to vector<1x64xf32>
    %4 = vector.broadcast %2 : vector<128x1xf32> to vector<128x64xf32>
    %5 = vector.broadcast %3 : vector<1x64xf32> to vector<128x64xf32>
    %6 = arith.mulf %4, %5 : vector<128x64xf32>
    %7 = vector.extract_strided_slice %0 {offsets = [0, 1], sizes = [128, 1], strides = [1, 1]} : vector<128x3xf32> to vector<128x1xf32>
    %8 = vector.extract_strided_slice %1 {offsets = [1, 0], sizes = [1, 64], strides = [1, 1]} : vector<3x64xf32> to vector<1x64xf32>
    %9 = vector.broadcast %7 : vector<128x1xf32> to vector<128x64xf32>
    %10 = vector.broadcast %8 : vector<1x64xf32> to vector<128x64xf32>
    %11 = arith.mulf %9, %10 : vector<128x64xf32>
    %12 = arith.addf %6, %11 : vector<128x64xf32>
    %13 = vector.extract_strided_slice %0 {offsets = [0, 2], sizes = [128, 1], strides = [1, 1]} : vector<128x3xf32> to vector<128x1xf32>
    %14 = vector.extract_strided_slice %1 {offsets = [2, 0], sizes = [1, 64], strides = [1, 1]} : vector<3x64xf32> to vector<1x64xf32>
    %15 = vector.broadcast %13 : vector<128x1xf32> to vector<128x64xf32>
    %16 = vector.broadcast %14 : vector<1x64xf32> to vector<128x64xf32>
    %17 = arith.mulf %15, %16 : vector<128x64xf32>
    %18 = arith.addf %12, %17 : vector<128x64xf32>
    %19 = math.sin %18 : vector<128x64xf32>
    %20 = math.cos %18 : vector<128x64xf32>
    %21 = tpu.concatenate %19, %20 in 1 : vector<128x64xf32>, vector<128x64xf32> -> vector<128x128xf32>
    %c0_3 = arith.constant 0 : index
    %c0_4 = arith.constant 0 : index
    %22 = vector.load %arg3[%c0_3, %c0_4] : memref<128x128xf32, #tpu.memory_space<vmem>>, vector<128x128xf32>
    tpu.vector_store %arg3[%c0_3, %c0_4], %21 {strides = array<i32>} : memref<128x128xf32, #tpu.memory_space<vmem>>, vector<128x128xf32>,
    return
  }
  func.func @transform_0(%arg0: i32) -> (i32, i32) {
    %c0_i32 = arith.constant 0 : i32
    %c0_i32_0 = arith.constant 0 : i32
    return %arg0, %c0_i32 : i32, i32
  }
  func.func @transform_1(%arg0: i32) -> (i32, i32) {
    %c0_i32 = arith.constant 0 : i32
    %c0_i32_0 = arith.constant 0 : i32
    %c0_i32_1 = arith.constant 0 : i32
    return %c0_i32, %c0_i32_0 : i32, i32
  }
  func.func @transform_2(%arg0: i32) -> (i32, i32) {
    %c0_i32 = arith.constant 0 : i32
    %c0_i32_0 = arith.constant 0 : i32
    return %arg0, %c0_i32 : i32, i32
  }
}

</mosaic_0001>

<bundles_post_ra>
// kernel: tpu_custom_call.1
= control target key start
LH: loop header
LB: loop body
LE: loop exit
PB: predicated region body
PF: predicated region fallthrough
CT: control target
= control target key end

     0   :  { %7 = vsyncpa [#allocation3], 0  ;;  %s6798_s0 = inlined_call_operand.vmem [shape: f32[256,3], index: 0, kind: input, shape index: {}]   ;;  %s6799_s1 = inlined_call_operand.vmem [shape: f32[3,64], index: 1, kind: input, shape index: {}]   ;;  %s6800_s2 = inlined_call_operand.hbm [shape: f32[256,128], index: 2, kind: output, shape index: {}]  }
   0x1   :  { %9 = vsyncpa [#allocation3 + $0x1], 0  ;;  %s4363_s9 = smov 0   ;;  %s4365_s10 = smov 0  }
   0x2   :  { %s4367_s11 = smov 0   ;;  %s4369_s12 = smov 0  }
   0x3 LB: > { %s4384_s13 = sadd.s32 4294967295, %s4333_s12   ;;  %s3947_s14 = sadd.s32 4294967294, %s4333_s12   ;;  %s4333_s12 = sphi %s4369_s12, %s7078_s12   ;;  %s4329_s11 = sphi %s4367_s11, %s7077_s11   ;;  %s4325_s10 = sphi %s4365_s10, %s7076_s10   ;;  %s4321_s9 = sphi %s4363_s9, %s7075_s9  }
   0x4   : > { %s4388_s15 = sadd.s32 1, %s4333_s12   ;;  %s69_s16 = sadd.s32 1, %s4329_s11 }
   0x5   : > { %s66_s17 = ssub.s32 %s4333_s12, %s4388_s15  ;;  %p79_p0 = scmp.ne.s32.totalorder %s4329_s11, %s4325_s10 }
   0x6   : > { %p67_p1 = scmp.eq.s32.totalorder %s66_s17, 0  ;;  %p80_p2 = scmp.eq.s32.totalorder %s4384_s13, 1 }
   0x7   : > { %p85_p3 = scmp.ne.s32.totalorder %s4325_s10, %s4321_s9  ;;  %p86_p4 = scmp.eq.s32.totalorder %s3947_s14, 1 }
   0x8   : > { %s4399_s18 = scalar_select %p67_p1, %s4329_s11, %s69_s16  }
   0x9   : > { %p4401_p5 = por %p80_p2, %p79_p0  ;;  %p4405_p6 = por %p86_p4, %p85_p3 }
   0xa   : > { %p3950_p7 = scmp.ge.s32.totalorder %s4333_s12, 1  ;;  %p116_p8 = scmp.lt.s32.totalorder %s4333_s12, 3 }
   0xc   : > { %p117_p9 = pnand %p3950_p7, %p116_p8 }
   0xe   : > { %120 = sbr.rel (%p117_p9) target bundleno = 820 (0x334), region = 28 }
  0x13   : > { %s3952_s21 = sshll.u32 %s4384_s13, 4  ;;  %v4335_v0 = vmov 0   ;;  %v4336_v17 = vmov 1   ;;  %v4337_v18 = vmov 2   ;;  %v242_v19 = vlaneseq  ;;  %v4425_v24 = vld [vmem:[%s6799_s1] sm:$0x7] }
  0x14   : > { %4204 = vset.pattern.permute.xlu1 %v4335_v0  ;;  %4203 = vset.pattern.permute.xlu0 %v4335_v0  ;;  %p139_p10 = scmp.lt.s32.totalorder %s3952_s21, 31  ;;  %s4344_s28 = smov 64  }
  0x15   : > { %v4415_v20 = vshrl.u32 %v242_v19, 7  ;;  %s135_s29 = sand.u32 1, %s4325_s10   ;;  %s4087_s4 = sshll.u32 %s4384_s13, 11 }
  0x16   : > { %s7080_s21 = smov (!%p139_p10, %s3952_s21), 31  ;;  %s3951_s30 = sshll.u32 %s135_s29, 7 }
  0x17   : > { %s3953_s22 = sshll.u32 %s7080_s21, 3  ;;  %v244_v23 = vsub.s32 0, %v4415_v20  ;;  %v328_v52 = vsub.s32 1, %v4415_v20  ;;  %s6627_s3 = scalar_lea.vmem [#allocation2], %s3951_s30 }
  0x18   : > { %s142_s25 = scalar_lea.vmem %s6798_s0, %s3953_s22  ;;  %s3885_s5 = sshll.u32 %s6627_s3, 4  ;;  %s6752_s5 = int_to_ptr.vmem [resolvable:$true] %s3885_s5 }
  0x19   : > { %v147_v1 = vld [vmem:[%s142_s25 + $0x10] sm:$0xff]  ;;  %v145_v2 = vld [vmem:[%s142_s25] sm:$0xff]  ;;  %v148_v3 = vld [vmem:[%s142_s25 + $0x18] sm:$0xff]  ;;  %v4430_v27 = vrot.slane %v4425_v24, %v244_v23  ;;  %v329_v55 = vrot.slane %v4425_v24, %v328_v52  ;;  %s6750_s8 = scalar_lea.hbm %s6800_s2, %s4087_s4  ;;  %s6758_s14 = scalar_lea.sflag [#allocation3], %s135_s29 }
  0x1a   : > { %174 = vperm.xlu1 %4204, %v147_v1   ;;  %164 = vperm.xlu0 %4203, %v145_v2   ;;  %v146_v4 = vld [vmem:[%s142_s25 + $0x8] sm:$0xff]  ;;  %v149_v6 = vld [vmem:[%s142_s25 + $0x20] sm:$0xff]  ;;  %v152_v7 = vld [vmem:[%s142_s25 + $0x38] sm:$0xff]  ;;  %s4273_s16 = scalar_lea.vmem %s6752_s5, 2048  ;;  %s4345_s13 = smov [#allocation2]  }
  0x1b   : > { %v150_v5 = vld [vmem:[%s142_s25 + $0x28] sm:$0xff]  ;;  %v151_v8 = vld [vmem:[%s142_s25 + $0x30] sm:$0xff]  ;;  %v153_v10 = vld [vmem:[%s142_s25 + $0x40] sm:$0xff]  ;;  %p4274_p11 = scmp.ne.s32.totalorder %s6752_s5, %s4273_s16  ;;  %s4277_s17 = sshll.u32 %s4345_s13, 4  ;;  %s4278_s17 = int_to_ptr.vmem [resolvable:$false] %s4277_s17 }
  0x1c   : > { %v154_v9 = vld [vmem:[%s142_s25 + $0x48] sm:$0xff]  ;;  %v156_v11 = vld [vmem:[%s142_s25 + $0x58] sm:$0xff]  ;;  %v155_v12 = vld [vmem:[%s142_s25 + $0x50] sm:$0xff]  ;;  %s4279_s21 = scalar_lea.vmem %s4278_s17, 4096  ;;  %p4280_p0 = scmp.lt.s32.totalorder %s6752_s5, %s4278_s17 }
  0x1d   : > { %v158_v13 = vld [vmem:[%s142_s25 + $0x68] sm:$0xff]  ;;  %v157_v14 = vld [vmem:[%s142_s25 + $0x60] sm:$0xff]  ;;  %v160_v15 = vld [vmem:[%s142_s25 + $0x78] sm:$0xff]  ;;  %p4275_p12 = pnand %p4274_p11, %p4401_p5  ;;  %p4281_p1 = scmp.lt.s32.totalorder %s4279_s21, %s4273_s16 }
  0x1e   : > { %179 = vperm.xlu1 %4204, %v148_v3   ;;  %169 = vperm.xlu0 %4203, %v146_v4   ;;  %v159_v16 = vld [vmem:[%s142_s25 + $0x70] sm:$0xff] }
  0x1f   : > { %p4276_p13 = pneg %p4275_p12  ;;  %p4282_p2 = por %p4281_p1, %p4280_p0 }
  0x21   : > { %p4283_p3 = pnand %p4282_p2, %p4276_p13 }
  0x22   : > { %189 = vperm.xlu1 %4204, %v150_v5   ;;  %184 = vperm.xlu0 %4203, %v149_v6  }
  0x26   : > { %199 = vperm.xlu1 %4204, %v152_v7   ;;  %194 = vperm.xlu0 %4203, %v151_v8  }
  0x2a   : > { %209 = vperm.xlu1 %4204, %v154_v9   ;;  %204 = vperm.xlu0 %4203, %v153_v10  }
  0x2e   : > { %219 = vperm.xlu1 %4204, %v156_v11   ;;  %214 = vperm.xlu0 %4203, %v155_v12  }
  0x32   : > { %229 = vperm.xlu1 %4204, %v158_v13   ;;  %224 = vperm.xlu0 %4203, %v157_v14  }
  0x36   : > { %239 = vperm.xlu1 %4204, %v160_v15   ;;  %234 = vperm.xlu0 %4203, %v159_v16  }
  0x3a   : > { %4206 = vset.pattern.permute.xlu1 %v4336_v17  ;;  %4205 = vset.pattern.permute.xlu0 %v4336_v17 }
  0x3b   : > { %267 = vperm.xlu1 %4206, %v146_v4   ;;  %263 = vperm.xlu0 %4205, %v145_v2  }
  0x3f   : > { %271 = vperm.xlu1 %4206, %v147_v1   ;;  %275 = vperm.xlu0 %4205, %v148_v3  }
  0x43   : > { %279 = vperm.xlu1 %4206, %v149_v6   ;;  %283 = vperm.xlu0 %4205, %v150_v5  }
  0x47   : > { %287 = vperm.xlu1 %4206, %v151_v8   ;;  %291 = vperm.xlu0 %4205, %v152_v7  }
  0x4b   : > { %295 = vperm.xlu1 %4206, %v153_v10   ;;  %299 = vperm.xlu0 %4205, %v154_v9  }
  0x4f   : > { %303 = vperm.xlu1 %4206, %v155_v12   ;;  %307 = vperm.xlu0 %4205, %v156_v11  }
  0x53   : > { %311 = vperm.xlu1 %4206, %v157_v14   ;;  %315 = vperm.xlu0 %4205, %v158_v13  }
  0x57   : > { %319 = vperm.xlu1 %4206, %v159_v16   ;;  %323 = vperm.xlu0 %4205, %v160_v15  }
  0x5b   : > { %4207 = vset.pattern.permute.xlu1 %v4337_v18  ;;  %4208 = vset.pattern.permute.xlu0 %v4337_v18 }
  0x5c   : > { %363 = vperm.xlu1 %4207, %v145_v2   ;;  %367 = vperm.xlu0 %4208, %v146_v4  }
  0x60   : > { %371 = vperm.xlu1 %4207, %v147_v1   ;;  %379 = vperm.xlu0 %4208, %v149_v6  }
  0x64   : > { %375 = vperm.xlu1 %4207, %v148_v3   ;;  %387 = vperm.xlu0 %4208, %v151_v8  }
  0x68   : > { %383 = vperm.xlu1 %4207, %v150_v5   ;;  %395 = vperm.xlu0 %4208, %v153_v10  }
  0x6c   : > { %391 = vperm.xlu1 %4207, %v152_v7   ;;  %403 = vperm.xlu0 %4208, %v155_v12  }
  0x70   : > { %399 = vperm.xlu1 %4207, %v154_v9   ;;  %411 = vperm.xlu0 %4208, %v157_v14  }
  0x74   : > { %407 = vperm.xlu1 %4207, %v156_v11   ;;  %419 = vperm.xlu0 %4208, %v159_v16  }
  0x78   : > { %415 = vperm.xlu1 %4207, %v158_v13  }
  0x7c   : > { %423 = vperm.xlu1 %4207, %v160_v15  }
  0x95   : > { %v4417_v21 = vpop.permute.xlu1 %174  ;;  %v4419_v22 = vpop.permute.xlu0 %164 }
  0x99   : > { %v180_v25 = vpop.permute.xlu1 %179  ;;  %v4427_v26 = vpop.permute.xlu0 %169 }
  0x9a   : > { %v249_v58 = vmul.f32 %v4430_v27, %v180_v25 }
  0x9d   : > { %v190_v28 = vpop.permute.xlu1 %189  ;;  %v185_v29 = vpop.permute.xlu0 %184 }
  0x9e   : > { %v251_v30 = vmul.f32 %v4430_v27, %v190_v28  ;;  %v250_v31 = vmul.f32 %v4430_v27, %v185_v29 }
  0xa1   : > { %v200_v32 = vpop.permute.xlu1 %199  ;;  %v195_v33 = vpop.permute.xlu0 %194 }
  0xa2   : > { %v253_v34 = vmul.f32 %v4430_v27, %v200_v32  ;;  %v252_v35 = vmul.f32 %v4430_v27, %v195_v33 }
  0xa5   : > { %v210_v36 = vpop.permute.xlu1 %209  ;;  %v205_v37 = vpop.permute.xlu0 %204 }
  0xa6   : > { %v255_v38 = vmul.f32 %v4430_v27, %v210_v36  ;;  %v254_v39 = vmul.f32 %v4430_v27, %v205_v37  ;;  %v428_v37 = vsub.s32 2, %v4415_v20  ;;  %v247_v20 = vmul.f32 %v4430_v27, %v4427_v26 }
  0xa7   : > { %v248_v26 = vmul.f32 %v4430_v27, %v4417_v21 }
  0xa9   : > { %v220_v40 = vpop.permute.xlu1 %219  ;;  %v215_v41 = vpop.permute.xlu0 %214 }
  0xaa   : > { %v257_v42 = vmul.f32 %v4430_v27, %v220_v40  ;;  %v256_v43 = vmul.f32 %v4430_v27, %v215_v41  ;;  %v4471_v41 = vrot.slane %v4425_v24, %v428_v37 }
  0xad   : > { %v230_v44 = vpop.permute.xlu1 %229  ;;  %v225_v45 = vpop.permute.xlu0 %224 }
  0xae   : > { %v259_v46 = vmul.f32 %v4430_v27, %v230_v44  ;;  %v258_v47 = vmul.f32 %v4430_v27, %v225_v45 }
  0xb1   : > { %v240_v48 = vpop.permute.xlu1 %239  ;;  %v235_v49 = vpop.permute.xlu0 %234 }
  0xb2   : > { %v261_v50 = vmul.f32 %v4430_v27, %v240_v48  ;;  %v260_v51 = vmul.f32 %v4430_v27, %v235_v49 }
  0xb6   : > { %v268_v53 = vpop.permute.xlu1 %267  ;;  %v264_v54 = vpop.permute.xlu0 %263 }
  0xb7   : > { %v331_v44 = vmul.f32 %v329_v55, %v268_v53 }
  0xb9   : > { %v347_v24 = vadd.f32 %v331_v44, %v247_v20 }
  0xba   : > { %v272_v56 = vpop.permute.xlu1 %271  ;;  %v276_v57 = vpop.permute.xlu0 %275 }
  0xbb   : > { %v333_v59 = vmul.f32 %v329_v55, %v276_v57 }
  0xbd   : > { %v4447_v60 = vadd.f32 %v333_v59, %v249_v58  ;;  %v332_v58 = vmul.f32 %v329_v55, %v272_v56 }
  0xbe   : > { %v280_v61 = vpop.permute.xlu1 %279  ;;  %v284_v62 = vpop.permute.xlu0 %283 }
  0xbf   : > { %v334_v63 = vmul.f32 %v329_v55, %v280_v61  ;;  %v335_v0 = vmul.f32 %v329_v55, %v284_v62 }
  0xc1   : > { %v350_v1 = vadd.f32 %v334_v63, %v250_v31  ;;  %v4449_v2 = vadd.f32 %v335_v0, %v251_v30  ;;  %v348_v0 = vadd.f32 %v332_v58, %v248_v26 }
  0xc2   : > { %v288_v3 = vpop.permute.xlu1 %287  ;;  %v292_v4 = vpop.permute.xlu0 %291 }
  0xc3   : > { %v336_v5 = vmul.f32 %v329_v55, %v288_v3  ;;  %v337_v6 = vmul.f32 %v329_v55, %v292_v4 }
  0xc5   : > { %v352_v7 = vadd.f32 %v336_v5, %v252_v35  ;;  %v4451_v8 = vadd.f32 %v337_v6, %v253_v34 }
  0xc6   : > { %v296_v9 = vpop.permute.xlu1 %295  ;;  %v300_v10 = vpop.permute.xlu0 %299 }
  0xc7   : > { %v338_v11 = vmul.f32 %v329_v55, %v296_v9  ;;  %v339_v12 = vmul.f32 %v329_v55, %v300_v10 }
  0xc9   : > { %v4453_v13 = vadd.f32 %v338_v11, %v254_v39  ;;  %v4455_v14 = vadd.f32 %v339_v12, %v255_v38 }
  0xca   : > { %v304_v15 = vpop.permute.xlu1 %303  ;;  %v308_v16 = vpop.permute.xlu0 %307 }
  0xcb   : > { %v340_v17 = vmul.f32 %v329_v55, %v304_v15  ;;  %v341_v18 = vmul.f32 %v329_v55, %v308_v16 }
  0xcd   : > { %v4457_v19 = vadd.f32 %v340_v17, %v256_v43  ;;  %v4459_v23 = vadd.f32 %v341_v18, %v257_v42  ;;  %v330_v43 = vmul.f32 %v329_v55, %v264_v54 }
  0xce   : > { %v312_v25 = vpop.permute.xlu1 %311  ;;  %v316_v28 = vpop.permute.xlu0 %315 }
  0xcf   : > { %v342_v29 = vmul.f32 %v329_v55, %v312_v25  ;;  %v343_v30 = vmul.f32 %v329_v55, %v316_v28 }
  0xd1   : > { %v4461_v31 = vadd.f32 %v342_v29, %v258_v47  ;;  %v4463_v32 = vadd.f32 %v343_v30, %v259_v46  ;;  %v246_v46 = vmul.f32 %v4430_v27, %v4419_v22 }
  0xd2   : > { %v320_v33 = vpop.permute.xlu1 %319  ;;  %v324_v34 = vpop.permute.xlu0 %323 }
  0xd3   : > { %v344_v35 = vmul.f32 %v329_v55, %v320_v33  ;;  %v345_v36 = vmul.f32 %v329_v55, %v324_v34 }
  0xd5   : > { %v4466_v38 = vadd.f32 %v344_v35, %v260_v51  ;;  %v4468_v39 = vadd.f32 %v345_v36, %v261_v50  ;;  %v346_v50 = vadd.f32 %v330_v43, %v246_v46 }
  0xd7   : > { %v368_v40 = vpop.permute.xlu0 %367  ;;  %v364_v42 = vpop.permute.xlu1 %363 }
  0xd8   : > { %v430_v47 = vmul.f32 %v4471_v41, %v364_v42  ;;  %v431_v49 = vmul.f32 %v4471_v41, %v368_v40 }
  0xda   : > { %v4482_v54 = vadd.f32 %v430_v47, %v346_v50  ;;  %v4484_v53 = vadd.f32 %v431_v49, %v347_v24 }
  0xdb   : > { %v380_v45 = vpop.permute.xlu0 %379  ;;  %v372_v57 = vpop.permute.xlu1 %371 }
  0xdc   : > { %v434_v48 = vmul.f32 %v4471_v41, %v380_v45  ;;  %v465_v61 = vand.u32 2139095040, %v4482_v54  ;;  %v569_v62 = vand.u32 2139095040, %v4484_v53  ;;  %v432_v63 = vmul.f32 %v4471_v41, %v372_v57 }
  0xdd   : > { %v6802_v35 = vand.u32 2147483647, %v4482_v54  ;;  %v6801_v45 = vand.u32 2147483647, %v4484_v53 }
  0xde   : > { %v4480_v51 = vadd.f32 %v434_v48, %v350_v1  ;;  %v466_v1 = vshrl.u32 %v465_v61, 23  ;;  %v570_v3 = vshrl.u32 %v569_v62, 23  ;;  %v4494_v4 = vadd.f32 %v432_v63, %v348_v0 }
  0xdf   : > { %v388_v52 = vpop.permute.xlu0 %387  ;;  %v376_v5 = vpop.permute.xlu1 %375  ;;  %v4528_v20 = vand.u32 8388607, %v6802_v35  ;;  %v4539_v61 = vand.u32 8388607, %v6801_v45 }
  0xe0   : > { %6905 = vst [vmem:[#allocation5_spill] sm:$0xff] %v4480_v51  ;;  %v436_v22 = vmul.f32 %v4471_v41, %v388_v52  ;;  %v3954_v6 = vadd.s32 4294967169, %v466_v1  ;;  %v3958_v9 = vadd.s32 4294967169, %v570_v3  ;;  %v673_v55 = vand.u32 2139095040, %v4494_v4 }
  0xe1   : > { %v433_v11 = vmul.f32 %v4471_v41, %v376_v5  ;;  %v881_v12 = vand.u32 2139095040, %v4480_v51  ;;  %v6803_v3 = vmov 2102212464  }
  0xe2   : > { %v4487_v59 = vadd.f32 %v436_v22, %v352_v7  ;;  %v472_v10 = vadd.s32 1, %v3954_v6  ;;  %v576_v21 = vadd.s32 1, %v3958_v9  ;;  %v674_v27 = vshrl.u32 %v673_v55, 23 }
  0xe3   : > { %v384_v56 = vpop.permute.xlu1 %383  ;;  %v396_v7 = vpop.permute.xlu0 %395  ;;  %v4502_v17 = vadd.f32 %v433_v11, %v4447_v60  ;;  %v882_v34 = vshrl.u32 %v881_v12, 23  ;;  %v6807_v55 = vmov 920167782  }
  0xe4   : > { %6906 = vst [vmem:[#allocation6_spill] sm:$0xff] %v4487_v59  ;;  %v435_v15 = vmul.f32 %v4471_v41, %v384_v56  ;;  %v438_v16 = vmul.f32 %v4471_v41, %v396_v7  ;;  %vm473_vm0 = vcmp.gt.s32.totalorder %v472_v10, 0  ;;  %vm577_vm1 = vcmp.gt.s32.totalorder %v576_v21, 0 }
  0xe5   : > { %v3962_v18 = vadd.s32 4294967169, %v674_v27  ;;  %v474_v33 = vsel %vm473_vm0, %v472_v10, 0  ;;  %v578_v36 = vsel %vm577_vm1, %v576_v21, 0  ;;  %v777_v37 = vand.u32 2139095040, %v4502_v17 }
  0xe6   : > { %v4505_v25 = vadd.f32 %v435_v15, %v4449_v2  ;;  %v4508_v28 = vadd.f32 %v438_v16, %v4453_v13  ;;  %v1089_v2 = vand.u32 2139095040, %v4487_v59  ;;  %v4515_v43 = vand.u32 31, %v474_v33 }
  0xe7   : > { %v392_v29 = vpop.permute.xlu1 %391  ;;  %v404_v30 = vpop.permute.xlu0 %403  ;;  %v680_v42 = vadd.s32 1, %v3962_v18  ;;  %v4517_v13 = vand.u32 31, %v578_v36  ;;  %v3970_v44 = vadd.s32 4294967169, %v882_v34  ;;  %v778_v46 = vshrl.u32 %v777_v37, 23 }
  0xe8   : > { %6907 = vst [vmem:[#allocation7_spill] sm:$0xff] %v4505_v25  ;;  %6908 = vst [vmem:[#allocation8_spill] sm:$0xff] %v4508_v28  ;;  %v437_v60 = vmul.f32 %v4471_v41, %v392_v29  ;;  %v440_v40 = vmul.f32 %v4471_v41, %v404_v30  ;;  %v1090_v49 = vshrl.u32 %v1089_v2, 23  ;;  %v4531_v52 = vsub.s32 32, %v4515_v43 }
  0xe9   : > { %vm681_vm2 = vcmp.gt.s32.totalorder %v680_v42, 0  ;;  %v4534_v22 = vsub.s32 32, %v4517_v13  ;;  %v888_v57 = vadd.s32 1, %v3970_v44  ;;  %v3966_v58 = vadd.s32 4294967169, %v778_v46 }
  0xea   : > { %v4521_v47 = vadd.f32 %v437_v60, %v4451_v8  ;;  %v4524_v48 = vadd.f32 %v440_v40, %v4457_v19  ;;  %v682_v8 = vsel %vm681_vm2, %v680_v42, 0  ;;  %v3978_v26 = vadd.s32 4294967169, %v1090_v49 }
  0xeb   : > { %v400_v50 = vpop.permute.xlu1 %399  ;;  %v412_v24 = vpop.permute.xlu0 %411  ;;  %v985_v62 = vand.u32 2139095040, %v4505_v25  ;;  %v4544_v1 = vshrl.u32 %v474_v33, 5  ;;  %v488_v5 = vshll.u32 %v6803_v3, %v4515_v43  ;;  %v4548_v6 = vshrl.u32 %v578_v36, 5 }
  0xec   : > { %6909 = vst [vmem:[#allocation9_spill] sm:$0xff] %v4521_v47  ;;  %6910 = vst [vmem:[#allocation10_spill] sm:$0xff] %v4524_v48  ;;  %v439_v63 = vmul.f32 %v4471_v41, %v400_v50  ;;  %v442_v0 = vmul.f32 %v4471_v41, %v412_v24  ;;  %v1297_v9 = vand.u32 2139095040, %v4508_v28  ;;  %v489_v56 = vshrl.u32 %v6807_v55, %v4531_v52 }
  0xed   : > { %v6805_v7 = vmov 1326507024   ;;  %v593_v11 = vshrl.u32 %v6807_v55, %v4534_v22  ;;  %vm889_vm3 = vcmp.gt.s32.totalorder %v888_v57, 0  ;;  %v4557_v21 = vand.u32 31, %v682_v8 }
  0xee   : > { %v492_v10 = vshrl.u32 %v6805_v7, %v4531_v52  ;;  %v784_v27 = vadd.s32 1, %v3966_v58  ;;  %v4560_v12 = vadd.f32 %v439_v63, %v4455_v14  ;;  %v4563_v15 = vadd.f32 %v442_v0, %v4461_v31 }
  0xef   : > { %v408_v16 = vpop.permute.xlu1 %407  ;;  %v491_v18 = vshll.u32 %v6807_v55, %v4515_v43  ;;  %v1096_v29 = vadd.s32 1, %v3978_v26  ;;  %v986_v30 = vshrl.u32 %v985_v62, 23  ;;  %v1193_v33 = vand.u32 2139095040, %v4521_v47 }
  0xf0   : > { %6911 = vst [vmem:[#allocation11_spill] sm:$0xff] %v4560_v12  ;;  %6912 = vst [vmem:[#allocation12_spill] sm:$0xff] %v4563_v15  ;;  %v592_v34 = vshll.u32 %v6803_v3, %v4517_v13  ;;  %v596_v36 = vshrl.u32 %v6805_v7, %v4534_v22  ;;  %v890_v37 = vsel %vm889_vm3, %v888_v57, 0  ;;  %v1298_v14 = vshrl.u32 %v1297_v9, 23 }
  0xf1   : > { %v4572_v60 = vor.u32 %v489_v56, %v488_v5  ;;  %vm497_vm4 = vcmp.lt.s32.totalorder %v4544_v1, 4  ;;  %v595_v31 = vshll.u32 %v6807_v55, %v4517_v13  ;;  %v1505_v40 = vand.u32 2139095040, %v4524_v48 }
  0xf2   : > { %v493_v42 = vor.u32 %v492_v10, %v491_v18  ;;  %v4578_v2 = vor.u32 %v593_v11, %v592_v34  ;;  %v4581_v44 = vsub.s32 32, %v4557_v21  ;;  %vm785_vm5 = vcmp.gt.s32.totalorder %v784_v27, 0 }
  0xf3   : > { %v4583_v46 = vand.u32 31, %v890_v37  ;;  %vm1097_vm6 = vcmp.gt.s32.totalorder %v1096_v29, 0  ;;  %v3974_v49 = vadd.s32 4294967169, %v986_v30  ;;  %v1194_v50 = vshrl.u32 %v1193_v33, 23  ;;  %v416_v26 = vpop.permute.xlu1 %415  ;;  %v420_v33 = vpop.permute.xlu0 %419 }
  0xf4   : > { %v597_v24 = vor.u32 %v596_v36, %v595_v31  ;;  %vm601_vm7 = vcmp.lt.s32.totalorder %v4548_v6, 4  ;;  %v4586_v57 = vshrl.u32 %v682_v8, 5  ;;  %v3986_v58 = vadd.s32 4294967169, %v1298_v14 }
  0xf5   : > { %6913 = vst [vmem:[#allocation13_spill] sm:$0xff] %v4583_v46  ;;  %v4591_v62 = vsel %vm497_vm4, %v4572_v60, 920167782  ;;  %v4593_v63 = vshrl.u32 %v890_v37, 5  ;;  %v786_v0 = vsel %vm785_vm5, %v784_v27, 0  ;;  %v1506_v5 = vshrl.u32 %v1505_v40, 23 }
  0xf6   : > { %v4597_v9 = vsel %vm497_vm4, %v493_v42, 1326507024  ;;  %v696_v56 = vshll.u32 %v6803_v3, %v4557_v21  ;;  %v697_v8 = vshrl.u32 %v6807_v55, %v4581_v44  ;;  %v1098_v10 = vsel %vm1097_vm6, %v1096_v29, 0 }
  0xf7   : > { %6914 = vst [vmem:[#allocation14_spill] sm:$0xff] %v4593_v63  ;;  %v4606_v11 = vsel %vm601_vm7, %v4578_v2, 920167782  ;;  %v4609_v18 = vsub.s32 32, %v4583_v46  ;;  %v992_v27 = vadd.s32 1, %v3974_v49  ;;  %v3982_v30 = vadd.s32 4294967169, %v1194_v50  ;;  %v424_v45 = vpop.permute.xlu1 %423 }
  0xf8   : > { %v4613_v34 = vsel %vm601_vm7, %v597_v24, 1326507024  ;;  %v699_v36 = vshll.u32 %v6807_v55, %v4557_v21  ;;  %v4617_v37 = vand.u32 31, %v786_v0  ;;  %v1304_v29 = vadd.s32 1, %v3986_v58 }
  0xf9   : > { %6915 = vst [vmem:[#allocation15_spill] sm:$0xff] %v4609_v18  ;;  %v700_v14 = vshrl.u32 %v6805_v7, %v4581_v44  ;;  %vm705_vm8 = vcmp.lt.s32.totalorder %v4586_v57, 4  ;;  %v4622_v31 = vand.u32 31, %v1098_v10  ;;  %v3994_v40 = vadd.s32 4294967169, %v1506_v5 }
  0xfa   : > { %v4624_v42 = vor.u32 %v697_v8, %v696_v56  ;;  %v904_v49 = vshll.u32 %v6803_v3, %v4583_v46  ;;  %v441_v50 = vmul.f32 %v4471_v41, %v408_v16  ;;  %v444_v24 = vmul.f32 %v4471_v41, %v420_v33 }
  0xfb   : > { %6916 = vst [vmem:[#allocation16_spill] sm:$0xff] %v4622_v31  ;;  %v905_v58 = vshrl.u32 %v6807_v55, %v4609_v18  ;;  %v908_v35 = vshrl.u32 %v6805_v7, %v4609_v18  ;;  %vm993_vm9 = vcmp.gt.s32.totalorder %v992_v27, 0  ;;  %v1200_v19 = vadd.s32 1, %v3982_v30 }
  0xfc   : > { %v4635_v5 = vsub.s32 32, %v4617_v37  ;;  %vm1305_vm10 = vcmp.gt.s32.totalorder %v1304_v29, 0  ;;  %v4638_v56 = vadd.f32 %v441_v50, %v4459_v23  ;;  %v4641_v16 = vadd.f32 %v444_v24, %v4466_v38 }
  0xfd   : > { %v4644_v8 = vsub.s32 32, %v4622_v31  ;;  %v1512_v33 = vadd.s32 1, %v3994_v40  ;;  %v443_v3 = vmul.f32 %v4471_v41, %v416_v26  ;;  %v445_v7 = vmul.f32 %v4471_v41, %v424_v45 }
  0xfe   : > { %6917 = vst [vmem:[#allocation17_spill] sm:$0xff] %v4638_v56  ;;  %6918 = vst [vmem:[#allocation18_spill] sm:$0xff] %v4641_v16  ;;  %v701_v55 = vor.u32 %v700_v14, %v699_v36  ;;  %v6920_v30 = vmov 920167782   ;;  %vm913_vm11 = vcmp.lt.s32.totalorder %v4593_v63, 4  ;;  %v994_v28 = vsel %vm993_vm9, %v992_v27, 0 }
  0xff   : > { %6919 = vst [vmem:[#allocation19_spill] sm:$0xff] %v4644_v8  ;;  %v907_v48 = vshll.u32 %v6920_v30, %v4583_v46  ;;  %v1306_v23 = vsel %vm1305_vm10, %v1304_v29, 0  ;;  %vm1201_vm12 = vcmp.gt.s32.totalorder %v1200_v19, 0  ;;  %v4652_v38 = vadd.f32 %v443_v3, %v4463_v32 }
 0x100   : > { %v4655_v50 = vadd.f32 %v445_v7, %v4468_v39  ;;  %v4660_v26 = vsel %vm705_vm8, %v4624_v42, 920167782  ;;  %v4662_v41 = vor.u32 %v905_v58, %v904_v49  ;;  %v801_v45 = vshrl.u32 %v6920_v30, %v4635_v5 }
 0x101   : > { %6921 = vst [vmem:[#allocation20_spill] sm:$0xff] %v4652_v38  ;;  %v6924_v27 = vmov 1326507024   ;;  %v909_v29 = vor.u32 %v908_v35, %v907_v48  ;;  %v1113_v32 = vshrl.u32 %v6920_v30, %v4644_v8  ;;  %v4670_v3 = vand.u32 31, %v994_v28 }
 0x102   : > { %6922 = vst [vmem:[#allocation21_spill] sm:$0xff] %v4655_v50  ;;  %6923 = vst [vmem:[#allocation22_spill] sm:$0xff] %v4662_v41  ;;  %v804_v36 = vshrl.u32 %v6924_v27, %v4635_v5  ;;  %vm1513_vm13 = vcmp.gt.s32.totalorder %v1512_v33, 0  ;;  %v6926_v39 = vmov 2102212464   ;;  %v803_v14 = vshll.u32 %v6920_v30, %v4617_v37 }
 0x103   : > { %6925 = vst [vmem:[#allocation23_spill] sm:$0xff] %v4670_v3  ;;  %v800_v7 = vshll.u32 %v6926_v39, %v4617_v37  ;;  %v4676_v40 = vand.u32 31, %v1306_v23  ;;  %v1202_v49 = vsel %vm1201_vm12, %v1200_v19, 0  ;;  %v4680_v24 = vsel %vm705_vm8, %v701_v55, 1326507024 }
 0x104   : > { %v4682_v35 = vshrl.u32 %v786_v0, 5  ;;  %v1112_v48 = vshll.u32 %v6926_v39, %v4622_v31  ;;  %v1116_v58 = vshrl.u32 %v6924_v27, %v4644_v8  ;;  %v805_v59 = vor.u32 %v804_v36, %v803_v14 }
 0x105   : > { %6927 = vst [vmem:[#allocation24_spill] sm:$0xff] %v4676_v40  ;;  %v4688_v47 = vor.u32 %v801_v45, %v800_v7  ;;  %v4690_v25 = vshrl.u32 %v1098_v10, 5  ;;  %v1514_v46 = vsel %vm1513_vm13, %v1512_v33, 0  ;;  %v1115_v19 = vshll.u32 %v6920_v30, %v4622_v31 }
 0x106   : > { %v4692_v18 = vor.u32 %v1113_v32, %v1112_v48  ;;  %v4697_v55 = vsub.s32 32, %v4670_v3  ;;  %v4699_v0 = vand.u32 31, %v1202_v49  ;;  %v4704_v8 = vsel %vm913_vm11, %v4662_v41, 920167782 }
 0x107   : > { %6928 = vst [vmem:[#allocation25_spill] sm:$0xff] %v4688_v47  ;;  %6929 = vst [vmem:[#allocation26_spill] sm:$0xff] %v4690_v25  ;;  %v4708_v10 = vsel %vm913_vm11, %v909_v29, 1326507024  ;;  %v4711_v33 = vsub.s32 32, %v4676_v40  ;;  %v1401_v45 = vand.u32 2139095040, %v4560_v12  ;;  %v1117_v36 = vor.u32 %v1116_v58, %v1115_v19 }
 0x108   : > { %6930 = vst [vmem:[#allocation27_spill] sm:$0xff] %v4692_v18  ;;  %6931 = vst [vmem:[#allocation28_spill] sm:$0xff] %v4697_v55  ;;  %vm809_vm14 = vcmp.lt.s32.totalorder %v4682_v35, 4  ;;  %v4715_v32 = vand.u32 31, %v1514_v46  ;;  %v1713_v7 = vand.u32 2139095040, %v4563_v15  ;;  %vm1121_vm15 = vcmp.lt.s32.totalorder %v4690_v25, 4 }
 0x109   : > { %6932 = vst [vmem:[#allocation29_spill] sm:$0xff] %v4699_v0  ;;  %6933 = vst [vmem:[#allocation30_spill] sm:$0xff] %v4704_v8  ;;  %v4721_v14 = vsel %vm809_vm14, %v4688_v47, 920167782  ;;  %v4725_v29 = vsel %vm809_vm14, %v805_v59, 1326507024  ;;  %v1009_v15 = vshrl.u32 %v6920_v30, %v4697_v55  ;;  %v1012_v59 = vshrl.u32 %v6924_v27, %v4697_v55 }
 0x10a   : > { %6934 = vst [vmem:[#allocation31_spill] sm:$0xff] %v4708_v10  ;;  %6935 = vst [vmem:[#allocation32_spill] sm:$0xff] %v4711_v33  ;;  %v6937_v48 = vor.u32 8388608, %v4528_v20  ;;  %v4735_v58 = vsel %vm1121_vm15, %v4692_v18, 920167782  ;;  %v4737_v19 = vshrl.u32 %v994_v28, 5  ;;  %v1321_v20 = vshrl.u32 %v6920_v30, %v4711_v33 }
 0x10b   : > { %6936 = vst [vmem:[#allocation33_spill] sm:$0xff] %v4715_v32  ;;  %6938 = vst [vmem:[#allocation34_spill] sm:$0xff] %v4735_v58  ;;  %v4742_v31 = vsub.s32 32, %v4699_v0  ;;  %v1402_v8 = vshrl.u32 %v1401_v45, 23  ;;  %v4752_v28 = vsel %vm1121_vm15, %v1117_v36, 1326507024  ;;  %v1008_v18 = vshll.u32 %v6926_v39, %v4670_v3 }
 0x10c   : > { %v4730_v12 = vshll.u32 %v6937_v48, 8  ;;  %v1324_v48 = vshrl.u32 %v6924_v27, %v4711_v33  ;;  %6940 = vst [vmem:[#allocation36_spill] sm:$0xff] %v4752_v28  ;;  %v4757_v58 = vsub.s32 32, %v4715_v32  ;;  %v1714_v41 = vshrl.u32 %v1713_v7, 23 }
 0x10d   : > { %6939 = vst [vmem:[#allocation35_spill] sm:$0xff] %v4742_v31  ;;  %v1011_v55 = vshll.u32 %v6920_v30, %v4670_v3  ;;  %v4761_v10 = vshrl.u32 %v1306_v23, 5  ;;  %v1320_v33 = vshll.u32 %v6926_v39, %v4676_v40  ;;  %v1323_v45 = vshll.u32 %v6920_v30, %v4676_v40 }
 0x10e   : > { %6941 = vst [vmem:[#allocation37_spill] sm:$0xff] %v4757_v58  ;;  %v4767_v36 = vor.u32 %v1009_v15, %v1008_v18  ;;  %vm1017_vm0 = vcmp.lt.s32.totalorder %v4737_v19, 4  ;;  %v1217_v28 = vshrl.u32 %v6920_v30, %v4742_v31  ;;  %v1220_v7 = vshrl.u32 %v6924_v27, %v4742_v31 }
 0x10f   : > { %6942 = vst [vmem:[#allocation38_spill] sm:$0xff] %v4761_v10  ;;  %v1013_v25 = vor.u32 %v1012_v59, %v1011_v55  ;;  %v4774_v3 = vor.u32 %v1321_v20, %v1320_v33  ;;  %v1325_v23 = vor.u32 %v1324_v48, %v1323_v45  ;;  %v3990_v63 = vadd.s32 4294967169, %v1402_v8 }
 0x110   : > { %6943 = vst [vmem:[#allocation39_spill] sm:$0xff] %v4767_v36  ;;  %v1216_v51 = vshll.u32 %v6926_v39, %v4699_v0  ;;  %v1219_v15 = vshll.u32 %v6920_v30, %v4699_v0  ;;  %v1529_v18 = vshrl.u32 %v6920_v30, %v4757_v58  ;;  %v4002_v40 = vadd.s32 4294967169, %v1714_v41 }
 0x111   : > { %6944 = vst [vmem:[#allocation40_spill] sm:$0xff] %v4774_v3  ;;  %vm6890_vm1 = vcmp.lt.s32.totalorder %v4761_v10, 4  ;;  %v4783_v47 = vshrl.u32 %v1202_v49, 5  ;;  %v4785_v31 = vshrl.u32 %v1514_v46, 5  ;;  %v1532_v55 = vshrl.u32 %v6924_v27, %v4757_v58 }
 0x112   : > { %v4792_v8 = vsel %vm1017_vm0, %v4767_v36, 920167782  ;;  %v4794_v33 = vor.u32 %v1217_v28, %v1216_v51  ;;  %v1221_v59 = vor.u32 %v1220_v7, %v1219_v15  ;;  %v1528_v41 = vshll.u32 %v6926_v39, %v4715_v32 }
 0x113   : > { %6945 = vst [vmem:[#allocation41_spill] sm:$0xff] %v4783_v47  ;;  %6946 = vst [vmem:[#allocation42_spill] sm:$0xff] %v4785_v31  ;;  %v4800_v49 = vsel %vm1017_vm0, %v1013_v25, 1326507024  ;;  %v1531_v46 = vshll.u32 %v6920_v30, %v4715_v32  ;;  %v1408_v20 = vadd.s32 1, %v3990_v63  ;;  %v1720_v25 = vadd.s32 1, %v4002_v40 }
 0x114   : > { %6947 = vst [vmem:[#allocation43_spill] sm:$0xff] %v4794_v33  ;;  %v6852_v48 = vmov 2475754826   ;;  %v4809_v51 = vsel %vm6890_vm1, %v4774_v3, 920167782  ;;  %v4815_v7 = vor.u32 %v1529_v18, %v1528_v41  ;;  %vm1225_vm2 = vcmp.lt.s32.totalorder %v4783_v47, 4 }
 0x115   : > { %v480_v45 = vshrl.u32 %v6852_v48, %v4531_v52  ;;  %6948 = vst [vmem:[#allocation44_spill] sm:$0xff] %v4809_v51  ;;  %v4813_v28 = vsel %vm6890_vm1, %v1325_v23, 1326507024  ;;  %v1533_v15 = vor.u32 %v1532_v55, %v1531_v46  ;;  %v1609_v63 = vand.u32 2139095040, %v4638_v56 }
 0x116   : > { %6949 = vst [vmem:[#allocation45_spill] sm:$0xff] %v4813_v28  ;;  %6950 = vst [vmem:[#allocation46_spill] sm:$0xff] %v4815_v7  ;;  %v6856_v58 = vmov 683565275   ;;  %v4824_v32 = vsel %vm1225_vm2, %v4794_v33, 920167782 }
 0x117   : > { %v479_v48 = vshll.u32 %v6856_v58, %v4515_v43  ;;  %6951 = vst [vmem:[#allocation47_spill] sm:$0xff] %v4824_v32  ;;  %v4828_v23 = vsel %vm1225_vm2, %v1221_v59, 1326507024  ;;  %vm6887_vm3 = vcmp.lt.s32.totalorder %v4785_v31, 4  ;;  %v1921_v40 = vand.u32 2139095040, %v4641_v16 }
 0x118   : > { %6952 = vst [vmem:[#allocation48_spill] sm:$0xff] %v4828_v23  ;;  %vm1409_vm5 = vcmp.gt.s32.totalorder %v1408_v20, 0  ;;  %v6953_v55 = vmov 2475754826   ;;  %v6866_v46 = vmov 2131351028   ;;  %v486_v16 = vshrl.u32 %v6926_v39, %v4531_v52 }
 0x119   : > { %v481_v18 = vor.u32 %v480_v45, %v479_v48  ;;  %v482_v41 = vshll.u32 %v6953_v55, %v4515_v43  ;;  %v483_v58 = vshrl.u32 %v6866_v46, %v4531_v52  ;;  %v4839_v56 = vsel %vm6887_vm3, %v4815_v7, 920167782 }
 0x11a   : > { %6954 = vst [vmem:[#allocation49_spill] sm:$0xff] %v4839_v56  ;;  %vm1721_vm6 = vcmp.gt.s32.totalorder %v1720_v25, 0  ;;  %v485_v59 = vshll.u32 %v6866_v46, %v4515_v43  ;;  %v4847_v48 = vsel %vm6887_vm3, %v1533_v15, 1326507024  ;;  %v1610_v45 = vshrl.u32 %v1609_v63, 23 }
 0x11b   : > { %6955 = vst [vmem:[#allocation50_spill] sm:$0xff] %v4847_v48  ;;  %v6956_v51 = vmov 683565275   ;;  %v484_v28 = vor.u32 %v483_v58, %v482_v41  ;;  %v1410_v10 = vsel %vm1409_vm5, %v1408_v20, 0  ;;  %v1922_v32 = vshrl.u32 %v1921_v40, 23 }
 0x11c   : > { %v478_v3 = vshrl.u32 %v6956_v51, %v4531_v52  ;;  %v487_v7 = vor.u32 %v486_v16, %v485_v59  ;;  %vm494_vm9 = vcmp.lt.s32.totalorder %v4544_v1, 1  ;;  %v1722_v56 = vsel %vm1721_vm6, %v1720_v25, 0 }
 0x11d   : > { %v1817_v43 = vand.u32 2139095040, %v4652_v38  ;;  %v2025_v46 = vand.u32 2139095040, %v4655_v50  ;;  %vm495_vm10 = vcmp.lt.s32.totalorder %v4544_v1, 2  ;;  %vm496_vm12 = vcmp.lt.s32.totalorder %v4544_v1, 3 }
 0x11e   : > { %v498_v33 = vsel %vm494_vm9, %v478_v3, %v481_v18  ;;  %v499_v15 = vsel %vm497_vm4, %v487_v7, 2102212464  ;;  %v502_v52 = vsel %vm494_vm9, %v481_v18, %v484_v28  ;;  %v504_v20 = vsel %vm496_vm12, %v487_v7, %v4591_v62 }
 0x11f   : > { %v500_v58 = vsel %vm496_vm12, %v484_v28, %v499_v15  ;;  %v506_v16 = vsel %vm494_vm9, %v484_v28, %v487_v7  ;;  %v508_v25 = vsel %vm496_vm12, %v4572_v60, %v4597_v9  ;;  %v4861_v63 = vshrl.u32 %v1410_v10, 5 }
 0x120   : > { %v501_v40 = vsel %vm495_vm10, %v498_v33, %v500_v58  ;;  %v505_v41 = vsel %vm495_vm10, %v502_v52, %v504_v20  ;;  %v509_v3 = vsel %vm495_vm10, %v506_v16, %v508_v25  ;;  %v4872_v18 = vand.u32 31, %v1410_v10 }
 0x121   : > { %v4864_v59 = vmul.u32.u64.low %v4730_v12, %v509_v3  ;;  %v4865_v50 = vmul.u32.u64.high %v4730_v12, %v509_v3, %v4864_v59  ;;  %v4868_v1 = vmul.u32.u64.low %v4730_v12, %v505_v41  ;;  %v4869_v38 = vmul.u32.u64.high %v4730_v12, %v505_v41, %v4868_v1 }
 0x122   : > { %6957 = vst [vmem:[#allocation51_spill] sm:$0xff] %v4872_v18  ;;  %v4874_v62 = vshrl.u32 %v1722_v56, 5  ;;  %v583_v60 = vshll.u32 %v6956_v51, %v4517_v13  ;;  %v584_v9 = vshrl.u32 %v6953_v55, %v4534_v22  ;;  %v574_v33 = vor.u32 8388608, %v4539_v61 }
 0x123   : > { %v586_v28 = vshll.u32 %v6953_v55, %v4517_v13  ;;  %v6959_v7 = vmov 2131351028   ;;  %v590_v10 = vshrl.u32 %v6926_v39, %v4534_v22  ;;  %v4887_v52 = vand.u32 31, %v1722_v56 }
 0x124   : > { %6958 = vst [vmem:[#allocation52_spill] sm:$0xff] %v4874_v62  ;;  %v587_v15 = vshrl.u32 %v6959_v7, %v4534_v22  ;;  %v517_v58 = vmul.u32 %v4730_v12, %v501_v40  ;;  %v585_v20 = vor.u32 %v584_v9, %v583_v60  ;;  %v589_v16 = vshll.u32 %v6959_v7, %v4517_v13 }
 0x125   : > { %6960 = vst [vmem:[#allocation53_spill] sm:$0xff] %v4887_v52  ;;  %vm519_vm4 = vc.u32 %v4865_v50, %v4868_v1  ;;  %v520_v61 = vadd.s32 1, %v4869_v38  ;;  %vm600_vm13 = vcmp.lt.s32.totalorder %v4548_v6, 3  ;;  %v582_v41 = vshrl.u32 %v6956_v51, %v4534_v22 }
 0x126   : > { %v588_v25 = vor.u32 %v587_v15, %v586_v28  ;;  %v591_v3 = vor.u32 %v590_v10, %v589_v16  ;;  %vm598_vm5 = vcmp.lt.s32.totalorder %v4548_v6, 1  ;;  %v612_v12 = vsel %vm600_vm13, %v4578_v2, %v4613_v34 }
 0x127   : > { %v521_v13 = vsel %vm519_vm4, %v520_v61, %v4869_v38  ;;  %vm599_vm6 = vcmp.lt.s32.totalorder %v4548_v6, 2  ;;  %v614_v40 = vshll.u32 %v574_v33, 8  ;;  %v3998_v28 = vadd.s32 4294967169, %v1610_v45 }
 0x128   : > { %v606_v56 = vsel %vm598_vm5, %v585_v20, %v588_v25  ;;  %v522_v59 = vadd.s32 %v521_v13, %v517_v58  ;;  %v603_v60 = vsel %vm601_vm7, %v591_v3, 2102212464  ;;  %v608_v22 = vsel %vm600_vm13, %v591_v3, %v4606_v11 }
 0x129   : > { %v610_v9 = vsel %vm598_vm5, %v588_v25, %v591_v3  ;;  %v602_v15 = vsel %vm598_vm5, %v582_v41, %v585_v20  ;;  %v609_v2 = vsel %vm599_vm6, %v606_v56, %v608_v22  ;;  %v604_v33 = vsel %vm600_vm13, %v588_v25, %v603_v60 }
 0x12a   : > { %v613_v34 = vsel %vm599_vm6, %v610_v9, %v612_v12  ;;  %v523_v38 = vadd.s32 536870912, %v522_v59  ;;  %v4010_v16 = vadd.s32 4294967169, %v1922_v32  ;;  %v1818_v61 = vshrl.u32 %v1817_v43, 23 }
 0x12b   : > { %v4916_v10 = vmul.u32.u64.low %v614_v40, %v613_v34  ;;  %v4917_v58 = vmul.u32.u64.high %v614_v40, %v613_v34, %v4916_v10  ;;  %v4919_v13 = vmul.u32.u64.low %v614_v40, %v609_v2  ;;  %v4920_v11 = vmul.u32.u64.high %v614_v40, %v609_v2, %v4919_v13 }
 0x12c   : > { %v4924_v45 = vsub.s32 32, %v4872_v18  ;;  %v2026_v20 = vshrl.u32 %v2025_v46, 23  ;;  %v4926_v41 = vshrl.u32 %v523_v38, 30  ;;  %v6879_v3 = vand.u32 2147483647, %v4494_v4 }
 0x12d   : > { %v1424_v25 = vshll.u32 %v6926_v39, %v4872_v18  ;;  %v4933_v12 = vshll.u32 %v6920_v30, %v4872_v18  ;;  %v4936_v32 = vsub.s32 32, %v4887_v52  ;;  %v605_v43 = vsel %vm599_vm6, %v602_v15, %v604_v33 }
 0x12e   : > { %6961 = vst [vmem:[#allocation54_spill] sm:$0xff] %v4924_v45  ;;  %v4942_v46 = vshll.u32 %v6926_v39, %v4887_v52  ;;  %v4946_v56 = vshll.u32 %v6920_v30, %v4887_v52  ;;  %v525_v60 = vshll.u32 %v4926_v41, 30  ;;  %vm623_vm7 = vc.u32 %v4917_v58, %v4919_v13 }
 0x12f   : > { %v624_v22 = vadd.s32 1, %v4920_v11  ;;  %v688_v9 = vshrl.u32 %v6953_v55, %v4581_v44  ;;  %v691_v6 = vshrl.u32 %v6959_v7, %v4581_v44  ;;  %v694_v15 = vshrl.u32 %v6926_v39, %v4581_v44 }
 0x130   : > { %v1425_v2 = vshrl.u32 %v6920_v30, %v4924_v45  ;;  %v4960_v34 = vsub.s32 %v522_v59, %v525_v60  ;;  %v621_v38 = vmul.u32 %v614_v40, %v605_v43  ;;  %v677_v33 = vand.u32 8388607, %v6879_v3 }
 0x131   : > { %v625_v10 = vsel %vm623_vm7, %v624_v22, %v4920_v11  ;;  %v687_v52 = vshll.u32 %v6956_v51, %v4557_v21  ;;  %v690_v48 = vshll.u32 %v6953_v55, %v4557_v21  ;;  %v693_v31 = vshll.u32 %v6959_v7, %v4557_v21 }
 0x132   : > { %v4973_v18 = vshrl.u32 %v6924_v27, %v4924_v45  ;;  %v1616_v59 = vadd.s32 1, %v3998_v28  ;;  %v528_v40 = vsub.s32 0, %v4960_v34  ;;  %v626_v43 = vadd.s32 %v625_v10, %v621_v38 }
 0x133   : > { %v1928_v60 = vadd.s32 1, %v4010_v16  ;;  %v689_v3 = vor.u32 %v688_v9, %v687_v52  ;;  %v692_v11 = vor.u32 %v691_v6, %v690_v48  ;;  %v695_v22 = vor.u32 %v694_v15, %v693_v31 }
 0x134   : > { %v1737_v23 = vshrl.u32 %v6920_v30, %v4936_v32  ;;  %v4980_v47 = vshrl.u32 %v6924_v27, %v4936_v32  ;;  %v3955_v21 = vmin.u32 %v528_v40, %v4960_v34  ;;  %v678_v0 = vor.u32 8388608, %v677_v33 }
 0x135   : > { %v4983_v45 = vor.u32 %v1425_v2, %v1424_v25  ;;  %v4985_v28 = vadd.s32 4294967169, %v1818_v61  ;;  %v4987_v36 = vadd.s32 4294967169, %v2026_v20  ;;  %v627_v16 = vadd.s32 536870912, %v626_v43 }
 0x136   : > { %vm464_vm9 = vcmp.lt.s32.totalorder %v4482_v54, 0  ;;  %v530_v31 = vclz %v3955_v21  ;;  %vm702_vm10 = vcmp.lt.s32.totalorder %v4586_v57, 1  ;;  %vm703_vm12 = vcmp.lt.s32.totalorder %v4586_v57, 2 }
 0x137   : > { %vm704_vm4 = vcmp.lt.s32.totalorder %v4586_v57, 3  ;;  %v4993_v48 = vshrl.u32 %v627_v16, 30  ;;  %v710_v52 = vsel %vm702_vm10, %v689_v3, %v692_v11  ;;  %v714_v61 = vsel %vm702_vm10, %v692_v11, %v695_v22 }
 0x138   : > { %v716_v20 = vsel %vm704_vm4, %v4624_v42, %v4680_v24  ;;  %vm6889_vm13 = vcmp.lt.s32.totalorder %v4861_v63, 4  ;;  %v3956_v25 = vadd.s32 4294967294, %v530_v31  ;;  %v712_v9 = vsel %vm704_vm4, %v695_v22, %v4660_v26 }
 0x139   : > { %v717_v6 = vsel %vm703_vm12, %v714_v61, %v716_v20  ;;  %v718_v15 = vshll.u32 %v678_v0, 8  ;;  %v1429_v2 = vor.u32 %v4973_v18, %v4933_v12  ;;  %vm1617_vm5 = vcmp.gt.s32.totalorder %v1616_v59, 0 }
 0x13a   : > { %v6962_v38 = vand.u32 2147483647, %v4482_v54  ;;  %v629_v42 = vshll.u32 %v4993_v48, 30  ;;  %v686_v24 = vshrl.u32 %v6956_v51, %v4581_v44  ;;  %vm3957_vm7 = vcmp.lt.s32.totalorder %v3956_v25, 0 }
 0x13b   : > { %v707_v26 = vsel %vm705_vm8, %v695_v22, 2102212464  ;;  %v5022_v0 = vmul.u32.u64.low %v718_v15, %v717_v6  ;;  %v5023_v10 = vmul.u32.u64.high %v718_v15, %v717_v6, %v5022_v0  ;;  %v533_v18 = vsel %vm3957_vm7, 0, %v3956_v25 }
 0x13c   : > { %vm5013_vm6 = vcmp.le.f32.partialorder %v6962_v38, 0.7853982  ;;  %v548_v12 = vsub.s32 4, %v4926_v41  ;;  %v5026_v40 = vsub.s32 %v626_v43, %v629_v42  ;;  %v713_v21 = vsel %vm703_vm12, %v710_v52, %v712_v9 }
 0x13d   : > { %vm1929_vm3 = vcmp.gt.s32.totalorder %v1928_v60, 0  ;;  %v518_v16 = vadd.s32 %v4868_v1, %v4865_v50  ;;  %v534_v44 = vsub.s32 32, %v533_v18  ;;  %v538_v31 = vsub.s32 4294967266, %v533_v18 }
 0x13e   : > { %v535_v61 = vshll.u32 %v4960_v34, %v533_v18  ;;  %v632_v22 = vsub.s32 0, %v5026_v40  ;;  %v706_v20 = vsel %vm702_vm10, %v686_v24, %v689_v3  ;;  %v708_v43 = vsel %vm704_vm4, %v692_v11, %v707_v26 }
 0x13f   : > { %v536_v25 = vshrl.u32 %v518_v16, %v534_v44  ;;  %v539_v6 = vadd.s32 127, %v538_v31  ;;  %v5038_v38 = vmul.u32.u64.low %v718_v15, %v713_v21  ;;  %v5039_v52 = vmul.u32.u64.high %v718_v15, %v713_v21, %v5038_v38 }
 0x140   : > { %v5043_v50 = vor.u32 %v1737_v23, %v4942_v46  ;;  %v549_v34 = vsel %vm464_vm9, %v548_v12, %v4926_v41  ;;  %v3959_v3 = vmin.u32 %v632_v22, %v5026_v40  ;;  %v5052_v11 = vsel %vm1617_vm5, %v1616_v59, 0 }
 0x141   : > { %v537_v9 = vor.u32 %v536_v25, %v535_v61  ;;  %v540_v42 = vshll.u32 %v539_v6, 23  ;;  %v709_v24 = vsel %vm703_vm12, %v706_v20, %v708_v43  ;;  %v5059_v23 = vsel %vm6889_vm13, %v4983_v45, 920167782 }
 0x142   : > { %6965 = vst [vmem:[#allocation55_spill] sm:$0xff] %v5043_v50  ;;  %v5063_v46 = vsel %vm6889_vm13, %v1429_v2, 1326507024  ;;  %v5066_v41 = vsel %vm1929_vm3, %v1928_v60, 0  ;;  %v634_v26 = vclz %v3959_v3  ;;  %v551_v0 = vsel %vm5013_vm6, 0, %v549_v34 }
 0x143   : > { %v541_v59 = vor.u32 4788187, %v540_v42  ;;  %vm727_vm8 = vc.u32 %v5023_v10, %v5038_v38  ;;  %v728_v57 = vadd.s32 1, %v5039_v52  ;;  %v5074_v18 = vshrl.u32 %v5052_v11, 5 }
 0x144   : > { %v3960_v12 = vadd.s32 4294967294, %v634_v26  ;;  %v725_v21 = vmul.u32 %v718_v15, %v709_v24  ;;  %v6888_v2 = vand.u32 2147483647, %v4502_v17  ;;  %v544_v60 = vcvt.s32.f32 %v537_v9 }
 0x145   : > { %v542_v16 = vand.u32 2147483647, %v541_v59  ;;  %v622_v44 = vadd.s32 %v4919_v13, %v4917_v58  ;;  %v729_v31 = vsel %vm727_vm8, %v728_v57, %v5039_v52  ;;  %v555_v61 = vadd.s32 3, %v551_v0 }
 0x146   : > { %vm3961_vm3 = vcmp.lt.s32.totalorder %v3960_v12, 0  ;;  %v730_v22 = vadd.s32 %v729_v31, %v725_v21  ;;  %v792_v20 = vshrl.u32 %v6953_v55, %v4635_v5  ;;  %v795_v15 = vshrl.u32 %v6959_v7, %v4635_v5 }
 0x147   : > { %v545_v43 = vmul.f32 %v544_v60, %v542_v16  ;;  %v637_v25 = vsel %vm3961_vm3, 0, %v3960_v12  ;;  %v798_v6 = vshrl.u32 %v6926_v39, %v4635_v5  ;;  %vm568_vm10 = vcmp.lt.s32.totalorder %v4484_v53, 0 }
 0x148   : > { %v638_v34 = vsub.s32 32, %v637_v25  ;;  %v642_v58 = vsub.s32 4294967266, %v637_v25  ;;  %v731_v13 = vadd.s32 536870912, %v730_v22  ;;  %v781_v52 = vand.u32 8388607, %v6888_v2 }
 0x149   : > { %v546_v3 = vxor.u32 2147483648, %v545_v43  ;;  %v791_v9 = vshll.u32 %v6956_v51, %v4617_v37  ;;  %v794_v42 = vshll.u32 %v6953_v55, %v4617_v37  ;;  %v797_v24 = vshll.u32 %v6959_v7, %v4617_v37 }
 0x14a   : > { %v639_v26 = vshll.u32 %v5026_v40, %v637_v25  ;;  %v640_v59 = vshrl.u32 %v622_v44, %v638_v34  ;;  %v643_v57 = vadd.s32 127, %v642_v58  ;;  %v5096_v12 = vshrl.u32 %v731_v13, 30 }
 0x14b   : > { %v547_v21 = vsel %vm464_vm9, %v546_v3, %v545_v43  ;;  %v793_v16 = vor.u32 %v792_v20, %v791_v9  ;;  %v796_v60 = vor.u32 %v795_v15, %v794_v42  ;;  %v799_v31 = vor.u32 %v798_v6, %v797_v24  ;;  %v6969_v3 = vld [vmem:[#allocation25_spill] sm:$0xff] }
 0x14c   : > { %v550_v1 = vsel %vm5013_vm6, %v4482_v54, %v547_v21  ;;  %v6966_v2 = vand.u32 2147483647, %v4484_v53  ;;  %v641_v40 = vor.u32 %v640_v59, %v639_v26  ;;  %v644_v44 = vshll.u32 %v643_v57, 23 }
 0x14d   : > { %v733_v25 = vshll.u32 %v5096_v12, 30  ;;  %4209 = vcosq.f32 %v550_v1  ;;  %v5110_v34 = vand.u32 3, %v551_v0  ;;  %v652_v20 = vsub.s32 4, %v4993_v48 }
 0x14e   : > { %vm5105_vm12 = vcmp.le.f32.partialorder %v6966_v2, 0.7853982  ;;  %v782_v43 = vor.u32 8388608, %v781_v52  ;;  %4211 = vsinq.f32 %v550_v1  ;;  %v645_v15 = vor.u32 4788187, %v644_v44 }
 0x14f   : > { %v5113_v33 = vsub.s32 %v730_v22, %v733_v25  ;;  %vm806_vm9 = vcmp.lt.s32.totalorder %v4682_v35, 1  ;;  %v5116_v2 = vand.u32 3, %v555_v61  ;;  %vm808_vm4 = vcmp.lt.s32.totalorder %v4682_v35, 3 }
 0x150   : > { %v814_v6 = vsel %vm806_vm9, %v793_v16, %v796_v60  ;;  %v818_v0 = vsel %vm806_vm9, %v796_v60, %v799_v31  ;;  %v646_v58 = vand.u32 2147483647, %v645_v15  ;;  %v648_v13 = vcvt.s32.f32 %v641_v40 }
 0x151   : > { %v736_v52 = vsub.s32 0, %v5113_v33  ;;  %v816_v1 = vsel %vm808_vm4, %v799_v31, %v4721_v14  ;;  %v653_v61 = vsel %vm568_vm10, %v652_v20, %v4993_v48  ;;  %vm807_vm5 = vcmp.lt.s32.totalorder %v4682_v35, 2 }
 0x152   : > { %v811_v22 = vsel %vm809_vm14, %v799_v31, 2102212464  ;;  %v820_v9 = vsel %vm808_vm4, %v6969_v3, %v4725_v29  ;;  %v649_v42 = vmul.f32 %v648_v13, %v646_v58  ;;  %v822_v26 = vshll.u32 %v782_v43, 8 }
 0x153   : > { %v3963_v24 = vmin.u32 %v736_v52, %v5113_v33  ;;  %v821_v14 = vsel %vm807_vm5, %v818_v0, %v820_v9  ;;  %v5141_v59 = vand.u32 31, %v5052_v11  ;;  %vm672_vm6 = vcmp.lt.s32.totalorder %v4494_v4, 0 }
 0x154   : > { %v790_v48 = vshrl.u32 %v6956_v51, %v4635_v5  ;;  %v817_v57 = vsel %vm807_vm5, %v814_v6, %v816_v1  ;;  %v650_v21 = vxor.u32 2147483648, %v649_v42  ;;  %vm2221_vm14 = vcmp.eq.s32.totalorder %v5110_v34, 0 }
 0x155   : > { %v738_v29 = vclz %v3963_v24  ;;  %v5148_v31 = vmul.u32.u64.low %v822_v26, %v821_v14  ;;  %v5149_v40 = vmul.u32.u64.high %v822_v26, %v821_v14, %v5148_v31  ;;  %vm2224_vm7 = vcmp.eq.s32.totalorder %v5110_v34, 2 }
 0x156   : > { %v655_v11 = vsel %vm5105_vm12, 0, %v653_v61  ;;  %v810_v44 = vsel %vm806_vm9, %v790_v48, %v793_v16  ;;  %v812_v5 = vsel %vm808_vm4, %v796_v60, %v811_v22  ;;  %vm557_vm8 = vcmp.lt.s32.totalorder %v5116_v2, 2 }
 0x157   : > { %vm2220_vm3 = vcmp.lt.s32.totalorder %v5110_v34, 2  ;;  %v651_v25 = vsel %vm568_vm10, %v650_v21, %v649_v42  ;;  %v3964_v20 = vadd.s32 4294967294, %v738_v29  ;;  %vm554_vm13 = vweird.f32 %v4482_v54 }
 0x158   : > { %v5163_v43 = vmul.u32.u64.low %v822_v26, %v817_v57  ;;  %v5164_v15 = vmul.u32.u64.high %v822_v26, %v817_v57, %v5163_v43  ;;  %vm558_vm1 = vcmp.eq.s32.totalorder %v5116_v2, 0  ;;  %vm561_vm9 = vcmp.eq.s32.totalorder %v5116_v2, 2 }
 0x159   : > { %v654_v16 = vsel %vm5105_vm12, %v4484_v53, %v651_v25  ;;  %v6970_v60 = vand.u32 2147483647, %v4494_v4  ;;  %v756_v0 = vsub.s32 4, %v5096_v12  ;;  %v659_v58 = vadd.s32 3, %v655_v11 }
 0x15a   : > { %4213 = vcosq.f32 %v654_v16  ;;  %vm3965_vm10 = vcmp.lt.s32.totalorder %v3964_v20, 0  ;;  %v813_v13 = vsel %vm807_vm5, %v810_v44, %v812_v5  ;;  %v5182_v52 = vand.u32 3, %v655_v11  ;;  %v4210_v37 = vpop.eup %4209  ;;  %v6973_v44 = vld [vmem:[#allocation5_spill] sm:$0xff] }
 0x15b   : > { %vm5175_vm4 = vcmp.le.f32.partialorder %v6970_v60, 0.7853982  ;;  %4215 = vsinq.f32 %v654_v16  ;;  %v741_v1 = vsel %vm3965_vm10, 0, %v3964_v20  ;;  %vm831_vm12 = vc.u32 %v5149_v40, %v5163_v43  ;;  %v4212_v42 = vpop.eup %4211 }
 0x15c   : > { %v726_v61 = vadd.s32 %v5038_v38, %v5023_v10  ;;  %v742_v22 = vsub.s32 32, %v741_v1  ;;  %v746_v3 = vsub.s32 4294967266, %v741_v1  ;;  %v832_v9 = vadd.s32 1, %v5164_v15 }
 0x15d   : > { %v562_v24 = vxor.u32 2147483648, %v4210_v37  ;;  %v743_v35 = vshll.u32 %v5113_v33, %v741_v1  ;;  %v757_v14 = vsel %vm672_vm6, %v756_v0, %v5096_v12  ;;  %v829_v48 = vmul.u32 %v822_v26, %v813_v13 }
 0x15e   : > { %v559_v57 = vxor.u32 2147483648, %v4212_v42  ;;  %v744_v21 = vshrl.u32 %v726_v61, %v742_v22  ;;  %v747_v29 = vadd.s32 127, %v746_v3  ;;  %v833_v31 = vsel %vm831_vm12, %v832_v9, %v5164_v15 }
 0x15f   : > { %v2226_v10 = vsel %vm2224_vm7, %v562_v24, %v4212_v42  ;;  %v563_v38 = vsel %vm561_vm9, %v562_v24, %v4212_v42  ;;  %v834_v11 = vadd.s32 %v833_v31, %v829_v48  ;;  %v878_v5 = vand.u32 2147483647, %v6973_v44  ;;  %v6976_v42 = vld [vmem:[#allocation13_spill] sm:$0xff] }
 0x160   : > { %v2223_v33 = vsel %vm2221_vm14, %v4210_v37, %v559_v57  ;;  %v560_v12 = vsel %vm558_vm1, %v4210_v37, %v559_v57  ;;  %v745_v26 = vor.u32 %v744_v21, %v743_v35  ;;  %v748_v25 = vshll.u32 %v747_v29, 23 }
 0x161   : > { %v2227_v20 = vsel %vm2220_vm3, %v2223_v33, %v2226_v10  ;;  %v564_v15 = vsel %vm557_vm8, %v560_v12, %v563_v38  ;;  %v660_v16 = vand.u32 3, %v659_v58  ;;  %v835_v60 = vadd.s32 536870912, %v834_v11  ;;  %v6975_v58 = vld [vmem:[#allocation15_spill] sm:$0xff] }
 0x162   : > { %v2228_v0 = vsel %vm554_vm13, nan, %v2227_v20  ;;  %v5211_v13 = vsel %vm554_vm13, nan, %v564_v15  ;;  %vm2324_vm5 = vcmp.eq.s32.totalorder %v5182_v52, 0  ;;  %v749_v1 = vor.u32 4788187, %v748_v25 }
 0x163   : > { %6974 = vst [vmem:[#allocation25_spill] sm:$0xff] %v5211_v13  ;;  %v759_v37 = vsel %vm5175_vm4, 0, %v757_v14  ;;  %3790 = vrot.lane.b32.xlu0 %v2228_v0, %s4344_s28  ;;  %vm2323_vm1 = vcmp.lt.s32.totalorder %v5182_v52, 2  ;;  %v5218_v34 = vshrl.u32 %v835_v60, 30  ;;  %v885_v2 = vand.u32 8388607, %v878_v5 }
 0x164   : > { %v896_v54 = vshrl.u32 %v6953_v55, %v6975_v58  ;;  %v902_v61 = vshrl.u32 %v6926_v39, %v6975_v58  ;;  %vm658_vm13 = vweird.f32 %v4484_v53  ;;  %v750_v22 = vand.u32 2147483647, %v749_v1  ;;  %v6977_v0 = vld [vmem:[#allocation14_spill] sm:$0xff] }
 0x165   : > { %v752_v3 = vcvt.s32.f32 %v745_v26  ;;  %v899_v9 = vshrl.u32 %v6959_v7, %v6975_v58  ;;  %v901_v24 = vshll.u32 %v6959_v7, %v6976_v42  ;;  %vm661_vm14 = vcmp.lt.s32.totalorder %v660_v16, 2 }
 0x166   : > { %vm662_vm7 = vcmp.eq.s32.totalorder %v660_v16, 0  ;;  %vm2327_vm8 = vcmp.eq.s32.totalorder %v5182_v52, 2  ;;  %v837_v35 = vshll.u32 %v5218_v34, 30  ;;  %v895_v48 = vshll.u32 %v6956_v51, %v6976_v42 }
 0x167   : > { %v753_v14 = vmul.f32 %v752_v3, %v750_v22  ;;  %v898_v57 = vshll.u32 %v6953_v55, %v6976_v42  ;;  %v903_v21 = vor.u32 %v902_v61, %v901_v24  ;;  %v4214_v29 = vpop.eup %4213  ;;  %vm665_vm3 = vcmp.eq.s32.totalorder %v660_v16, 2  ;;  %v6979_v16 = vld [vmem:[#allocation31_spill] sm:$0xff] }
 0x168   : > { %v763_v31 = vadd.s32 3, %v759_v37  ;;  %v5237_v10 = vsub.s32 %v834_v11, %v837_v35  ;;  %v886_v38 = vor.u32 8388608, %v885_v2  ;;  %v4216_v33 = vpop.eup %4215  ;;  %v666_v12 = vxor.u32 2147483648, %v4214_v29 }
 0x169   : > { %v754_v26 = vxor.u32 2147483648, %v753_v14  ;;  %v897_v25 = vor.u32 %v896_v54, %v895_v48  ;;  %v900_v20 = vor.u32 %v899_v9, %v898_v57  ;;  %v663_v15 = vxor.u32 2147483648, %v4216_v33 }
 0x16a   : > { %v840_v60 = vsub.s32 0, %v5237_v10  ;;  %vm910_vm9 = vcmp.lt.s32.totalorder %v6977_v0, 1  ;;  %vm912_vm10 = vcmp.lt.s32.totalorder %v6977_v0, 3  ;;  %v2329_v1 = vsel %vm2327_vm8, %v666_v12, %v4216_v33 }
 0x16b   : > { %v667_v61 = vsel %vm665_vm3, %v666_v12, %v4216_v33  ;;  %v755_v11 = vsel %vm672_vm6, %v754_v26, %v753_v14  ;;  %v915_v2 = vsel %vm913_vm11, %v903_v21, 2102212464  ;;  %v2326_v54 = vsel %vm2324_vm5, %v4214_v29, %v663_v15 }
 0x16c   : > { %v664_v22 = vsel %vm662_vm7, %v4214_v29, %v663_v15  ;;  %v758_v3 = vsel %vm5175_vm4, %v4494_v4, %v755_v11  ;;  %vm776_vm12 = vcmp.lt.s32.totalorder %v4502_v17, 0  ;;  %v3967_v9 = vmin.u32 %v840_v60, %v5237_v10  ;;  %v6980_v29 = vld [vmem:[#allocation22_spill] sm:$0xff] }
 0x16d   : > { %v2330_v42 = vsel %vm2323_vm1, %v2326_v54, %v2329_v1  ;;  %v668_v24 = vsel %vm661_vm14, %v664_v22, %v667_v61  ;;  %4217 = vcosq.f32 %v758_v3  ;;  %v918_v35 = vsel %vm910_vm9, %v897_v25, %v900_v20  ;;  %v6984_v15 = vld [vmem:[#allocation30_spill] sm:$0xff] }
 0x16e   : > { %v2331_v14 = vsel %vm658_vm13, nan, %v2330_v42  ;;  %v5265_v6 = vsel %vm658_vm13, nan, %v668_v24  ;;  %4219 = vsinq.f32 %v758_v3  ;;  %v842_v48 = vclz %v3967_v9 }
 0x16f   : > { %6978 = vst [vmem:[#allocation5_spill] sm:$0xff] %v5265_v6  ;;  %3792 = vrot.lane.b32.xlu1 %v2331_v14, %s4344_s28  ;;  %v5268_v57 = vand.u32 3, %v759_v37  ;;  %v894_v52 = vshrl.u32 %v6956_v51, %v6975_v58  ;;  %vm911_vm11 = vcmp.lt.s32.totalorder %v6977_v0, 2  ;;  %v924_v33 = vsel %vm912_vm10, %v6980_v29, %v6979_v16 }
 0x170   : > { %v6981_v53 = vand.u32 2147483647, %v4502_v17  ;;  %v3968_v26 = vadd.s32 4294967294, %v842_v48  ;;  %v860_v37 = vsub.s32 4, %v5218_v34  ;;  %v920_v58 = vsel %vm912_vm10, %v903_v21, %v6984_v15 }
 0x171   : > { %v926_v60 = vshll.u32 %v886_v38, 8  ;;  %v914_v1 = vsel %vm910_vm9, %v894_v52, %v897_v25  ;;  %v916_v61 = vsel %vm912_vm10, %v900_v20, %v915_v2  ;;  %v921_v11 = vsel %vm911_vm11, %v918_v35, %v920_v58 }
 0x172   : > { %vm5279_vm6 = vcmp.le.f32.partialorder %v6981_v53, 0.7853982  ;;  %v922_v54 = vsel %vm910_vm9, %v900_v20, %v903_v21  ;;  %vm3969_vm4 = vcmp.lt.s32.totalorder %v3968_v26, 0  ;;  %v764_v38 = vand.u32 3, %v763_v31  ;;  %v6985_v20 = vld [vmem:[#allocation7_spill] sm:$0xff]  ;;  %v6986_v53 = vld [vmem:[#allocation28_spill] sm:$0xff] }
 0x173   : > { %v925_v22 = vsel %vm911_vm11, %v922_v54, %v924_v33  ;;  %v5297_v3 = vmul.u32.u64.low %v926_v60, %v921_v11  ;;  %v5298_v9 = vmul.u32.u64.high %v926_v60, %v921_v11, %v5297_v3  ;;  %v845_v42 = vsel %vm3969_vm4, 0, %v3968_v26 }
 0x174   : > { %v5301_v25 = vmul.u32.u64.low %v926_v60, %v925_v22  ;;  %v5302_v24 = vmul.u32.u64.high %v926_v60, %v925_v22, %v5301_v25  ;;  %v830_v2 = vadd.s32 %v5163_v43, %v5149_v40  ;;  %v846_v35 = vsub.s32 32, %v845_v42 }
 0x175   : > { %v850_v14 = vsub.s32 4294967266, %v845_v42  ;;  %v917_v21 = vsel %vm911_vm11, %v914_v1, %v916_v61  ;;  %vm2427_vm5 = vcmp.eq.s32.totalorder %v5268_v57, 0  ;;  %vm2430_vm1 = vcmp.eq.s32.totalorder %v5268_v57, 2  ;;  %v6987_v61 = vld [vmem:[#allocation23_spill] sm:$0xff] }
 0x176   : > { %v861_v31 = vsel %vm776_vm12, %v860_v37, %v5218_v34  ;;  %v6891_v48 = vand.u32 2147483647, %v6985_v20  ;;  %vm2426_vm13 = vcmp.lt.s32.totalorder %v5268_v57, 2  ;;  %v847_v52 = vshll.u32 %v5237_v10, %v845_v42 }
 0x177   : > { %v848_v40 = vshrl.u32 %v830_v2, %v846_v35  ;;  %v851_v43 = vadd.s32 127, %v850_v14  ;;  %v936_v16 = vadd.s32 1, %v5298_v9  ;;  %vm762_vm14 = vweird.f32 %v4494_v4 }
 0x178   : > { %vm765_vm7 = vcmp.lt.s32.totalorder %v764_v38, 2  ;;  %vm766_vm8 = vcmp.eq.s32.totalorder %v764_v38, 0  ;;  %v933_v0 = vmul.u32 %v926_v60, %v917_v21  ;;  %vm935_vm3 = vc.u32 %v5302_v24, %v5297_v3 }
 0x179   : > { %v849_v29 = vor.u32 %v848_v40, %v847_v52  ;;  %v852_v34 = vshll.u32 %v851_v43, 23  ;;  %v937_v33 = vsel %vm935_vm3, %v936_v16, %v5298_v9  ;;  %v1000_v26 = vshrl.u32 %v6953_v55, %v6986_v53 }
 0x17a   : > { %vm769_vm9 = vcmp.eq.s32.totalorder %v764_v38, 2  ;;  %v5325_v10 = vsel %vm5279_vm6, 0, %v861_v31  ;;  %v938_v37 = vadd.s32 %v937_v33, %v933_v0  ;;  %v1006_v15 = vshrl.u32 %v6926_v39, %v6986_v53  ;;  %v4218_v58 = vpop.eup %4217 }
 0x17b   : > { %v853_v60 = vor.u32 4788187, %v852_v34  ;;  %v989_v1 = vand.u32 8388607, %v6891_v48  ;;  %v999_v11 = vshll.u32 %v6956_v51, %v6987_v61  ;;  %v1003_v54 = vshrl.u32 %v6959_v7, %v6986_v53  ;;  %v4220_v22 = vpop.eup %4219 }
 0x17c   : > { %v770_v9 = vxor.u32 2147483648, %v4218_v58  ;;  %v939_v42 = vadd.s32 536870912, %v938_v37  ;;  %v1002_v25 = vshll.u32 %v6953_v55, %v6987_v61  ;;  %v1005_v2 = vshll.u32 %v6959_v7, %v6987_v61 }
 0x17d   : > { %vm1745_vm10 = vcmp.lt.s32.totalorder %v4874_v62, 4  ;;  %v767_v35 = vxor.u32 2147483648, %v4220_v22  ;;  %v854_v14 = vand.u32 2147483647, %v853_v60  ;;  %v856_v21 = vcvt.s32.f32 %v849_v29  ;;  %v7011_v62 = vld [vmem:[#allocation41_spill] sm:$0xff] }
 0x17e   : > { %v1001_v31 = vor.u32 %v1000_v26, %v999_v11  ;;  %v771_v52 = vsel %vm769_vm9, %v770_v9, %v4220_v22  ;;  %v2432_v40 = vsel %vm2430_vm1, %v770_v9, %v4220_v22  ;;  %v5343_v43 = vshrl.u32 %v939_v42, 30 }
 0x17f   : > { %v1007_v16 = vor.u32 %v1006_v15, %v1005_v2  ;;  %v768_v0 = vsel %vm766_vm8, %v4218_v58, %v767_v35  ;;  %v2429_v34 = vsel %vm2427_vm5, %v4218_v58, %v767_v35  ;;  %v857_v33 = vmul.f32 %v856_v21, %v854_v14  ;;  %v6989_v35 = vld [vmem:[#allocation39_spill] sm:$0xff] }
 0x180   : > { %v1004_v61 = vor.u32 %v1003_v54, %v1002_v25  ;;  %v772_v48 = vsel %vm765_vm7, %v768_v0, %v771_v52  ;;  %v2433_v29 = vsel %vm2426_vm13, %v2429_v34, %v2432_v40  ;;  %v867_v26 = vadd.s32 3, %v5325_v10 }
 0x181   : > { %v941_v60 = vshll.u32 %v5343_v43, 30  ;;  %v5355_v11 = vsel %vm762_vm14, nan, %v772_v48  ;;  %v2434_v15 = vsel %vm762_vm14, nan, %v2433_v29  ;;  %v858_v22 = vxor.u32 2147483648, %v857_v33 }
 0x182   : > { %6988 = vst [vmem:[#allocation15_spill] sm:$0xff] %v5355_v11  ;;  %v998_v58 = vshrl.u32 %v6956_v51, %v6986_v53  ;;  %3794 = vrot.lane.b32.xlu0 %v2434_v15, %s4344_s28  ;;  %vm1014_vm11 = vcmp.lt.s32.totalorder %v4737_v19, 1  ;;  %vm1016_vm4 = vcmp.lt.s32.totalorder %v4737_v19, 3  ;;  %v1019_v57 = vsel %vm1017_vm0, %v1007_v16, 2102212464 }
 0x183   : > { %v5362_v38 = vsub.s32 %v938_v37, %v941_v60  ;;  %v859_v48 = vsel %vm776_vm12, %v858_v22, %v857_v33  ;;  %v990_v4 = vor.u32 8388608, %v989_v1  ;;  %v1022_v54 = vsel %vm1014_vm11, %v1001_v31, %v1004_v61 }
 0x184   : > { %v1024_v9 = vsel %vm1016_vm4, %v1007_v16, %v4792_v8  ;;  %v862_v53 = vsel %vm5279_vm6, %v4502_v17, %v859_v48  ;;  %vm1015_vm5 = vcmp.lt.s32.totalorder %v4737_v19, 2  ;;  %v1026_v42 = vsel %vm1014_vm11, %v1004_v61, %v1007_v16 }
 0x185   : > { %v944_v37 = vsub.s32 0, %v5362_v38  ;;  %4221 = vcosq.f32 %v862_v53  ;;  %v1018_v25 = vsel %vm1014_vm11, %v998_v58, %v1001_v31  ;;  %v1020_v2 = vsel %vm1016_vm4, %v1004_v61, %v1019_v57  ;;  %v6995_v57 = vld [vmem:[#allocation19_spill] sm:$0xff] }
 0x186   : > { %v1028_v14 = vsel %vm1016_vm4, %v6989_v35, %v4800_v49  ;;  %v5381_v1 = vsel %vm1745_vm10, %v5043_v50, 920167782  ;;  %4223 = vsinq.f32 %v862_v53  ;;  %v1025_v12 = vsel %vm1015_vm5, %v1022_v54, %v1024_v9  ;;  %v6996_v54 = vld [vmem:[#allocation16_spill] sm:$0xff] }
 0x187   : > { %6990 = vst [vmem:[#allocation13_spill] sm:$0xff] %v5381_v1  ;;  %v3971_v8 = vmin.u32 %v944_v37, %v5362_v38  ;;  %v6991_v21 = vor.u32 %v4980_v47, %v4946_v56  ;;  %v5394_v49 = vshrl.u32 %v5066_v41, 5  ;;  %v1029_v52 = vsel %vm1015_vm5, %v1026_v42, %v1028_v14 }
 0x188   : > { %v1030_v40 = vshll.u32 %v990_v4, 8  ;;  %v5399_v16 = vand.u32 31, %v5066_v41  ;;  %v5401_v0 = vand.u32 3, %v867_v26  ;;  %v1021_v47 = vsel %vm1015_vm5, %v1018_v25, %v1020_v2  ;;  %v6994_v26 = vld [vmem:[#allocation6_spill] sm:$0xff] }
 0x189   : > { %v5391_v31 = vsel %vm1745_vm10, %v6991_v21, 1326507024  ;;  %v946_v34 = vclz %v3971_v8  ;;  %v5413_v60 = vsub.s32 32, %v5141_v59  ;;  %v5416_v15 = vand.u32 3, %v5325_v10 }
 0x18a   : > { %6992 = vst [vmem:[#allocation14_spill] sm:$0xff] %v5391_v31  ;;  %6993 = vst [vmem:[#allocation31_spill] sm:$0xff] %v5399_v16  ;;  %v5405_v56 = vmul.u32.u64.low %v1030_v40, %v1029_v52  ;;  %v5406_v33 = vmul.u32.u64.high %v1030_v40, %v1029_v52, %v5405_v56  ;;  %v5408_v61 = vmul.u32.u64.low %v1030_v40, %v1025_v12  ;;  %v5409_v29 = vmul.u32.u64.high %v1030_v40, %v1025_v12, %v5408_v61 }
 0x18b   : > { %v3972_v41 = vadd.s32 4294967294, %v946_v34  ;;  %v6892_v22 = vand.u32 2147483647, %v6994_v26  ;;  %vm880_vm0 = vcmp.lt.s32.totalorder %v6973_v44, 0  ;;  %v934_v19 = vadd.s32 %v5297_v3, %v5302_v24 }
 0x18c   : > { %v964_v58 = vsub.s32 4, %v5343_v43  ;;  %v1104_v48 = vshrl.u32 %v6953_v55, %v6995_v57  ;;  %vm873_vm12 = vcmp.eq.s32.totalorder %v5401_v0, 2  ;;  %v1037_v4 = vmul.u32 %v1030_v40, %v1021_v47 }
 0x18d   : > { %vm3973_vm6 = vcmp.lt.s32.totalorder %v3972_v41, 0  ;;  %v1103_v10 = vshll.u32 %v6956_v51, %v6996_v54  ;;  %v1107_v9 = vshrl.u32 %v6959_v7, %v6995_v57  ;;  %vm870_vm1 = vcmp.eq.s32.totalorder %v5401_v0, 0 }
 0x18e   : > { %v949_v53 = vsel %vm3973_vm6, 0, %v3972_v41  ;;  %vm1039_vm13 = vc.u32 %v5406_v33, %v5408_v61  ;;  %v1040_v3 = vadd.s32 1, %v5409_v29  ;;  %v1106_v24 = vshll.u32 %v6953_v55, %v6996_v54 }
 0x18f   : > { %vm869_vm14 = vcmp.lt.s32.totalorder %v5401_v0, 2  ;;  %vm2529_vm7 = vcmp.lt.s32.totalorder %v5416_v15, 2  ;;  %v950_v37 = vsub.s32 32, %v949_v53  ;;  %v954_v42 = vsub.s32 4294967266, %v949_v53 }
 0x190   : > { %v1093_v25 = vand.u32 8388607, %v6892_v22  ;;  %v1109_v2 = vshll.u32 %v6959_v7, %v6996_v54  ;;  %vm866_vm8 = vweird.f32 %v4502_v17  ;;  %v951_v35 = vshll.u32 %v5362_v38, %v949_v53 }
 0x191   : > { %v1041_v14 = vsel %vm1039_vm13, %v1040_v3, %v5409_v29  ;;  %v1105_v8 = vor.u32 %v1104_v48, %v1103_v10  ;;  %v1110_v12 = vshrl.u32 %v6926_v39, %v6995_v57  ;;  %v952_v21 = vshrl.u32 %v934_v19, %v950_v37 }
 0x192   : > { %v955_v52 = vadd.s32 127, %v954_v42  ;;  %v1042_v40 = vadd.s32 %v1041_v14, %v1037_v4  ;;  %v1108_v34 = vor.u32 %v1107_v9, %v1106_v24  ;;  %vm2530_vm3 = vcmp.eq.s32.totalorder %v5416_v15, 0  ;;  %v4222_v29 = vpop.eup %4221  ;;  %v6999_v9 = vld [vmem:[#allocation26_spill] sm:$0xff] }
 0x193   : > { %vm2533_vm9 = vcmp.eq.s32.totalorder %v5416_v15, 2  ;;  %vm5451_vm11 = vcmp.le.f32.partialorder %v878_v5, 0.7853982  ;;  %v965_v38 = vsel %vm880_vm0, %v964_v58, %v5343_v43  ;;  %v1111_v56 = vor.u32 %v1110_v12, %v1109_v2  ;;  %v4224_v54 = vpop.eup %4223  ;;  %v7000_v42 = vld [vmem:[#allocation34_spill] sm:$0xff] }
 0x194   : > { %v953_v41 = vor.u32 %v952_v21, %v951_v35  ;;  %v956_v19 = vshll.u32 %v955_v52, 23  ;;  %v1043_v48 = vadd.s32 536870912, %v1042_v40  ;;  %v1094_v4 = vor.u32 8388608, %v1093_v25 }
 0x195   : > { %v874_v10 = vxor.u32 2147483648, %v4222_v29  ;;  %vm1118_vm4 = vcmp.lt.s32.totalorder %v6999_v9, 1  ;;  %vm1119_vm5 = vcmp.lt.s32.totalorder %v6999_v9, 2  ;;  %vm1120_vm6 = vcmp.lt.s32.totalorder %v6999_v9, 3 }
 0x196   : > { %v871_v5 = vxor.u32 2147483648, %v4224_v54  ;;  %v957_v53 = vor.u32 4788187, %v956_v19  ;;  %v5461_v3 = vshrl.u32 %v1043_v48, 30  ;;  %v1126_v43 = vsel %vm1118_vm4, %v1105_v8, %v1108_v34 }
 0x197   : > { %v875_v58 = vsel %vm873_vm12, %v874_v10, %v4224_v54  ;;  %v2535_v24 = vsel %vm2533_vm9, %v874_v10, %v4224_v54  ;;  %v960_v37 = vcvt.s32.f32 %v953_v41  ;;  %v1128_v25 = vsel %vm1120_vm6, %v1111_v56, %v7000_v42 }
 0x198   : > { %v872_v2 = vsel %vm870_vm1, %v4222_v29, %v871_v5  ;;  %v2532_v35 = vsel %vm2530_vm3, %v4222_v29, %v871_v5  ;;  %v958_v14 = vand.u32 2147483647, %v957_v53  ;;  %v1045_v12 = vshll.u32 %v5461_v3, 30  ;;  %v7002_v5 = vld [vmem:[#allocation36_spill] sm:$0xff] }
 0x199   : > { %v876_v21 = vsel %vm869_vm14, %v872_v2, %v875_v58  ;;  %v2536_v52 = vsel %vm2529_vm7, %v2532_v35, %v2535_v24  ;;  %v1123_v41 = vsel %vm1121_vm15, %v1111_v56, 2102212464  ;;  %v1130_v19 = vsel %vm1118_vm4, %v1108_v34, %v1111_v56  ;;  %v7003_v56 = vld [vmem:[#allocation27_spill] sm:$0xff] }
 0x19a   : > { %v5487_v48 = vsel %vm866_vm8, nan, %v876_v21  ;;  %v2537_v29 = vsel %vm866_vm8, nan, %v2536_v52  ;;  %v961_v54 = vmul.f32 %v960_v37, %v958_v14  ;;  %v5491_v10 = vsub.s32 %v1042_v40, %v1045_v12 }
 0x19b   : > { %7001 = vst [vmem:[#allocation22_spill] sm:$0xff] %v5487_v48  ;;  %3796 = vrot.lane.b32.xlu1 %v2537_v29, %s4344_s28  ;;  %v1102_v0 = vshrl.u32 %v6956_v51, %v6995_v57  ;;  %v1129_v15 = vsel %vm1119_vm5, %v1126_v43, %v1128_v25  ;;  %v1132_v53 = vsel %vm1120_vm6, %v7003_v56, %v7002_v5  ;;  %v1134_v58 = vshll.u32 %v1094_v4, 8 }
 0x19c   : > { %v962_v24 = vxor.u32 2147483648, %v961_v54  ;;  %v967_v17 = vsel %vm5451_vm11, 0, %v965_v38  ;;  %v1048_v40 = vsub.s32 0, %v5491_v10  ;;  %v1133_v37 = vsel %vm1119_vm5, %v1130_v19, %v1132_v53 }
 0x19d   : > { %v1122_v57 = vsel %vm1118_vm4, %v1102_v0, %v1105_v8  ;;  %v1124_v43 = vsel %vm1120_vm6, %v1108_v34, %v1123_v41  ;;  %v5511_v42 = vmul.u32.u64.low %v1134_v58, %v1133_v37  ;;  %v5512_v25 = vmul.u32.u64.high %v1134_v58, %v1133_v37, %v5511_v42 }
 0x19e   : > { %v963_v4 = vsel %vm880_vm0, %v962_v24, %v961_v54  ;;  %v3975_v2 = vmin.u32 %v1048_v40, %v5491_v10  ;;  %v5517_v38 = vmul.u32.u64.low %v1134_v58, %v1129_v15  ;;  %v5518_v35 = vmul.u32.u64.high %v1134_v58, %v1129_v15, %v5517_v38 }
 0x19f   : > { %v5523_v14 = vshll.u32 %v6926_v39, %v5141_v59  ;;  %v5527_v8 = vshll.u32 %v6920_v30, %v5141_v59  ;;  %v5530_v34 = vsub.s32 32, %v5399_v16  ;;  %v966_v12 = vsel %vm5451_vm11, %v6973_v44, %v963_v4 }
 0x1a0   : > { %v5537_v21 = vshll.u32 %v6926_v39, %v5399_v16  ;;  %4225 = vcosq.f32 %v966_v12  ;;  %v1050_v52 = vclz %v3975_v2  ;;  %v1125_v41 = vsel %vm1119_vm5, %v1122_v57, %v1124_v43 }
 0x1a1   : > { %7004 = vst [vmem:[#allocation30_spill] sm:$0xff] %v5530_v34  ;;  %v5543_v19 = vshrl.u32 %v6920_v30, %v5413_v60  ;;  %v5547_v29 = vshll.u32 %v6920_v30, %v5399_v16  ;;  %4227 = vsinq.f32 %v966_v12  ;;  %v971_v47 = vadd.s32 3, %v967_v17 }
 0x1a2   : > { %v3976_v54 = vadd.s32 4294967294, %v1050_v52  ;;  %v1068_v0 = vsub.s32 4, %v5461_v3  ;;  %vm1143_vm15 = vc.u32 %v5512_v25, %v5517_v38  ;;  %v1144_v15 = vadd.s32 1, %v5518_v35  ;;  %v7008_v52 = vld [vmem:[#allocation9_spill] sm:$0xff] }
 0x1a3   : > { %v5555_v9 = vshrl.u32 %v6924_v27, %v5413_v60  ;;  %v5558_v5 = vadd.s32 1, %v4985_v28  ;;  %v5561_v56 = vadd.s32 1, %v4987_v36  ;;  %v1141_v53 = vmul.u32 %v1134_v58, %v1125_v41 }
 0x1a4   : > { %v5565_v24 = vshrl.u32 %v6920_v30, %v5530_v34  ;;  %v5567_v40 = vand.u32 3, %v967_v17  ;;  %vm3977_vm0 = vcmp.lt.s32.totalorder %v3976_v54, 0  ;;  %v1145_v37 = vsel %vm1143_vm15, %v1144_v15, %v5518_v35  ;;  %v7018_v35 = vld [vmem:[#allocation8_spill] sm:$0xff] }
 0x1a5   : > { %v972_v57 = vand.u32 3, %v971_v47  ;;  %vm984_vm12 = vcmp.lt.s32.totalorder %v6985_v20, 0  ;;  %v1053_v43 = vsel %vm3977_vm0, 0, %v3976_v54  ;;  %v1146_v42 = vadd.s32 %v1145_v37, %v1141_v53 }
 0x1a6   : > { %v1038_v28 = vadd.s32 %v5408_v61, %v5406_v33  ;;  %v1054_v36 = vsub.s32 32, %v1053_v43  ;;  %v1058_v4 = vsub.s32 4294967266, %v1053_v43  ;;  %v1069_v58 = vsel %vm984_vm12, %v1068_v0, %v5461_v3  ;;  %v7009_v0 = vld [vmem:[#allocation35_spill] sm:$0xff] }
 0x1a7   : > { %v5578_v17 = vshrl.u32 %v6924_v27, %v5530_v34  ;;  %v7005_v2 = vand.u32 2147483647, %v6985_v20  ;;  %v1147_v12 = vadd.s32 536870912, %v1146_v42  ;;  %v6893_v41 = vand.u32 2147483647, %v7008_v52 }
 0x1a8   : > { %vm2633_vm13 = vcmp.eq.s32.totalorder %v5567_v40, 0  ;;  %vm2636_vm14 = vcmp.eq.s32.totalorder %v5567_v40, 2  ;;  %v1055_v33 = vshll.u32 %v5491_v10, %v1053_v43  ;;  %v1056_v61 = vshrl.u32 %v1038_v28, %v1054_v36 }
 0x1a9   : > { %vm5582_vm1 = vcmp.le.f32.partialorder %v7005_v2, 0.7853982  ;;  %v1059_v3 = vadd.s32 127, %v1058_v4  ;;  %vm973_vm7 = vcmp.lt.s32.totalorder %v972_v57, 2  ;;  %vm2632_vm8 = vcmp.lt.s32.totalorder %v5567_v40, 2  ;;  %v7010_v4 = vld [vmem:[#allocation29_spill] sm:$0xff] }
 0x1aa   : > { %v1071_v47 = vsel %vm5582_vm1, 0, %v1069_v58  ;;  %v5593_v54 = vshrl.u32 %v1147_v12, 30  ;;  %v1208_v15 = vshrl.u32 %v6953_v55, %v7009_v0  ;;  %v1211_v53 = vshrl.u32 %v6959_v7, %v7009_v0 }
 0x1ab   : > { %vm970_vm3 = vweird.f32 %v6973_v44  ;;  %vm974_vm9 = vcmp.eq.s32.totalorder %v972_v57, 0  ;;  %v1057_v10 = vor.u32 %v1056_v61, %v1055_v33  ;;  %v1060_v37 = vshll.u32 %v1059_v3, 23 }
 0x1ac   : > { %v1214_v43 = vshrl.u32 %v6926_v39, %v7009_v0  ;;  %v1149_v28 = vshll.u32 %v5593_v54, 30  ;;  %v1197_v36 = vand.u32 8388607, %v6893_v41  ;;  %v1207_v58 = vshll.u32 %v6956_v51, %v7010_v4 }
 0x1ad   : > { %v1210_v2 = vshll.u32 %v6953_v55, %v7010_v4  ;;  %vm977_vm11 = vcmp.eq.s32.totalorder %v972_v57, 2  ;;  %v1061_v12 = vor.u32 4788187, %v1060_v37  ;;  %v1075_v22 = vadd.s32 3, %v1071_v47  ;;  %v4226_v61 = vpop.eup %4225 }
 0x1ae   : > { %v1213_v33 = vshll.u32 %v6959_v7, %v7010_v4  ;;  %v5611_v3 = vand.u32 3, %v1071_v47  ;;  %v5613_v48 = vsub.s32 %v1146_v42, %v1149_v28  ;;  %v1209_v11 = vor.u32 %v1208_v15, %v1207_v58  ;;  %v4228_v41 = vpop.eup %4227  ;;  %v7013_v28 = vld [vmem:[#allocation43_spill] sm:$0xff] }
 0x1af   : > { %v1212_v13 = vor.u32 %v1211_v53, %v1210_v2  ;;  %v978_v6 = vxor.u32 2147483648, %v4226_v61  ;;  %v1062_v16 = vand.u32 2147483647, %v1061_v12  ;;  %v1064_v34 = vcvt.s32.f32 %v1057_v10  ;;  %v7014_v12 = vld [vmem:[#allocation47_spill] sm:$0xff] }
 0x1b0   : > { %v1215_v50 = vor.u32 %v1214_v43, %v1213_v33  ;;  %v975_v31 = vxor.u32 2147483648, %v4228_v41  ;;  %v1152_v1 = vsub.s32 0, %v5613_v48  ;;  %v1198_v37 = vor.u32 8388608, %v1197_v36  ;;  %v7012_v43 = vld [vmem:[#allocation48_spill] sm:$0xff] }
 0x1b1   : > { %vm1222_vm4 = vcmp.lt.s32.totalorder %v7011_v62, 1  ;;  %v2638_v4 = vsel %vm2636_vm14, %v978_v6, %v4228_v41  ;;  %v979_v47 = vsel %vm977_vm11, %v978_v6, %v4228_v41  ;;  %v1065_v42 = vmul.f32 %v1064_v34, %v1062_v16 }
 0x1b2   : > { %vm1224_vm5 = vcmp.lt.s32.totalorder %v7011_v62, 3  ;;  %v2635_v15 = vsel %vm2633_vm13, %v4226_v61, %v975_v31  ;;  %v976_v53 = vsel %vm974_vm9, %v4226_v61, %v975_v31  ;;  %v3979_v10 = vmin.u32 %v1152_v1, %v5613_v48 }
 0x1b3   : > { %v1236_v36 = vsel %vm1224_vm5, %v7013_v28, %v7012_v43  ;;  %v2639_v58 = vsel %vm2632_vm8, %v2635_v15, %v2638_v4  ;;  %v980_v6 = vsel %vm973_vm7, %v976_v53, %v979_v47  ;;  %v1066_v16 = vxor.u32 2147483648, %v1065_v42 }
 0x1b4   : > { %v1234_v34 = vsel %vm1222_vm4, %v1212_v13, %v1215_v50  ;;  %v2640_v41 = vsel %vm970_vm3, nan, %v2639_v58  ;;  %v5638_v1 = vsel %vm970_vm3, nan, %v980_v6  ;;  %v5640_v31 = vand.u32 3, %v1075_v22 }
 0x1b5   : > { %vm1088_vm6 = vcmp.lt.s32.totalorder %v6994_v26, 0  ;;  %v1154_v2 = vclz %v3979_v10  ;;  %3798 = vrot.lane.b32.xlu0 %v2640_v41, %s4344_s28  ;;  %v1067_v40 = vsel %vm984_vm12, %v1066_v16, %v1065_v42  ;;  %vm1223_vm15 = vcmp.lt.s32.totalorder %v7011_v62, 2 }
 0x1b6   : > { %v1230_v57 = vsel %vm1222_vm4, %v1209_v11, %v1212_v13  ;;  %v1232_v44 = vsel %vm1224_vm5, %v1215_v50, %v7014_v12  ;;  %v1070_v22 = vsel %vm5582_vm1, %v6985_v20, %v1067_v40  ;;  %v1142_v33 = vadd.s32 %v5517_v38, %v5512_v25  ;;  %v7019_v12 = vld [vmem:[#allocation24_spill] sm:$0xff] }
 0x1b7   : > { %v3980_v61 = vadd.s32 4294967294, %v1154_v2  ;;  %v1237_v4 = vsel %vm1223_vm15, %v1234_v34, %v1236_v36  ;;  %4229 = vcosq.f32 %v1070_v22  ;;  %v7015_v47 = vand.u32 2147483647, %v6994_v26 }
 0x1b8   : > { %v1227_v15 = vsel %vm1225_vm2, %v1215_v50, 2102212464  ;;  %v1238_v53 = vshll.u32 %v1198_v37, 8  ;;  %v6902_v10 = vand.u32 2147483647, %v7018_v35  ;;  %4231 = vsinq.f32 %v1070_v22  ;;  %v7020_v22 = vld [vmem:[#allocation32_spill] sm:$0xff] }
 0x1b9   : > { %vm5661_vm0 = vcmp.le.f32.partialorder %v7015_v47, 0.7853982  ;;  %vm3981_vm12 = vcmp.lt.s32.totalorder %v3980_v61, 0  ;;  %v1206_v25 = vshrl.u32 %v6956_v51, %v7009_v0  ;;  %v1233_v38 = vsel %vm1223_vm15, %v1230_v57, %v1232_v44 }
 0x1ba   : > { %v1157_v43 = vsel %vm3981_vm12, 0, %v3980_v61  ;;  %v1172_v28 = vsub.s32 4, %v5593_v54  ;;  %v5673_v36 = vmul.u32.u64.low %v1238_v53, %v1237_v4  ;;  %v5674_v58 = vmul.u32.u64.high %v1238_v53, %v1237_v4, %v5673_v36 }
 0x1bb   : > { %v1158_v6 = vsub.s32 32, %v1157_v43  ;;  %v1162_v16 = vsub.s32 4294967266, %v1157_v43  ;;  %v1226_v50 = vsel %vm1222_vm4, %v1206_v25, %v1209_v11  ;;  %v1228_v37 = vsel %vm1224_vm5, %v1212_v13, %v1227_v15 }
 0x1bc   : > { %v1159_v34 = vshll.u32 %v5613_v48, %v1157_v43  ;;  %v5681_v0 = vmul.u32.u64.low %v1238_v53, %v1233_v38  ;;  %v5682_v41 = vmul.u32.u64.high %v1238_v53, %v1233_v38, %v5681_v0  ;;  %v1301_v2 = vand.u32 8388607, %v6902_v10 }
 0x1bd   : > { %v1160_v40 = vshrl.u32 %v1142_v33, %v1158_v6  ;;  %v1163_v57 = vadd.s32 127, %v1162_v16  ;;  %v1311_v44 = vshll.u32 %v6956_v51, %v7019_v12  ;;  %v1312_v11 = vshrl.u32 %v6953_v55, %v7020_v22 }
 0x1be   : > { %v1173_v13 = vsel %vm1088_vm6, %v1172_v28, %v5593_v54  ;;  %v1229_v48 = vsel %vm1223_vm15, %v1226_v50, %v1228_v37  ;;  %v1314_v61 = vshll.u32 %v6953_v55, %v7019_v12  ;;  %v1315_v33 = vshrl.u32 %v6959_v7, %v7020_v22  ;;  %v7021_v37 = vld [vmem:[#allocation38_spill] sm:$0xff] }
 0x1bf   : > { %vm1081_vm2 = vcmp.eq.s32.totalorder %v5640_v31, 2  ;;  %vm2739_vm1 = vcmp.eq.s32.totalorder %v5611_v3, 2  ;;  %v1161_v4 = vor.u32 %v1160_v40, %v1159_v34  ;;  %v1164_v47 = vshll.u32 %v1163_v57, 23 }
 0x1c0   : > { %vm1247_vm13 = vc.u32 %v5674_v58, %v5681_v0  ;;  %v1313_v15 = vor.u32 %v1312_v11, %v1311_v44  ;;  %vm1078_vm14 = vcmp.eq.s32.totalorder %v5640_v31, 0  ;;  %vm2736_vm7 = vcmp.eq.s32.totalorder %v5611_v3, 0  ;;  %v7023_v44 = vld [vmem:[#allocation40_spill] sm:$0xff] }
 0x1c1   : > { %v1248_v62 = vadd.s32 1, %v5682_v41  ;;  %v1316_v54 = vor.u32 %v1315_v33, %v1314_v61  ;;  %v1317_v25 = vshll.u32 %v6959_v7, %v7019_v12  ;;  %v1318_v38 = vshrl.u32 %v6926_v39, %v7020_v22  ;;  %v7022_v12 = vld [vmem:[#allocation45_spill] sm:$0xff] }
 0x1c2   : > { %vm1077_vm8 = vcmp.lt.s32.totalorder %v5640_v31, 2  ;;  %vm2735_vm3 = vcmp.lt.s32.totalorder %v5611_v3, 2  ;;  %v1165_v43 = vor.u32 4788187, %v1164_v47  ;;  %v1175_v28 = vsel %vm5661_vm0, 0, %v1173_v13 }
 0x1c3   : > { %v1245_v36 = vmul.u32 %v1238_v53, %v1229_v48  ;;  %v1302_v6 = vor.u32 8388608, %v1301_v2  ;;  %vm1074_vm9 = vweird.f32 %v6985_v20  ;;  %v1249_v16 = vsel %vm1247_vm13, %v1248_v62, %v5682_v41  ;;  %v7024_v2 = vld [vmem:[#allocation44_spill] sm:$0xff] }
 0x1c4   : > { %v1319_v50 = vor.u32 %v1318_v38, %v1317_v25  ;;  %vm1326_vm11 = vcmp.lt.s32.totalorder %v7021_v37, 1  ;;  %vm1328_vm4 = vcmp.lt.s32.totalorder %v7021_v37, 3  ;;  %v1166_v34 = vand.u32 2147483647, %v1165_v43  ;;  %v4230_v61 = vpop.eup %4229 }
 0x1c5   : > { %v1168_v40 = vcvt.s32.f32 %v1161_v4  ;;  %v1250_v57 = vadd.s32 %v1249_v16, %v1245_v36  ;;  %v1340_v11 = vsel %vm1328_vm4, %v7023_v44, %v7022_v12  ;;  %v1179_v13 = vadd.s32 3, %v1175_v28  ;;  %v4232_v62 = vpop.eup %4231 }
 0x1c6   : > { %v1334_v53 = vsel %vm1326_vm11, %v1313_v15, %v1316_v54  ;;  %v1336_v41 = vsel %vm1328_vm4, %v1319_v50, %v7024_v2  ;;  %v1338_v48 = vsel %vm1326_vm11, %v1316_v54, %v1319_v50  ;;  %v1310_v47 = vshrl.u32 %v6956_v51, %v7020_v22 }
 0x1c7   : > { %v1169_v33 = vmul.f32 %v1168_v40, %v1166_v34  ;;  %v1251_v4 = vadd.s32 536870912, %v1250_v57  ;;  %vm1327_vm5 = vcmp.lt.s32.totalorder %v7021_v37, 2  ;;  %v1082_v25 = vxor.u32 2147483648, %v4230_v61 }
 0x1c8   : > { %vm7025_vm15 = vcmp.lt.s32.totalorder %v7021_v37, 4  ;;  %v1341_v43 = vsel %vm1327_vm5, %v1338_v48, %v1340_v11  ;;  %v1342_v36 = vshll.u32 %v1302_v6, 8  ;;  %v1079_v16 = vxor.u32 2147483648, %v4232_v62 }
 0x1c9   : > { %v1331_v38 = vsel %vm7025_vm15, %v1319_v50, 2102212464  ;;  %v1170_v12 = vxor.u32 2147483648, %v1169_v33  ;;  %v1252_v44 = vshrl.u32 %v1251_v4, 30  ;;  %v1337_v34 = vsel %vm1327_vm5, %v1334_v53, %v1336_v41 }
 0x1ca   : > { %vm1641_vm12 = vcmp.lt.s32.totalorder %v5074_v18, 4  ;;  %v1083_v22 = vsel %vm1081_vm2, %v1082_v25, %v4232_v62  ;;  %v2741_v40 = vsel %vm2739_vm1, %v1082_v25, %v4232_v62  ;;  %v1080_v6 = vsel %vm1078_vm14, %v4230_v61, %v1079_v16 }
 0x1cb   : > { %v5744_v2 = vmul.u32.u64.low %v1342_v36, %v1341_v43  ;;  %v5745_v50 = vmul.u32.u64.high %v1342_v36, %v1341_v43, %v5744_v2  ;;  %v2738_v11 = vsel %vm2736_vm7, %v4230_v61, %v1079_v16  ;;  %v1171_v53 = vsel %vm1088_vm6, %v1170_v12, %v1169_v33  ;;  %v7027_v12 = vld [vmem:[#allocation11_spill] sm:$0xff] }
 0x1cc   : > { %v1253_v41 = vshll.u32 %v1252_v44, 30  ;;  %v1084_v48 = vsel %vm1077_vm8, %v1080_v6, %v1083_v22  ;;  %v2742_v4 = vsel %vm2735_vm3, %v2738_v11, %v2741_v40  ;;  %v1174_v62 = vsel %vm5661_vm0, %v6994_v26, %v1171_v53 }
 0x1cd   : > { %v1330_v25 = vsel %vm1326_vm11, %v1310_v47, %v1313_v15  ;;  %v5764_v61 = vsel %vm1074_vm9, nan, %v1084_v48  ;;  %v2743_v33 = vsel %vm1074_vm9, nan, %v2742_v4  ;;  %4233 = vcosq.f32 %v1174_v62 }
 0x1ce   : > { %7026 = vst [vmem:[#allocation7_spill] sm:$0xff] %v5764_v61  ;;  %v5768_v31 = vsub.s32 %v1250_v57, %v1253_v41  ;;  %3800 = vrot.lane.b32.xlu1 %v2743_v33, %s4344_s28  ;;  %4235 = vsinq.f32 %v1174_v62  ;;  %v1332_v3 = vsel %vm1328_vm4, %v1316_v54, %v1331_v38  ;;  %v5779_v15 = vor.u32 %v5543_v19, %v5523_v14 }
 0x1cf   : > { %v5773_v42 = vmul.u32.u64.low %v1342_v36, %v1337_v34  ;;  %v5774_v43 = vmul.u32.u64.high %v1342_v36, %v1337_v34, %v5773_v42  ;;  %vm1825_vm6 = vcmp.gt.s32.totalorder %v5558_v5, 0  ;;  %vm2033_vm0 = vcmp.gt.s32.totalorder %v5561_v56, 0 }
 0x1d0   : > { %v1256_v20 = vsub.s32 0, %v5768_v31  ;;  %v5788_v54 = vor.u32 %v5565_v24, %v5537_v21  ;;  %v5790_v47 = vand.u32 3, %v1179_v13  ;;  %v1276_v38 = vsub.s32 4, %v1252_v44 }
 0x1d1   : > { %v5792_v16 = vand.u32 3, %v1175_v28  ;;  %v1333_v19 = vsel %vm1327_vm5, %v1330_v25, %v1332_v3  ;;  %v6901_v34 = vand.u32 2147483647, %v7027_v12  ;;  %v5801_v40 = vsel %vm1825_vm6, %v5558_v5, 0  ;;  %v7032_v25 = vld [vmem:[#allocation51_spill] sm:$0xff] }
 0x1d2   : > { %v3983_v14 = vmin.u32 %v1256_v20, %v5768_v31  ;;  %v5804_v21 = vsel %vm2033_vm0, %v5561_v56, 0  ;;  %vm1351_vm2 = vc.u32 %v5745_v50, %v5773_v42  ;;  %v5811_v24 = vsel %vm1641_vm12, %v5779_v15, 920167782 }
 0x1d3   : > { %vm1192_vm1 = vcmp.lt.s32.totalorder %v7008_v52, 0  ;;  %v1352_v37 = vadd.s32 1, %v5774_v43  ;;  %vm1185_vm13 = vcmp.eq.s32.totalorder %v5790_v47, 2  ;;  %v7028_v5 = vand.u32 2147483647, %v7008_v52 }
 0x1d4   : > { %v1258_v28 = vclz %v3983_v14  ;;  %v1277_v13 = vsel %vm1192_vm1, %v1276_v38, %v1252_v44  ;;  %v1349_v2 = vmul.u32 %v1342_v36, %v1333_v19  ;;  %vm1182_vm7 = vcmp.eq.s32.totalorder %v5790_v47, 0  ;;  %v7031_v44 = vld [vmem:[#allocation54_spill] sm:$0xff] }
 0x1d5   : > { %vm5818_vm14 = vcmp.le.f32.partialorder %v7028_v5, 0.7853982  ;;  %vm2839_vm8 = vcmp.eq.s32.totalorder %v5792_v16, 0  ;;  %v1353_v11 = vsel %vm1351_vm2, %v1352_v37, %v5774_v43  ;;  %v5829_v53 = vand.u32 8388607, %v6901_v34 }
 0x1d6   : > { %v3984_v6 = vadd.s32 4294967294, %v1258_v28  ;;  %vm1181_vm3 = vcmp.lt.s32.totalorder %v5790_v47, 2  ;;  %vm2838_vm9 = vcmp.lt.s32.totalorder %v5792_v16, 2  ;;  %vm2842_vm11 = vcmp.eq.s32.totalorder %v5792_v16, 2 }
 0x1d7   : > { %v1354_v41 = vadd.s32 %v1353_v11, %v1349_v2  ;;  %v1416_v36 = vshrl.u32 %v6953_v55, %v7031_v44  ;;  %v1422_v48 = vshrl.u32 %v6926_v39, %v7031_v44  ;;  %vm1178_vm4 = vweird.f32 %v6994_v26 }
 0x1d8   : > { %v1246_v4 = vadd.s32 %v5681_v0, %v5674_v58  ;;  %vm3985_vm5 = vcmp.lt.s32.totalorder %v3984_v6, 0  ;;  %v5843_v62 = vsel %vm5818_vm14, 0, %v1277_v13  ;;  %v1415_v33 = vshll.u32 %v6956_v51, %v7032_v25 }
 0x1d9   : > { %v1261_v3 = vsel %vm3985_vm5, 0, %v3984_v6  ;;  %v1355_v43 = vadd.s32 536870912, %v1354_v41  ;;  %v1419_v20 = vshrl.u32 %v6959_v7, %v7031_v44  ;;  %v1421_v38 = vshll.u32 %v6959_v7, %v7032_v25 }
 0x1da   : > { %v1262_v14 = vsub.s32 32, %v1261_v3  ;;  %v1266_v19 = vsub.s32 4294967266, %v1261_v3  ;;  %v1406_v58 = vor.u32 8388608, %v5829_v53  ;;  %v1414_v0 = vshrl.u32 %v6956_v51, %v7031_v44  ;;  %v4234_v28 = vpop.eup %4233 }
 0x1db   : > { %v5854_v37 = vshrl.u32 %v1355_v43, 30  ;;  %v1417_v5 = vor.u32 %v1416_v36, %v1415_v33  ;;  %v1418_v13 = vshll.u32 %v6953_v55, %v7032_v25  ;;  %v1423_v2 = vor.u32 %v1422_v48, %v1421_v38  ;;  %v4236_v6 = vpop.eup %4235 }
 0x1dc   : > { %v1186_v11 = vxor.u32 2147483648, %v4234_v28  ;;  %v1263_v34 = vshll.u32 %v5768_v31, %v1261_v3  ;;  %v1264_v22 = vshrl.u32 %v1246_v4, %v1262_v14  ;;  %v1267_v10 = vadd.s32 127, %v1266_v19 }
 0x1dd   : > { %v1183_v57 = vxor.u32 2147483648, %v4236_v6  ;;  %v1357_v53 = vshll.u32 %v5854_v37, 30  ;;  %v1420_v61 = vor.u32 %v1419_v20, %v1418_v13  ;;  %vm1430_vm15 = vcmp.lt.s32.totalorder %v4861_v63, 1 }
 0x1de   : > { %v2844_v44 = vsel %vm2842_vm11, %v1186_v11, %v4236_v6  ;;  %v1187_v36 = vsel %vm1185_vm13, %v1186_v11, %v4236_v6  ;;  %v1265_v25 = vor.u32 %v1264_v22, %v1263_v34  ;;  %v1268_v48 = vshll.u32 %v1267_v10, 23 }
 0x1df   : > { %v2841_v33 = vsel %vm2839_vm8, %v4234_v28, %v1183_v57  ;;  %v1184_v31 = vsel %vm1182_vm7, %v4234_v28, %v1183_v57  ;;  %v5869_v4 = vsub.s32 %v1354_v41, %v1357_v53  ;;  %vm1432_vm6 = vcmp.lt.s32.totalorder %v4861_v63, 3 }
 0x1e0   : > { %v2845_v3 = vsel %vm2838_vm9, %v2841_v33, %v2844_v44  ;;  %v1188_v43 = vsel %vm1181_vm3, %v1184_v31, %v1187_v36  ;;  %v1269_v20 = vor.u32 4788187, %v1268_v48  ;;  %vm7033_vm0 = vcmp.lt.s32.totalorder %v4861_v63, 4  ;;  %v7035_v48 = vld [vmem:[#allocation10_spill] sm:$0xff] }
 0x1e1   : > { %v1435_v10 = vsel %vm7033_vm0, %v1423_v2, 2102212464  ;;  %v2846_v34 = vsel %vm1178_vm4, nan, %v2845_v3  ;;  %v5882_v57 = vsel %vm1178_vm4, nan, %v1188_v43  ;;  %v1360_v22 = vsub.s32 0, %v5869_v4 }
 0x1e2   : > { %v1438_v16 = vsel %vm1430_vm15, %v1417_v5, %v1420_v61  ;;  %3802 = vrot.lane.b32.xlu0 %v2846_v34, %s4344_s28  ;;  %v1270_v47 = vand.u32 2147483647, %v1269_v20  ;;  %v1272_v41 = vcvt.s32.f32 %v1265_v25  ;;  %v1440_v38 = vsel %vm1432_vm6, %v1423_v2, %v5059_v23 }
 0x1e3   : > { %v1442_v14 = vsel %vm1430_vm15, %v1420_v61, %v1423_v2  ;;  %v3987_v26 = vmin.u32 %v1360_v22, %v5869_v4  ;;  %v1434_v19 = vsel %vm1430_vm15, %v1414_v0, %v1417_v5  ;;  %v1436_v28 = vsel %vm1432_vm6, %v1420_v61, %v1435_v10 }
 0x1e4   : > { %v1444_v13 = vsel %vm1432_vm6, %v4983_v45, %v5063_v46  ;;  %v7034_v6 = vor.u32 %v5555_v9, %v5527_v8  ;;  %v5910_v2 = vand.u32 31, %v5801_v40  ;;  %v1273_v11 = vmul.f32 %v1272_v41, %v1270_v47 }
 0x1e5   : > { %vm1431_vm2 = vcmp.lt.s32.totalorder %v4861_v63, 2  ;;  %v1362_v0 = vclz %v3987_v26  ;;  %v1446_v53 = vshll.u32 %v1406_v58, 8  ;;  %v5914_v44 = vshrl.u32 %v5801_v40, 5  ;;  %v7037_v26 = vld [vmem:[#allocation37_spill] sm:$0xff] }
 0x1e6   : > { %v5907_v23 = vsel %vm1641_vm12, %v7034_v6, 1326507024  ;;  %v1441_v61 = vsel %vm1431_vm2, %v1438_v16, %v1440_v38  ;;  %v1445_v5 = vsel %vm1431_vm2, %v1442_v14, %v1444_v13  ;;  %v1274_v45 = vxor.u32 2147483648, %v1273_v11 }
 0x1e7   : > { %v1283_v46 = vadd.s32 3, %v5843_v62  ;;  %v1437_v8 = vsel %vm1431_vm2, %v1434_v19, %v1436_v28  ;;  %v3988_v9 = vadd.s32 4294967294, %v1362_v0  ;;  %v1502_v33 = vand.u32 2147483647, %v7035_v48 }
 0x1e8   : > { %v5917_v36 = vmul.u32.u64.low %v1446_v53, %v1445_v5  ;;  %v5918_v25 = vmul.u32.u64.high %v1446_v53, %v1445_v5, %v5917_v36  ;;  %v5922_v31 = vsub.s32 32, %v5910_v2  ;;  %v1275_v63 = vsel %vm1192_vm1, %v1274_v45, %v1273_v11 }
 0x1e9   : > { %v5926_v58 = vmul.u32.u64.low %v1446_v53, %v1441_v61  ;;  %v5927_v3 = vmul.u32.u64.high %v1446_v53, %v1441_v61, %v5926_v58  ;;  %v1278_v40 = vsel %vm5818_vm14, %v7008_v52, %v1275_v63  ;;  %v5934_v43 = vand.u32 3, %v5843_v62 }
 0x1ea   : > { %v1350_v20 = vadd.s32 %v5773_v42, %v5745_v50  ;;  %vm3989_vm13 = vcmp.lt.s32.totalorder %v3988_v9, 0  ;;  %4237 = vcosq.f32 %v1278_v40  ;;  %v5938_v10 = vand.u32 3, %v1283_v46  ;;  %v7036_v42 = vld [vmem:[#allocation33_spill] sm:$0xff] }
 0x1eb   : > { %v1365_v34 = vsel %vm3989_vm13, 0, %v3988_v9  ;;  %v1453_v22 = vmul.u32 %v1446_v53, %v1437_v8  ;;  %4239 = vsinq.f32 %v1278_v40  ;;  %vm1296_vm1 = vcmp.lt.s32.totalorder %v7018_v35, 0 }
 0x1ec   : > { %v1366_v16 = vsub.s32 32, %v1365_v34  ;;  %v1370_v47 = vsub.s32 4294967266, %v1365_v34  ;;  %v1509_v56 = vand.u32 8388607, %v1502_v33  ;;  %v1367_v62 = vshll.u32 %v5869_v4, %v1365_v34 }
 0x1ed   : > { %vm1455_vm14 = vc.u32 %v5918_v25, %v5926_v58  ;;  %v1456_v50 = vadd.s32 1, %v5927_v3  ;;  %v1519_v41 = vshll.u32 %v6956_v51, %v7036_v42  ;;  %v1520_v19 = vshrl.u32 %v6953_v55, %v7037_v26 }
 0x1ee   : > { %v1368_v38 = vshrl.u32 %v1350_v20, %v1366_v16  ;;  %v1371_v14 = vadd.s32 127, %v1370_v47  ;;  %v1522_v28 = vshll.u32 %v6953_v55, %v7036_v42  ;;  %v1523_v4 = vshrl.u32 %v6959_v7, %v7037_v26  ;;  %v7041_v20 = vld [vmem:[#allocation42_spill] sm:$0xff] }
 0x1ef   : > { %v1457_v13 = vsel %vm1455_vm14, %v1456_v50, %v5927_v3  ;;  %v1525_v6 = vshll.u32 %v6959_v7, %v7036_v42  ;;  %v1526_v11 = vshrl.u32 %v6926_v39, %v7037_v26  ;;  %v7038_v0 = vand.u32 2147483647, %v7018_v35 }
 0x1f0   : > { %v1369_v5 = vor.u32 %v1368_v38, %v1367_v62  ;;  %v1372_v53 = vshll.u32 %v1371_v14, 23  ;;  %v1458_v45 = vadd.s32 %v1457_v13, %v1453_v22  ;;  %v1521_v46 = vor.u32 %v1520_v19, %v1519_v41  ;;  %v7042_v22 = vld [vmem:[#allocation49_spill] sm:$0xff]  ;;  %v7043_v38 = vld [vmem:[#allocation50_spill] sm:$0xff] }
 0x1f1   : > { %vm5962_vm7 = vcmp.le.f32.partialorder %v7038_v0, 0.7853982  ;;  %v1380_v8 = vsub.s32 4, %v5854_v37  ;;  %v1510_v9 = vor.u32 8388608, %v1509_v56  ;;  %v1524_v36 = vor.u32 %v1523_v4, %v1522_v28  ;;  %v7044_v14 = vld [vmem:[#allocation46_spill] sm:$0xff] }
 0x1f2   : > { %v1527_v63 = vor.u32 %v1526_v11, %v1525_v6  ;;  %v1373_v3 = vor.u32 4788187, %v1372_v53  ;;  %v1459_v40 = vadd.s32 536870912, %v1458_v45  ;;  %vm1534_vm8 = vcmp.lt.s32.totalorder %v7041_v20, 1 }
 0x1f3   : > { %vm1536_vm3 = vcmp.lt.s32.totalorder %v7041_v20, 3  ;;  %vm2942_vm9 = vcmp.eq.s32.totalorder %v5934_v43, 0  ;;  %vm2945_vm11 = vcmp.eq.s32.totalorder %v5934_v43, 2  ;;  %v1542_v34 = vsel %vm1534_vm8, %v1521_v46, %v1524_v36 }
 0x1f4   : > { %v1544_v16 = vsel %vm1536_vm3, %v1527_v63, %v7042_v22  ;;  %vm1285_vm4 = vcmp.lt.s32.totalorder %v5938_v10, 2  ;;  %vm2941_vm5 = vcmp.lt.s32.totalorder %v5934_v43, 2  ;;  %v1374_v47 = vand.u32 2147483647, %v1373_v3 }
 0x1f5   : > { %v1376_v56 = vcvt.s32.f32 %v1369_v5  ;;  %v5978_v62 = vshrl.u32 %v1459_v40, 30  ;;  %vm1535_vm15 = vcmp.lt.s32.totalorder %v7041_v20, 2  ;;  %vm1953_vm6 = vcmp.lt.s32.totalorder %v5394_v49, 4 }
 0x1f6   : > { %vm1282_vm0 = vweird.f32 %v7008_v52  ;;  %v1381_v50 = vsel %vm1296_vm1, %v1380_v8, %v5854_v37  ;;  %v1545_v42 = vsel %vm1535_vm15, %v1542_v34, %v1544_v16  ;;  %v1546_v41 = vsel %vm1534_vm8, %v1524_v36, %v1527_v63 }
 0x1f7   : > { %v1548_v19 = vsel %vm1536_vm3, %v7044_v14, %v7043_v38  ;;  %v1377_v28 = vmul.f32 %v1376_v56, %v1374_v47  ;;  %v1461_v13 = vshll.u32 %v5978_v62, 30  ;;  %v1550_v6 = vshll.u32 %v1510_v9, 8  ;;  %v4238_v0 = vpop.eup %4237 }
 0x1f8   : > { %v1549_v4 = vsel %vm1535_vm15, %v1546_v41, %v1548_v19  ;;  %vm1286_vm2 = vcmp.eq.s32.totalorder %v5938_v10, 0  ;;  %vm1289_vm13 = vcmp.eq.s32.totalorder %v5938_v10, 2  ;;  %v1518_v37 = vshrl.u32 %v6956_v51, %v7037_v26  ;;  %v4240_v40 = vpop.eup %4239 }
 0x1f9   : > { %vm7045_vm14 = vcmp.lt.s32.totalorder %v7041_v20, 4  ;;  %v1378_v5 = vxor.u32 2147483648, %v1377_v28  ;;  %v6003_v53 = vsub.s32 %v1458_v45, %v1461_v13  ;;  %v1290_v34 = vxor.u32 2147483648, %v4238_v0 }
 0x1fa   : > { %v1539_v11 = vsel %vm7045_vm14, %v1527_v63, 2102212464  ;;  %v6005_v8 = vmul.u32.u64.low %v1550_v6, %v1549_v4  ;;  %v6006_v3 = vmul.u32.u64.high %v1550_v6, %v1549_v4, %v6005_v8  ;;  %v1383_v9 = vsel %vm5962_vm7, 0, %v1381_v50 }
 0x1fb   : > { %v6010_v22 = vmul.u32.u64.low %v1550_v6, %v1545_v42  ;;  %v6011_v16 = vmul.u32.u64.high %v1550_v6, %v1545_v42, %v6010_v22  ;;  %v1287_v26 = vxor.u32 2147483648, %v4240_v40  ;;  %v1379_v63 = vsel %vm1296_vm1, %v1378_v5, %v1377_v28 }
 0x1fc   : > { %v1464_v47 = vsub.s32 0, %v6003_v53  ;;  %v1538_v45 = vsel %vm1534_vm8, %v1518_v37, %v1521_v46  ;;  %v1291_v56 = vsel %vm1289_vm13, %v1290_v34, %v4240_v40  ;;  %v2947_v41 = vsel %vm2945_vm11, %v1290_v34, %v4240_v40 }
 0x1fd   : > { %v1382_v50 = vsel %vm5962_vm7, %v7018_v35, %v1379_v63  ;;  %v1540_v42 = vsel %vm1536_vm3, %v1524_v36, %v1539_v11  ;;  %v1288_v38 = vsel %vm1286_vm2, %v4238_v0, %v1287_v26  ;;  %v2944_v14 = vsel %vm2942_vm9, %v4238_v0, %v1287_v26 }
 0x1fe   : > { %4241 = vcosq.f32 %v1382_v50  ;;  %v3991_v46 = vmin.u32 %v1464_v47, %v6003_v53  ;;  %v1292_v19 = vsel %vm1285_vm4, %v1288_v38, %v1291_v56  ;;  %v2948_v28 = vsel %vm2941_vm5, %v2944_v14, %v2947_v41 }
 0x1ff   : > { %4243 = vsinq.f32 %v1382_v50  ;;  %v1387_v61 = vadd.s32 3, %v1383_v9  ;;  %v6038_v36 = vsel %vm1953_vm6, %v5788_v54, 920167782  ;;  %v6042_v13 = vsel %vm1282_vm0, nan, %v1292_v19 }
 0x200   : > { %v2949_v4 = vsel %vm1282_vm0, nan, %v2948_v28  ;;  %v1466_v37 = vclz %v3991_v46  ;;  %v7046_v10 = vor.u32 %v5578_v17, %v5547_v29  ;;  %v6055_v11 = vshll.u32 %v6926_v39, %v5910_v2 }
 0x201   : > { %3804 = vrot.lane.b32.xlu1 %v2949_v4, %s4344_s28  ;;  %v6058_v0 = vand.u32 3, %v1383_v9  ;;  %v1541_v52 = vsel %vm1535_vm15, %v1538_v45, %v1540_v42  ;;  %v6064_v5 = vshll.u32 %v6920_v30, %v5910_v2  ;;  %v1484_v17 = vsub.s32 4, %v5978_v62  ;;  %v7047_v9 = vld [vmem:[#allocation17_spill] sm:$0xff] }
 0x202   : > { %v6051_v43 = vsel %vm1953_vm6, %v7046_v10, 1326507024  ;;  %v3992_v29 = vadd.s32 4294967294, %v1466_v37  ;;  %vm1559_vm1 = vc.u32 %v6006_v3, %v6010_v22  ;;  %v6071_v8 = vshrl.u32 %v6920_v30, %v5922_v31 }
 0x203   : > { %v1388_v40 = vand.u32 3, %v1387_v61  ;;  %v1560_v34 = vadd.s32 1, %v6011_v16  ;;  %v1606_v20 = vand.u32 2147483647, %v7047_v9  ;;  %v7048_v26 = vand.u32 2147483647, %v7027_v12 }
 0x204   : > { %vm1400_vm8 = vcmp.lt.s32.totalorder %v7027_v12, 0  ;;  %vm3993_vm3 = vcmp.lt.s32.totalorder %v3992_v29, 0  ;;  %v1557_v47 = vmul.u32 %v1550_v6, %v1541_v52  ;;  %vm3048_vm9 = vcmp.eq.s32.totalorder %v6058_v0, 2 }
 0x205   : > { %vm6077_vm7 = vcmp.le.f32.partialorder %v7048_v26, 0.7853982  ;;  %v1454_v45 = vadd.s32 %v5926_v58, %v5918_v25  ;;  %v1469_v56 = vsel %vm3993_vm3, 0, %v3992_v29  ;;  %v1561_v41 = vsel %vm1559_vm1, %v1560_v34, %v6011_v16 }
 0x206   : > { %vm3045_vm11 = vcmp.eq.s32.totalorder %v6058_v0, 0  ;;  %v1470_v50 = vsub.s32 32, %v1469_v56  ;;  %v1474_v42 = vsub.s32 4294967266, %v1469_v56  ;;  %v1485_v38 = vsel %vm1400_vm8, %v1484_v17, %v5978_v62 }
 0x207   : > { %v1562_v14 = vadd.s32 %v1561_v41, %v1557_v47  ;;  %vm1389_vm4 = vcmp.lt.s32.totalorder %v1388_v40, 2  ;;  %vm1390_vm5 = vcmp.eq.s32.totalorder %v1388_v40, 0  ;;  %vm3044_vm15 = vcmp.lt.s32.totalorder %v6058_v0, 2 }
 0x208   : > { %v6093_v6 = vand.u32 8388607, %v1606_v20  ;;  %v1624_v25 = vshrl.u32 %v6953_v55, %v5413_v60  ;;  %v1630_v58 = vshrl.u32 %v6926_v39, %v5413_v60  ;;  %vm1386_vm0 = vweird.f32 %v7018_v35 }
 0x209   : > { %v1471_v16 = vshll.u32 %v6003_v53, %v1469_v56  ;;  %v1472_v62 = vshrl.u32 %v1454_v45, %v1470_v50  ;;  %v1475_v46 = vadd.s32 127, %v1474_v42  ;;  %v1563_v19 = vadd.s32 536870912, %v1562_v14 }
 0x20a   : > { %vm1393_vm2 = vcmp.eq.s32.totalorder %v1388_v40, 2  ;;  %v6103_v28 = vsel %vm6077_vm7, 0, %v1485_v38  ;;  %v1627_v61 = vshrl.u32 %v6959_v7, %v5413_v60  ;;  %v1629_v4 = vshll.u32 %v6959_v7, %v5141_v59 }
 0x20b   : > { %v1473_v37 = vor.u32 %v1472_v62, %v1471_v16  ;;  %v1476_v10 = vshll.u32 %v1475_v46, 23  ;;  %v6109_v52 = vshrl.u32 %v1563_v19, 30  ;;  %v1623_v53 = vshll.u32 %v6956_v51, %v5141_v59  ;;  %v4242_v29 = vpop.eup %4241 }
 0x20c   : > { %v1614_v17 = vor.u32 8388608, %v6093_v6  ;;  %v1622_v34 = vshrl.u32 %v6956_v51, %v5413_v60  ;;  %v1626_v26 = vshll.u32 %v6953_v55, %v5141_v59  ;;  %v1631_v47 = vor.u32 %v1630_v58, %v1629_v4  ;;  %v4244_v45 = vpop.eup %4243 }
 0x20d   : > { %v1394_v56 = vxor.u32 2147483648, %v4242_v29  ;;  %v1477_v41 = vor.u32 4788187, %v1476_v10  ;;  %v1565_v50 = vshll.u32 %v6109_v52, 30  ;;  %v1625_v42 = vor.u32 %v1624_v25, %v1623_v53 }
 0x20e   : > { %v1391_v38 = vxor.u32 2147483648, %v4244_v45  ;;  %v1480_v16 = vcvt.s32.f32 %v1473_v37  ;;  %v1628_v62 = vor.u32 %v1627_v61, %v1626_v26  ;;  %vm1638_vm13 = vcmp.lt.s32.totalorder %v5074_v18, 1 }
 0x20f   : > { %v3050_v6 = vsel %vm3048_vm9, %v1394_v56, %v4244_v45  ;;  %v1395_v60 = vsel %vm1393_vm2, %v1394_v56, %v4244_v45  ;;  %v1478_v46 = vand.u32 2147483647, %v1477_v41  ;;  %v6123_v19 = vsub.s32 %v1562_v14, %v1565_v50 }
 0x210   : > { %v3047_v59 = vsel %vm3045_vm11, %v4242_v29, %v1391_v38  ;;  %v1392_v58 = vsel %vm1390_vm5, %v4242_v29, %v1391_v38  ;;  %vm1640_vm14 = vcmp.lt.s32.totalorder %v5074_v18, 3  ;;  %v1643_v25 = vsel %vm1641_vm12, %v1631_v47, 2102212464 }
 0x211   : > { %v3051_v61 = vsel %vm3044_vm15, %v3047_v59, %v3050_v6  ;;  %v1396_v4 = vsel %vm1389_vm4, %v1392_v58, %v1395_v60  ;;  %v1481_v37 = vmul.f32 %v1480_v16, %v1478_v46  ;;  %v1568_v10 = vsub.s32 0, %v6123_v19  ;;  %v7051_v46 = vld [vmem:[#allocation12_spill] sm:$0xff] }
 0x212   : > { %v3052_v14 = vsel %vm1386_vm0, nan, %v3051_v61  ;;  %v6139_v53 = vsel %vm1386_vm0, nan, %v1396_v4  ;;  %v1650_v29 = vsel %vm1638_vm13, %v1628_v62, %v1631_v47  ;;  %v1652_v0 = vsel %vm1640_vm14, %v5779_v15, %v5907_v23 }
 0x213   : > { %3806 = vrot.lane.b32.xlu0 %v3052_v14, %s4344_s28  ;;  %v1482_v40 = vxor.u32 2147483648, %v1481_v37  ;;  %v3995_v26 = vmin.u32 %v1568_v10, %v6123_v19  ;;  %v1646_v45 = vsel %vm1638_vm13, %v1625_v42, %v1628_v62  ;;  %v1648_v35 = vsel %vm1640_vm14, %v1631_v47, %v5811_v24 }
 0x214   : > { %v6156_v56 = vor.u32 %v6071_v8, %v6055_v11  ;;  %v6160_v41 = vshrl.u32 %v6924_v27, %v5922_v31  ;;  %v1491_v15 = vadd.s32 3, %v6103_v28  ;;  %vm1639_vm12 = vcmp.lt.s32.totalorder %v5074_v18, 2 }
 0x215   : > { %v1483_v23 = vsel %vm1400_vm8, %v1482_v40, %v1481_v37  ;;  %v1570_v50 = vclz %v3995_v26  ;;  %v1642_v38 = vsel %vm1638_vm13, %v1622_v34, %v1625_v42  ;;  %v1653_v24 = vsel %vm1639_vm12, %v1650_v29, %v1652_v0  ;;  %v7054_v26 = vld [vmem:[#allocation53_spill] sm:$0xff] }
 0x216   : > { %v1486_v11 = vsel %vm6077_vm7, %v7027_v12, %v1483_v23  ;;  %v1644_v8 = vsel %vm1640_vm14, %v1628_v62, %v1643_v25  ;;  %v1649_v47 = vsel %vm1639_vm12, %v1646_v45, %v1648_v35  ;;  %v1654_v16 = vshll.u32 %v1614_v17, 8 }
 0x217   : > { %4245 = vcosq.f32 %v1486_v11  ;;  %vm1504_vm1 = vcmp.lt.s32.totalorder %v7035_v48, 0  ;;  %v3996_v6 = vadd.s32 4294967294, %v1570_v50  ;;  %v1588_v34 = vsub.s32 4, %v6109_v52 }
 0x218   : > { %4247 = vsinq.f32 %v1486_v11  ;;  %v6179_v42 = vmul.u32.u64.low %v1654_v16, %v1653_v24  ;;  %v6180_v60 = vmul.u32.u64.high %v1654_v16, %v1653_v24, %v6179_v42  ;;  %v1710_v63 = vand.u32 2147483647, %v7051_v46 }
 0x219   : > { %vm3997_vm7 = vcmp.lt.s32.totalorder %v3996_v6, 0  ;;  %v1645_v62 = vsel %vm1639_vm12, %v1642_v38, %v1644_v8  ;;  %v6185_v59 = vmul.u32.u64.low %v1654_v16, %v1649_v47  ;;  %v6186_v58 = vmul.u32.u64.high %v1654_v16, %v1649_v47, %v6185_v59 }
 0x21a   : > { %v6189_v17 = vand.u32 3, %v1491_v15  ;;  %v6192_v25 = vand.u32 3, %v6103_v28  ;;  %vm6196_vm8 = vcmp.le.f32.partialorder %v1502_v33, 0.7853982  ;;  %v1573_v4 = vsel %vm3997_vm7, 0, %v3996_v6 }
 0x21b   : > { %v1558_v18 = vadd.s32 %v6010_v22, %v6006_v3  ;;  %v1574_v37 = vsub.s32 32, %v1573_v4  ;;  %v1578_v10 = vsub.s32 4294967266, %v1573_v4  ;;  %v1589_v14 = vsel %vm1504_vm1, %v1588_v34, %v6109_v52 }
 0x21c   : > { %v1661_v29 = vmul.u32 %v1654_v16, %v1645_v62  ;;  %vm1663_vm3 = vc.u32 %v6180_v60, %v6185_v59  ;;  %v1717_v33 = vand.u32 8388607, %v1710_v63  ;;  %v1728_v28 = vshrl.u32 %v6953_v55, %v4936_v32 }
 0x21d   : > { %v1575_v0 = vshll.u32 %v6123_v19, %v1573_v4  ;;  %v1576_v40 = vshrl.u32 %v1558_v18, %v1574_v37  ;;  %v1579_v3 = vadd.s32 127, %v1578_v10  ;;  %v1664_v22 = vadd.s32 1, %v6186_v58  ;;  %v7055_v18 = vld [vmem:[#allocation52_spill] sm:$0xff] }
 0x21e   : > { %v1727_v45 = vshll.u32 %v6956_v51, %v7054_v26  ;;  %v1731_v52 = vshrl.u32 %v6959_v7, %v4936_v32  ;;  %v1733_v35 = vshll.u32 %v6959_v7, %v7054_v26  ;;  %v1734_v15 = vshrl.u32 %v6926_v39, %v4936_v32 }
 0x21f   : > { %vm1494_vm9 = vcmp.eq.s32.totalorder %v6189_v17, 0  ;;  %v1577_v23 = vor.u32 %v1576_v40, %v1575_v0  ;;  %v1580_v19 = vshll.u32 %v1579_v3, 23  ;;  %v1665_v50 = vsel %vm1663_vm3, %v1664_v22, %v6186_v58  ;;  %v7056_v3 = vld [vmem:[#allocation13_spill] sm:$0xff] }
 0x220   : > { %v1730_v38 = vshll.u32 %v6953_v55, %v7054_v26  ;;  %vm1493_vm11 = vcmp.lt.s32.totalorder %v6189_v17, 2  ;;  %vm1497_vm4 = vcmp.eq.s32.totalorder %v6189_v17, 2  ;;  %vm3147_vm5 = vcmp.lt.s32.totalorder %v6192_v25, 2 }
 0x221   : > { %v1666_v24 = vadd.s32 %v1665_v50, %v1661_v29  ;;  %v1729_v11 = vor.u32 %v1728_v28, %v1727_v45  ;;  %v1735_v8 = vor.u32 %v1734_v15, %v1733_v35  ;;  %vm1490_vm15 = vweird.f32 %v7027_v12  ;;  %v7058_v35 = vld [vmem:[#allocation55_spill] sm:$0xff] }
 0x222   : > { %vm3148_vm0 = vcmp.eq.s32.totalorder %v6192_v25, 0  ;;  %vm3151_vm2 = vcmp.eq.s32.totalorder %v6192_v25, 2  ;;  %v1581_v47 = vor.u32 4788187, %v1580_v19  ;;  %v1732_v16 = vor.u32 %v1731_v52, %v1730_v38  ;;  %v7057_v52 = vld [vmem:[#allocation14_spill] sm:$0xff] }
 0x223   : > { %v1591_v6 = vsel %vm6196_vm8, 0, %v1589_v14  ;;  %v1667_v34 = vadd.s32 536870912, %v1666_v24  ;;  %v1718_v42 = vor.u32 8388608, %v1717_v33  ;;  %v1726_v62 = vshrl.u32 %v6956_v51, %v4936_v32 }
 0x224   : > { %v1582_v58 = vand.u32 2147483647, %v1581_v47  ;;  %v1584_v4 = vcvt.s32.f32 %v1577_v23  ;;  %vm1742_vm13 = vcmp.lt.s32.totalorder %v7055_v18, 1  ;;  %vm1743_vm14 = vcmp.lt.s32.totalorder %v7055_v18, 2  ;;  %v4246_v37 = vpop.eup %4245 }
 0x225   : > { %v1668_v10 = vshrl.u32 %v1667_v34, 30  ;;  %vm1744_vm12 = vcmp.lt.s32.totalorder %v7055_v18, 3  ;;  %v1746_v29 = vsel %vm1742_vm13, %v1726_v62, %v1729_v11  ;;  %v1747_v28 = vsel %vm1745_vm10, %v1735_v8, 2102212464  ;;  %v4248_v14 = vpop.eup %4247 }
 0x226   : > { %v1498_v0 = vxor.u32 2147483648, %v4246_v37  ;;  %v1585_v33 = vmul.f32 %v1584_v4, %v1582_v58  ;;  %v1750_v40 = vsel %vm1742_vm13, %v1729_v11, %v1732_v16  ;;  %v1752_v32 = vsel %vm1744_vm12, %v1735_v8, %v7056_v3 }
 0x227   : > { %v1495_v22 = vxor.u32 2147483648, %v4248_v14  ;;  %v1669_v26 = vshll.u32 %v1668_v10, 30  ;;  %v1754_v45 = vsel %vm1742_vm13, %v1732_v16, %v1735_v8  ;;  %v1756_v15 = vsel %vm1744_vm12, %v7058_v35, %v7057_v52 }
 0x228   : > { %v1499_v23 = vsel %vm1497_vm4, %v1498_v0, %v4248_v14  ;;  %v3153_v19 = vsel %vm3151_vm2, %v1498_v0, %v4248_v14  ;;  %v1586_v50 = vxor.u32 2147483648, %v1585_v33  ;;  %v1748_v38 = vsel %vm1744_vm12, %v1732_v16, %v1747_v28 }
 0x229   : > { %v1496_v47 = vsel %vm1494_vm9, %v4246_v37, %v1495_v22  ;;  %v3150_v11 = vsel %vm3148_vm0, %v4246_v37, %v1495_v22  ;;  %v6251_v34 = vsub.s32 %v1666_v24, %v1669_v26  ;;  %v1758_v8 = vshll.u32 %v1718_v42, 8 }
 0x22a   : > { %v1500_v62 = vsel %vm1493_vm11, %v1496_v47, %v1499_v23  ;;  %v3154_v58 = vsel %vm3147_vm5, %v3150_v11, %v3153_v19  ;;  %v1587_v4 = vsel %vm1504_vm1, %v1586_v50, %v1585_v33  ;;  %v1757_v16 = vsel %vm1743_vm14, %v1754_v45, %v1756_v15 }
 0x22b   : > { %v6263_v28 = vsel %vm1490_vm15, nan, %v1500_v62  ;;  %v3155_v24 = vsel %vm1490_vm15, nan, %v3154_v58  ;;  %v1590_v17 = vsel %vm6196_vm8, %v7035_v48, %v1587_v4  ;;  %v1672_v25 = vsub.s32 0, %v6251_v34 }
 0x22c   : > { %v1845_v42 = vor.u32 %v6160_v41, %v6064_v5  ;;  %3808 = vrot.lane.b32.xlu1 %v3155_v24, %s4344_s28  ;;  %4249 = vcosq.f32 %v1590_v17  ;;  %v1595_v37 = vadd.s32 3, %v1591_v6  ;;  %v1753_v14 = vsel %vm1743_vm14, %v1750_v40, %v1752_v32  ;;  %v7059_v40 = vld [vmem:[#allocation20_spill] sm:$0xff] }
 0x22d   : > { %4251 = vsinq.f32 %v1590_v17  ;;  %v3999_v12 = vmin.u32 %v1672_v25, %v6251_v34  ;;  %v6277_v0 = vmul.u32.u64.low %v1758_v8, %v1757_v16  ;;  %v6278_v33 = vmul.u32.u64.high %v1758_v8, %v1757_v16, %v6277_v0 }
 0x22e   : > { %vm1849_vm10 = vcmp.lt.s32.totalorder %v5914_v44, 4  ;;  %v6281_v61 = vand.u32 3, %v1591_v6  ;;  %v1692_v3 = vsub.s32 4, %v1668_v10  ;;  %v1749_v5 = vsel %vm1743_vm14, %v1746_v29, %v1748_v38 }
 0x22f   : > { %v1674_v41 = vclz %v3999_v12  ;;  %v6285_v22 = vmul.u32.u64.low %v1758_v8, %v1753_v14  ;;  %v6286_v26 = vmul.u32.u64.high %v1758_v8, %v1753_v14, %v6285_v22  ;;  %v1814_v32 = vand.u32 2147483647, %v7059_v40 }
 0x230   : > { %v6293_v45 = vsel %vm1849_vm10, %v6156_v56, 920167782  ;;  %v1859_v6 = vsel %vm1849_vm10, %v1845_v42, 1326507024  ;;  %v6298_v52 = vshrl.u32 %v5804_v21, 5  ;;  %v6301_v18 = vand.u32 31, %v5804_v21 }
 0x231   : > { %v1596_v29 = vand.u32 3, %v1595_v37  ;;  %vm6305_vm1 = vcmp.le.f32.partialorder %v1606_v20, 0.7853982  ;;  %vm1608_vm7 = vcmp.lt.s32.totalorder %v7047_v9, 0  ;;  %v4000_v15 = vadd.s32 4294967294, %v1674_v41 }
 0x232   : > { %v1662_v23 = vadd.s32 %v6185_v59, %v6180_v60  ;;  %v1693_v19 = vsel %vm1608_vm7, %v1692_v3, %v1668_v10  ;;  %v1765_v50 = vmul.u32 %v1758_v8, %v1749_v5  ;;  %vm1767_vm8 = vc.u32 %v6278_v33, %v6285_v22 }
 0x233   : > { %vm3254_vm3 = vcmp.eq.s32.totalorder %v6281_v61, 2  ;;  %vm4001_vm9 = vcmp.lt.s32.totalorder %v4000_v15, 0  ;;  %v1768_v21 = vadd.s32 1, %v6286_v26  ;;  %v6320_v20 = vand.u32 8388607, %v1814_v32 }
 0x234   : > { %v1835_v38 = vshrl.u32 %v6959_v7, %v5922_v31  ;;  %vm3251_vm11 = vcmp.eq.s32.totalorder %v6281_v61, 0  ;;  %v1677_v60 = vsel %vm4001_vm9, 0, %v4000_v15  ;;  %v1832_v59 = vshrl.u32 %v6953_v55, %v5922_v31 }
 0x235   : > { %v1834_v10 = vshll.u32 %v6953_v55, %v5910_v2  ;;  %v1838_v47 = vshrl.u32 %v6926_v39, %v5922_v31  ;;  %vm3250_vm4 = vcmp.lt.s32.totalorder %v6281_v61, 2  ;;  %v1678_v11 = vsub.s32 32, %v1677_v60 }
 0x236   : > { %v1682_v8 = vsub.s32 4294967266, %v1677_v60  ;;  %v1769_v62 = vsel %vm1767_vm8, %v1768_v21, %v6286_v26  ;;  %v1837_v58 = vshll.u32 %v6959_v7, %v5910_v2  ;;  %vm1594_vm5 = vweird.f32 %v7035_v48 }
 0x237   : > { %vm1597_vm15 = vcmp.lt.s32.totalorder %v1596_v29, 2  ;;  %v1679_v4 = vshll.u32 %v6251_v34, %v1677_v60  ;;  %v1770_v16 = vadd.s32 %v1769_v62, %v1765_v50  ;;  %v1831_v24 = vshll.u32 %v6956_v51, %v5910_v2 }
 0x238   : > { %v1680_v17 = vshrl.u32 %v1662_v23, %v1678_v11  ;;  %v1683_v25 = vadd.s32 127, %v1682_v8  ;;  %v1836_v42 = vor.u32 %v1835_v38, %v1834_v10  ;;  %v1839_v37 = vor.u32 %v1838_v47, %v1837_v58 }
 0x239   : > { %vm1598_vm0 = vcmp.eq.s32.totalorder %v1596_v29, 0  ;;  %vm1601_vm2 = vcmp.eq.s32.totalorder %v1596_v29, 2  ;;  %v1695_v14 = vsel %vm6305_vm1, 0, %v1693_v19  ;;  %v1771_v12 = vadd.s32 536870912, %v1770_v16  ;;  %v4250_v0 = vpop.eup %4249 }
 0x23a   : > { %v1681_v3 = vor.u32 %v1680_v17, %v1679_v4  ;;  %v1684_v5 = vshll.u32 %v1683_v25, 23  ;;  %v1822_v41 = vor.u32 8388608, %v6320_v20  ;;  %v1833_v34 = vor.u32 %v1832_v59, %v1831_v24  ;;  %v4252_v26 = vpop.eup %4251 }
 0x23b   : > { %v1602_v15 = vxor.u32 2147483648, %v4250_v0  ;;  %v1772_v50 = vshrl.u32 %v1771_v12, 30  ;;  %vm1846_vm13 = vcmp.lt.s32.totalorder %v5914_v44, 1  ;;  %vm1847_vm14 = vcmp.lt.s32.totalorder %v5914_v44, 2 }
 0x23c   : > { %v1599_v2 = vxor.u32 2147483648, %v4252_v26  ;;  %v1685_v23 = vor.u32 4788187, %v1684_v5  ;;  %vm1848_vm12 = vcmp.lt.s32.totalorder %v5914_v44, 3  ;;  %v1858_v19 = vsel %vm1846_vm13, %v1836_v42, %v1839_v37 }
 0x23d   : > { %v3256_v21 = vsel %vm3254_vm3, %v1602_v15, %v4252_v26  ;;  %v1603_v20 = vsel %vm1601_vm2, %v1602_v15, %v4252_v26  ;;  %v1688_v38 = vcvt.s32.f32 %v1681_v3  ;;  %v1773_v60 = vshll.u32 %v1772_v50, 30 }
 0x23e   : > { %v3253_v59 = vsel %vm3251_vm11, %v4250_v0, %v1599_v2  ;;  %v1600_v10 = vsel %vm1598_vm0, %v4250_v0, %v1599_v2  ;;  %v1686_v47 = vand.u32 2147483647, %v1685_v23  ;;  %v1860_v11 = vsel %vm1848_vm12, %v6156_v56, %v1859_v6 }
 0x23f   : > { %v3257_v8 = vsel %vm3250_vm4, %v3253_v59, %v3256_v21  ;;  %v1604_v62 = vsel %vm1597_vm15, %v1600_v10, %v1603_v20  ;;  %v6359_v58 = vsub.s32 %v1770_v16, %v1773_v60  ;;  %v1854_v4 = vsel %vm1846_vm13, %v1833_v34, %v1836_v42 }
 0x240   : > { %v3258_v24 = vsel %vm1594_vm5, nan, %v3257_v8  ;;  %v6367_v17 = vsel %vm1594_vm5, nan, %v1604_v62  ;;  %v1689_v25 = vmul.f32 %v1688_v38, %v1686_v47  ;;  %v1856_v56 = vsel %vm1848_vm12, %v1839_v37, %v6293_v45 }
 0x241   : > { %v6373_v61 = vsub.s32 32, %v6301_v18  ;;  %v6377_v6 = vshll.u32 %v6926_v39, %v6301_v18  ;;  %3810 = vrot.lane.b32.xlu0 %v3258_v24, %s4344_s28  ;;  %v1776_v29 = vsub.s32 0, %v6359_v58  ;;  %v1861_v48 = vsel %vm1847_vm14, %v1858_v19, %v1860_v11 }
 0x242   : > { %v1690_v16 = vxor.u32 2147483648, %v1689_v25  ;;  %v1830_v12 = vshrl.u32 %v6956_v51, %v5922_v31  ;;  %v1851_v45 = vsel %vm1849_vm10, %v1839_v37, 2102212464  ;;  %v1862_v0 = vshll.u32 %v1822_v41, 8 }
 0x243   : > { %v6389_v3 = vshll.u32 %v6920_v30, %v6301_v18  ;;  %v1699_v5 = vadd.s32 3, %v1695_v14  ;;  %v4003_v26 = vmin.u32 %v1776_v29, %v6359_v58  ;;  %v1857_v15 = vsel %vm1847_vm14, %v1854_v4, %v1856_v56  ;;  %v7065_v4 = vld [vmem:[#allocation30_spill] sm:$0xff] }
 0x244   : > { %v1691_v2 = vsel %vm1608_vm7, %v1690_v16, %v1689_v25  ;;  %v1850_v31 = vsel %vm1846_vm13, %v1830_v12, %v1833_v34  ;;  %v6398_v23 = vmul.u32.u64.low %v1862_v0, %v1861_v48  ;;  %v6399_v19 = vmul.u32.u64.high %v1862_v0, %v1861_v48, %v6398_v23 }
 0x245   : > { %v1694_v37 = vsel %vm6305_vm1, %v7047_v9, %v1691_v2  ;;  %v1778_v41 = vclz %v4003_v26  ;;  %v1796_v21 = vsub.s32 4, %v1772_v50  ;;  %v1852_v20 = vsel %vm1848_vm12, %v1836_v42, %v1851_v45 }
 0x246   : > { %v6408_v38 = vshrl.u32 %v6920_v30, %v6373_v61  ;;  %4253 = vcosq.f32 %v1694_v37  ;;  %v6410_v60 = vmul.u32.u64.low %v1862_v0, %v1857_v15  ;;  %v6411_v59 = vmul.u32.u64.high %v1862_v0, %v1857_v15, %v6410_v60 }
 0x247   : > { %v6416_v34 = vshrl.u32 %v6924_v27, %v6373_v61  ;;  %4255 = vsinq.f32 %v1694_v37  ;;  %vm6420_vm10 = vcmp.le.f32.partialorder %v1710_v63, 0.7853982  ;;  %v4004_v42 = vadd.s32 4294967294, %v1778_v41 }
 0x248   : > { %v6424_v10 = vand.u32 3, %v1699_v5  ;;  %v6426_v30 = vand.u32 3, %v1695_v14  ;;  %vm1712_vm1 = vcmp.lt.s32.totalorder %v7051_v46, 0  ;;  %v1853_v47 = vsel %vm1847_vm14, %v1850_v31, %v1852_v20  ;;  %v7064_v14 = vld [vmem:[#allocation18_spill] sm:$0xff] }
 0x249   : > { %v1766_v27 = vadd.s32 %v6285_v22, %v6278_v33  ;;  %vm4005_vm7 = vcmp.lt.s32.totalorder %v4004_v42, 0  ;;  %v1797_v63 = vsel %vm1712_vm1, %v1796_v21, %v1772_v50  ;;  %vm1871_vm8 = vc.u32 %v6399_v19, %v6410_v60  ;;  %v7066_v50 = vld [vmem:[#allocation31_spill] sm:$0xff] }
 0x24a   : > { %v1781_v11 = vsel %vm4005_vm7, 0, %v4004_v42  ;;  %v1872_v8 = vadd.s32 1, %v6411_v59  ;;  %v1918_v62 = vand.u32 2147483647, %v7064_v14  ;;  %v1939_v24 = vshrl.u32 %v6959_v7, %v7065_v4 }
 0x24b   : > { %v1782_v44 = vsub.s32 32, %v1781_v11  ;;  %v1786_v25 = vsub.s32 4294967266, %v1781_v11  ;;  %v1869_v56 = vmul.u32 %v1862_v0, %v1853_v47  ;;  %v1936_v33 = vshrl.u32 %v6953_v55, %v7065_v4 }
 0x24c   : > { %v1873_v22 = vsel %vm1871_vm8, %v1872_v8, %v6411_v59  ;;  %v1938_v29 = vshll.u32 %v6953_v55, %v7066_v50  ;;  %v1941_v48 = vshll.u32 %v6959_v7, %v7066_v50  ;;  %v1942_v16 = vshrl.u32 %v6926_v39, %v7065_v4 }
 0x24d   : > { %vm3357_vm3 = vcmp.eq.s32.totalorder %v6426_v30, 2  ;;  %v1783_v12 = vshll.u32 %v6359_v58, %v1781_v11  ;;  %v1784_v45 = vshrl.u32 %v1766_v27, %v1782_v44  ;;  %v1787_v0 = vadd.s32 127, %v1786_v25 }
 0x24e   : > { %v1874_v5 = vadd.s32 %v1873_v22, %v1869_v56  ;;  %vm3354_vm9 = vcmp.eq.s32.totalorder %v6426_v30, 0  ;;  %v1925_v26 = vand.u32 8388607, %v1918_v62  ;;  %v1935_v15 = vshll.u32 %v6956_v51, %v7066_v50 }
 0x24f   : > { %v1940_v2 = vor.u32 %v1939_v24, %v1938_v29  ;;  %v1943_v31 = vor.u32 %v1942_v16, %v1941_v48  ;;  %vm1701_vm11 = vcmp.lt.s32.totalorder %v6424_v10, 2  ;;  %vm1702_vm4 = vcmp.eq.s32.totalorder %v6424_v10, 0 }
 0x250   : > { %vm3353_vm5 = vcmp.lt.s32.totalorder %v6426_v30, 2  ;;  %v1785_v58 = vor.u32 %v1784_v45, %v1783_v12  ;;  %v1788_v23 = vshll.u32 %v1787_v0, 23  ;;  %v1875_v37 = vadd.s32 536870912, %v1874_v5 }
 0x251   : > { %vm1698_vm15 = vweird.f32 %v7047_v9  ;;  %vm1705_vm0 = vcmp.eq.s32.totalorder %v6424_v10, 2  ;;  %v1799_v41 = vsel %vm6420_vm10, 0, %v1797_v63  ;;  %v1934_v21 = vshrl.u32 %v6956_v51, %v7065_v4 }
 0x252   : > { %v1937_v20 = vor.u32 %v1936_v33, %v1935_v15  ;;  %v1789_v59 = vor.u32 4788187, %v1788_v23  ;;  %v6466_v42 = vshrl.u32 %v1875_v37, 30  ;;  %vm1950_vm2 = vcmp.lt.s32.totalorder %v5394_v49, 1 }
 0x253   : > { %vm1952_vm13 = vcmp.lt.s32.totalorder %v5394_v49, 3  ;;  %v1926_v47 = vor.u32 8388608, %v1925_v26  ;;  %vm1951_vm14 = vcmp.lt.s32.totalorder %v5394_v49, 2  ;;  %v1962_v27 = vsel %vm1950_vm2, %v1940_v2, %v1943_v31  ;;  %v4254_v11 = vpop.eup %4253 }
 0x254   : > { %v1964_v63 = vsel %vm1952_vm13, %v5788_v54, %v6051_v43  ;;  %v1790_v8 = vand.u32 2147483647, %v1789_v59  ;;  %v1792_v4 = vcvt.s32.f32 %v1785_v58  ;;  %v1877_v24 = vshll.u32 %v6466_v42, 30  ;;  %v4256_v25 = vpop.eup %4255 }
 0x255   : > { %v1955_v44 = vsel %vm1953_vm6, %v1943_v31, 2102212464  ;;  %v1706_v56 = vxor.u32 2147483648, %v4254_v11  ;;  %v1954_v33 = vsel %vm1950_vm2, %v1934_v21, %v1937_v20  ;;  %v1958_v22 = vsel %vm1950_vm2, %v1937_v20, %v1940_v2 }
 0x256   : > { %v1960_v50 = vsel %vm1952_vm13, %v1943_v31, %v6038_v36  ;;  %v1703_v29 = vxor.u32 2147483648, %v4256_v25  ;;  %v1793_v48 = vmul.f32 %v1792_v4, %v1790_v8  ;;  %v6481_v16 = vsub.s32 %v1874_v5, %v1877_v24 }
 0x257   : > { %v1965_v54 = vsel %vm1951_vm14, %v1962_v27, %v1964_v63  ;;  %v1707_v43 = vsel %vm1705_vm0, %v1706_v56, %v4256_v25  ;;  %v3359_v12 = vsel %vm3357_vm3, %v1706_v56, %v4256_v25  ;;  %v1956_v45 = vsel %vm1952_vm13, %v1940_v2, %v1955_v44 }
 0x258   : > { %v1966_v0 = vshll.u32 %v1926_v47, 8  ;;  %v1704_v36 = vsel %vm1702_vm4, %v4254_v11, %v1703_v29  ;;  %v3356_v5 = vsel %vm3354_vm9, %v4254_v11, %v1703_v29  ;;  %v1794_v26 = vxor.u32 2147483648, %v1793_v48  ;;  %v7067_v11 = vld [vmem:[#allocation21_spill] sm:$0xff] }
 0x259   : > { %v1880_v15 = vsub.s32 0, %v6481_v16  ;;  %v1708_v31 = vsel %vm1701_vm11, %v1704_v36, %v1707_v43  ;;  %v3360_v58 = vsel %vm3353_vm5, %v3356_v5, %v3359_v12  ;;  %v6514_v10 = vor.u32 %v6408_v38, %v6377_v6 }
 0x25a   : > { %v6500_v23 = vmul.u32.u64.low %v1966_v0, %v1965_v54  ;;  %v6501_v37 = vmul.u32.u64.high %v1966_v0, %v1965_v54, %v6500_v23  ;;  %v6505_v2 = vsel %vm1698_vm15, nan, %v1708_v31  ;;  %v3361_v21 = vsel %vm1698_vm15, nan, %v3360_v58 }
 0x25b   : > { %v1795_v20 = vsel %vm1712_vm1, %v1794_v26, %v1793_v48  ;;  %v4007_v59 = vmin.u32 %v1880_v15, %v6481_v16  ;;  %v2053_v30 = vor.u32 %v6416_v34, %v6389_v3  ;;  %3812 = vrot.lane.b32.xlu1 %v3361_v21, %s4344_s28  ;;  %v1961_v9 = vsel %vm1951_vm14, %v1958_v22, %v1960_v50 }
 0x25c   : > { %v1798_v47 = vsel %vm6420_vm10, %v7051_v46, %v1795_v20  ;;  %v1803_v27 = vadd.s32 3, %v1799_v41  ;;  %vm2057_vm6 = vcmp.lt.s32.totalorder %v6298_v52, 4  ;;  %v1957_v6 = vsel %vm1951_vm14, %v1954_v33, %v1956_v45 }
 0x25d   : > { %4257 = vcosq.f32 %v1798_v47  ;;  %v1882_v63 = vclz %v4007_v59  ;;  %v6527_v3 = vmul.u32.u64.low %v1966_v0, %v1961_v9  ;;  %v6528_v34 = vmul.u32.u64.high %v1966_v0, %v1961_v9, %v6527_v3 }
 0x25e   : > { %4259 = vsinq.f32 %v1798_v47  ;;  %v2022_v35 = vand.u32 2147483647, %v7067_v11  ;;  %v6535_v8 = vsel %vm2057_vm6, %v6514_v10, 920167782  ;;  %v2067_v4 = vsel %vm2057_vm6, %v2053_v30, 1326507024 }
 0x25f   : > { %v4008_v38 = vadd.s32 4294967294, %v1882_v63  ;;  %v6539_v24 = vand.u32 3, %v1799_v41  ;;  %vm1816_vm12 = vcmp.lt.s32.totalorder %v7059_v40, 0  ;;  %v6542_v49 = vand.u32 3, %v1803_v27  ;;  %v6551_v41 = vpop.permute.xlu0 %3790 }
 0x260   : > { %v1870_v44 = vadd.s32 %v6410_v60, %v6399_v19  ;;  %v1900_v25 = vsub.s32 4, %v6466_v42  ;;  %v1973_v33 = vmul.u32 %v1966_v0, %v1957_v6  ;;  %vm1975_vm1 = vc.u32 %v6501_v37, %v6527_v3 }
 0x261   : > { %vm4009_vm10 = vcmp.lt.s32.totalorder %v4008_v38, 0  ;;  %v2043_v22 = vshrl.u32 %v6959_v7, %v6373_v61  ;;  %v1976_v48 = vadd.s32 1, %v6528_v34  ;;  %v6556_v19 = vand.u32 8388607, %v2022_v35 }
 0x262   : > { %v1885_v56 = vsel %vm4009_vm10, 0, %v4008_v38  ;;  %vm3460_vm7 = vcmp.eq.s32.totalorder %v6539_v24, 2  ;;  %v2040_v60 = vshrl.u32 %v6953_v55, %v6373_v61  ;;  %v2042_v54 = vshll.u32 %v6953_v55, %v6301_v18 }
 0x263   : > { %v1886_v50 = vsub.s32 32, %v1885_v56  ;;  %v1890_v29 = vsub.s32 4294967266, %v1885_v56  ;;  %v2045_v43 = vshll.u32 %v6959_v7, %v6301_v18  ;;  %v2046_v12 = vshrl.u32 %v6926_v39, %v6373_v61  ;;  %v3795_v21 = vpop.permute.xlu0 %3794 }
 0x264   : > { %vm3457_vm8 = vcmp.eq.s32.totalorder %v6539_v24, 0  ;;  %v1887_v45 = vshll.u32 %v6481_v16, %v1885_v56  ;;  %v1977_v5 = vsel %vm1975_vm1, %v1976_v48, %v6528_v34  ;;  %vm3456_vm3 = vcmp.lt.s32.totalorder %v6539_v24, 2 }
 0x265   : > { %v1888_v0 = vshrl.u32 %v1870_v44, %v1886_v50  ;;  %v1891_v36 = vadd.s32 127, %v1890_v29  ;;  %v1978_v55 = vadd.s32 %v1977_v5, %v1973_v33  ;;  %v2039_v7 = vshll.u32 %v6956_v51, %v6301_v18  ;;  %v3793_v18 = vpop.permute.xlu1 %3792  ;;  %v7070_v50 = vld [vmem:[#allocation5_spill] sm:$0xff] }
 0x266   : > { %v6577_v39 = vor.u32 %v2043_v22, %v2042_v54  ;;  %v2047_v26 = vor.u32 %v2046_v12, %v2045_v43  ;;  %vm1802_vm9 = vweird.f32 %v7051_v46  ;;  %vm1805_vm11 = vcmp.lt.s32.totalorder %v6542_v49, 2 }
 0x267   : > { %vm1806_vm4 = vcmp.eq.s32.totalorder %v6542_v49, 0  ;;  %v1889_v16 = vor.u32 %v1888_v0, %v1887_v45  ;;  %v1892_v15 = vshll.u32 %v1891_v36, 23  ;;  %vm1809_vm5 = vcmp.eq.s32.totalorder %v6542_v49, 2  ;;  %v3799_v54 = vpop.permute.xlu0 %3798 }
 0x268   : > { %v1901_v31 = vsel %vm1816_vm12, %v1900_v25, %v6466_v42  ;;  %v1979_v58 = vadd.s32 536870912, %v1978_v55  ;;  %v2041_v23 = vor.u32 %v2040_v60, %v2039_v7  ;;  %vm6590_vm15 = vcmp.le.f32.partialorder %v1814_v32, 0.7853982 }
 0x269   : > { %v1893_v59 = vor.u32 4788187, %v1892_v15  ;;  %v2030_v30 = vor.u32 8388608, %v6556_v19  ;;  %vm2054_vm0 = vcmp.lt.s32.totalorder %v6298_v52, 1  ;;  %vm2056_vm2 = vcmp.lt.s32.totalorder %v6298_v52, 3  ;;  %v3797_v33 = vpop.permute.xlu1 %3796 }
 0x26a   : > { %v4258_v42 = vpop.eup %4257  ;;  %v6597_v47 = vshrl.u32 %v1979_v58, 30  ;;  %vm2055_vm13 = vcmp.lt.s32.totalorder %v6298_v52, 2  ;;  %v2066_v9 = vsel %vm2054_vm0, %v6577_v39, %v2047_v26  ;;  %v2068_v32 = vsel %vm2056_vm2, %v6514_v10, %v2067_v4 }
 0x26b   : > { %v4260_v27 = vpop.eup %4259  ;;  %v1810_v63 = vxor.u32 2147483648, %v4258_v42  ;;  %v1894_v6 = vand.u32 2147483647, %v1893_v59  ;;  %v1896_v38 = vcvt.s32.f32 %v1889_v16  ;;  %vm3838_vm14 = vcmask 523264  }
 0x26c   : > { %v1807_v34 = vxor.u32 2147483648, %v4260_v27  ;;  %v1981_v44 = vshll.u32 %v6597_v47, 30  ;;  %v2062_v25 = vsel %vm2054_vm0, %v2041_v23, %v6577_v39  ;;  %v2064_v56 = vsel %vm2056_vm2, %v2047_v26, %v6535_v8 }
 0x26d   : > { %v3462_v10 = vsel %vm3460_vm7, %v1810_v63, %v4260_v27  ;;  %v1811_v4 = vsel %vm1809_vm5, %v1810_v63, %v4260_v27  ;;  %v1897_v22 = vmul.f32 %v1896_v38, %v1894_v6  ;;  %v3840_v29 = vsel %vm3838_vm14, %v7070_v50, %v3793_v18  ;;  %v3801_v59 = vpop.permute.xlu1 %3800  ;;  %v7072_v63 = vld [vmem:[#allocation15_spill] sm:$0xff] }
 0x26e   : > { %v3459_v48 = vsel %vm3457_vm8, %v4258_v42, %v1807_v34  ;;  %v1808_v19 = vsel %vm1806_vm4, %v4258_v42, %v1807_v34  ;;  %v6623_v60 = vsub.s32 %v1978_v55, %v1981_v44  ;;  %v2069_v8 = vsel %vm2055_vm13, %v2066_v9, %v2068_v32  ;;  %3856 = vst [vmem:[%s6627_s3 + $0x8] sm:$0xff] %v3840_v29  ;;  %v3803_v9 = vpop.permute.xlu0 %3802  ;;  %v7073_v34 = vld [vmem:[#allocation22_spill] sm:$0xff]  ;;  %v7074_v44 = vld [vmem:[#allocation7_spill] sm:$0xff] }
 0x26f   : > { %v3463_v43 = vsel %vm3456_vm3, %v3459_v48, %v3462_v10  ;;  %v1812_v12 = vsel %vm1805_vm11, %v1808_v19, %v1811_v4  ;;  %v1898_v45 = vxor.u32 2147483648, %v1897_v22  ;;  %v2070_v0 = vshll.u32 %v2030_v30, 8 }
 0x270   : > { %v3464_v36 = vsel %vm1802_vm9, nan, %v3463_v43  ;;  %v6638_v5 = vsel %vm1802_vm9, nan, %v1812_v12  ;;  %v1984_v55 = vsub.s32 0, %v6623_v60  ;;  %v2038_v7 = vshrl.u32 %v6956_v51, %v6373_v61  ;;  %v7071_v61 = vld [vmem:[#allocation25_spill] sm:$0xff] }
 0x271   : > { %3814 = vrot.lane.b32.xlu0 %v3464_v36, %s4344_s28  ;;  %v1899_v24 = vsel %vm1816_vm12, %v1898_v45, %v1897_v22  ;;  %v2059_v49 = vsel %vm2057_vm6, %v2047_v26, 2102212464  ;;  %v6648_v16 = vmul.u32.u64.low %v2070_v0, %v2069_v8  ;;  %v6649_v15 = vmul.u32.u64.high %v2070_v0, %v2069_v8, %v6648_v16 }
 0x272   : > { %v1902_v46 = vsel %vm6590_vm15, %v7059_v40, %v1899_v24  ;;  %v4011_v58 = vmin.u32 %v1984_v55, %v6623_v60  ;;  %v2065_v51 = vsel %vm2055_vm13, %v2062_v25, %v2064_v56  ;;  %v3839_v18 = vsel %vm3838_vm14, %v7071_v61, %v6551_v41 }
 0x273   : > { %4261 = vcosq.f32 %v1902_v46  ;;  %3855 = vst [vmem:[%s6627_s3] sm:$0xff] %v3839_v18  ;;  %v2058_v30 = vsel %vm2054_vm0, %v2038_v7, %v2041_v23  ;;  %v2060_v42 = vsel %vm2056_vm2, %v6577_v39, %v2059_v49  ;;  %v1903_v41 = vsel %vm6590_vm15, 0, %v1901_v31  ;;  %v3805_v25 = vpop.permute.xlu1 %3804 }
 0x274   : > { %4263 = vsinq.f32 %v1902_v46  ;;  %v1986_v26 = vclz %v4011_v58  ;;  %v6668_v32 = vmul.u32.u64.low %v2070_v0, %v2065_v51  ;;  %v6669_v27 = vmul.u32.u64.high %v2070_v0, %v2065_v51, %v6668_v32 }
 0x275   : > { %v3841_v6 = vsel %vm3838_vm14, %v7072_v63, %v3795_v21  ;;  %v3842_v23 = vsel %vm3838_vm14, %v7073_v34, %v3797_v33  ;;  %v3843_v39 = vsel %vm3838_vm14, %v5638_v1, %v3799_v54  ;;  %v3844_v20 = vsel %vm3838_vm14, %v7074_v44, %v3801_v59 }
 0x276   : > { %v4012_v38 = vadd.s32 4294967294, %v1986_v26  ;;  %3857 = vst [vmem:[%s6627_s3 + $0x10] sm:$0xff] %v3841_v6  ;;  %v2061_v31 = vsel %vm2055_vm13, %v2058_v30, %v2060_v42  ;;  %3858 = vst [vmem:[%s6627_s3 + $0x18] sm:$0xff] %v3842_v23  ;;  %v3845_v21 = vsel %vm3838_vm14, %v5882_v57, %v3803_v9  ;;  %vm2079_vm12 = vc.u32 %v6649_v15, %v6668_v32 }
 0x277   : > { %3859 = vst [vmem:[%s6627_s3 + $0x20] sm:$0xff] %v3843_v39  ;;  %3860 = vst [vmem:[%s6627_s3 + $0x28] sm:$0xff] %v3844_v20  ;;  %v1907_v1 = vadd.s32 3, %v1903_v41  ;;  %v2080_v33 = vadd.s32 1, %v6669_v27  ;;  %v3846_v52 = vsel %vm3838_vm14, %v6042_v13, %v3805_v25  ;;  %v1974_v10 = vadd.s32 %v6527_v3, %v6501_v37 }
 0x278   : > { %vm4013_vm6 = vcmp.lt.s32.totalorder %v4012_v38, 0  ;;  %3861 = vst [vmem:[%s6627_s3 + $0x30] sm:$0xff] %v3845_v21  ;;  %v2077_v50 = vmul.u32 %v2070_v0, %v2061_v31  ;;  %3862 = vst [vmem:[%s6627_s3 + $0x38] sm:$0xff] %v3846_v52  ;;  %v3558_v57 = vand.u32 3, %v1903_v41  ;;  %vm1906_vm11 = vweird.f32 %v7059_v40 }
 0x279   : > { %v1989_v56 = vsel %vm4013_vm6, 0, %v4012_v38  ;;  %v2081_v29 = vsel %vm2079_vm12, %v2080_v33, %v6669_v27  ;;  %v1908_v43 = vand.u32 3, %v1907_v1  ;;  %vm1920_vm4 = vcmp.lt.s32.totalorder %v7064_v14, 0 }
 0x27a   : > { %v1990_v4 = vsub.s32 32, %v1989_v56  ;;  %v1994_v22 = vsub.s32 4294967266, %v1989_v56  ;;  %v1991_v48 = vshll.u32 %v6623_v60, %v1989_v56  ;;  %v2082_v54 = vadd.s32 %v2081_v29, %v2077_v50 }
 0x27b   : > { %vm3559_vm10 = vcmp.lt.s32.totalorder %v3558_v57, 2  ;;  %vm1913_vm1 = vcmp.eq.s32.totalorder %v1908_v43, 2  ;;  %vm3560_vm7 = vcmp.eq.s32.totalorder %v3558_v57, 0  ;;  %vm3563_vm8 = vcmp.eq.s32.totalorder %v3558_v57, 2 }
 0x27c   : > { %v1992_v19 = vshrl.u32 %v1974_v10, %v1990_v4  ;;  %v1995_v8 = vadd.s32 127, %v1994_v22  ;;  %v2083_v36 = vadd.s32 536870912, %v2082_v54  ;;  %vm1909_vm3 = vcmp.lt.s32.totalorder %v1908_v43, 2 }
 0x27d   : > { %vm1910_vm9 = vcmp.eq.s32.totalorder %v1908_v43, 0  ;;  %v2004_v27 = vsub.s32 4, %v6597_v47  ;;  %vm1919_vm5 = vcmp.le.f32.partialorder %v1918_v62, 0.7853982  ;;  %v2078_v62 = vadd.s32 %v6668_v32, %v6649_v15 }
 0x27e   : > { %v1993_v12 = vor.u32 %v1992_v19, %v1991_v48  ;;  %v1996_v45 = vshll.u32 %v1995_v8, 23  ;;  %v6699_v37 = vshrl.u32 %v2083_v36, 30 }
 0x27f   : > { %v2005_v23 = vsel %vm1920_vm4, %v2004_v27, %v6597_v47 }
 0x280   : > { %v4262_v13 = vpop.eup %4261  ;;  %v1997_v55 = vor.u32 4788187, %v1996_v45  ;;  %v2000_v60 = vcvt.s32.f32 %v1993_v12  ;;  %v2085_v49 = vshll.u32 %v6699_v37, 30  ;;  %v2007_v20 = vsel %vm1919_vm5, 0, %v2005_v23 }
 0x281   : > { %v4264_v3 = vpop.eup %4263  ;;  %v1914_v0 = vxor.u32 2147483648, %v4262_v13  ;;  %v2011_v1 = vadd.s32 3, %v2007_v20  ;;  %v3661_v22 = vand.u32 3, %v2007_v20 }
 0x282   : > { %v1911_v7 = vxor.u32 2147483648, %v4264_v3  ;;  %v1998_v24 = vand.u32 2147483647, %v1997_v55  ;;  %v2086_v18 = vsub.s32 %v2082_v54, %v2085_v49 }
 0x283   : > { %v1915_v16 = vsel %vm1913_vm1, %v1914_v0, %v4264_v3  ;;  %v3565_v46 = vsel %vm3563_vm8, %v1914_v0, %v4264_v3  ;;  %v2012_v4 = vand.u32 3, %v2011_v1  ;;  %vm3663_vm2 = vcmp.eq.s32.totalorder %v3661_v22, 0 }
 0x284   : > { %v1912_v58 = vsel %vm1910_vm9, %v4262_v13, %v1911_v7  ;;  %v3562_v51 = vsel %vm3560_vm7, %v4262_v13, %v1911_v7  ;;  %v2001_v61 = vmul.f32 %v2000_v60, %v1998_v24  ;;  %v2088_v41 = vsub.s32 0, %v2086_v18 }
 0x285   : > { %v1916_v59 = vsel %vm1909_vm3, %v1912_v58, %v1915_v16  ;;  %v3566_v26 = vsel %vm3559_vm10, %v3562_v51, %v3565_v46  ;;  %v3807_v38 = vpop.permute.xlu0 %3806  ;;  %vm2017_vm0 = vcmp.eq.s32.totalorder %v2012_v4, 2  ;;  %vm3666_vm13 = vcmp.eq.s32.totalorder %v3661_v22, 2 }
 0x286   : > { %v6704_v30 = vsel %vm1906_vm11, nan, %v1916_v59  ;;  %v3567_v42 = vsel %vm1906_vm11, nan, %v3566_v26  ;;  %v2002_v9 = vxor.u32 2147483648, %v2001_v61  ;;  %v4015_v40 = vmin.u32 %v2088_v41, %v2086_v18 }
 0x287   : > { %3816 = vrot.lane.b32.xlu1 %v3567_v42, %s4344_s28  ;;  %v3847_v39 = vsel %vm3838_vm14, %v6139_v53, %v3807_v38  ;;  %vm2014_vm6 = vcmp.eq.s32.totalorder %v2012_v4, 0  ;;  %vm2013_vm12 = vcmp.lt.s32.totalorder %v2012_v4, 2  ;;  %vm3662_vm10 = vcmp.lt.s32.totalorder %v3661_v22, 2 }
 0x288   : > { %v2003_v63 = vsel %vm1920_vm4, %v2002_v9, %v2001_v61  ;;  %v2090_v34 = vclz %v4015_v40  ;;  %3863 = vst [vmem:[%s6627_s3 + $0x40] sm:$0xff] %v3847_v39  ;;  %vm2010_vm1 = vweird.f32 %v7064_v14  ;;  %vm2024_vm7 = vcmp.lt.s32.totalorder %v7067_v11, 0 }
 0x289   : > { %v2006_v6 = vsel %vm1919_vm5, %v7064_v14, %v2003_v63  ;;  %v2108_v0 = vsub.s32 4, %v6699_v37  ;;  %vm2023_vm8 = vcmp.le.f32.partialorder %v2022_v35, 0.7853982 }
 0x28a   : > { %4265 = vcosq.f32 %v2006_v6  ;;  %v4016_v44 = vadd.s32 4294967294, %v2090_v34 }
 0x28b   : > { %4267 = vsinq.f32 %v2006_v6  ;;  %v2109_v14 = vsel %vm2024_vm7, %v2108_v0, %v6699_v37 }
 0x28c   : > { %vm4017_vm15 = vcmp.lt.s32.totalorder %v4016_v44, 0  ;;  %v2111_v16 = vsel %vm2023_vm8, 0, %v2109_v14 }
 0x28d   : > { %v2093_v31 = vsel %vm4017_vm15, 0, %v4016_v44  ;;  %v2115_v46 = vadd.s32 3, %v2111_v16  ;;  %v3764_v51 = vand.u32 3, %v2111_v16 }
 0x28e   : > { %v2094_v21 = vsub.s32 32, %v2093_v31  ;;  %v2098_v25 = vsub.s32 4294967266, %v2093_v31  ;;  %v2095_v56 = vshll.u32 %v2086_v18, %v2093_v31 }
 0x28f   : > { %v2116_v58 = vand.u32 3, %v2115_v46  ;;  %vm3769_vm9 = vcmp.eq.s32.totalorder %v3764_v51, 2  ;;  %vm3766_vm4 = vcmp.eq.s32.totalorder %v3764_v51, 0  ;;  %vm3765_vm15 = vcmp.lt.s32.totalorder %v3764_v51, 2 }
 0x290   : > { %v2096_v33 = vshrl.u32 %v2078_v62, %v2094_v21  ;;  %v2099_v52 = vadd.s32 127, %v2098_v25 }
 0x291   : > { %vm2121_vm3 = vcmp.eq.s32.totalorder %v2116_v58, 2  ;;  %vm2118_vm11 = vcmp.eq.s32.totalorder %v2116_v58, 0  ;;  %vm2117_vm5 = vcmp.lt.s32.totalorder %v2116_v58, 2 }
 0x292   : > { %v2097_v10 = vor.u32 %v2096_v33, %v2095_v56  ;;  %v2100_v47 = vshll.u32 %v2099_v52, 23 }
 0x294   : > { %v2101_v50 = vor.u32 4788187, %v2100_v47  ;;  %v2104_v19 = vcvt.s32.f32 %v2097_v10 }
 0x296   : > { %v2102_v48 = vand.u32 2147483647, %v2101_v50 }
 0x297   : > { %v4266_v53 = vpop.eup %4265 }
 0x298   : > { %v4268_v57 = vpop.eup %4267  ;;  %v2018_v29 = vxor.u32 2147483648, %v4266_v53  ;;  %v2105_v54 = vmul.f32 %v2104_v19, %v2102_v48 }
 0x299   : > { %v2015_v8 = vxor.u32 2147483648, %v4268_v57 }
 0x29a   : > { %v3668_v15 = vsel %vm3666_vm13, %v2018_v29, %v4268_v57  ;;  %v2019_v32 = vsel %vm2017_vm0, %v2018_v29, %v4268_v57  ;;  %v2106_v13 = vxor.u32 2147483648, %v2105_v54  ;;  %vm2114_vm0 = vweird.f32 %v7067_v11 }
 0x29b   : > { %v3665_v43 = vsel %vm3663_vm2, %v4266_v53, %v2015_v8  ;;  %v2016_v12 = vsel %vm2014_vm6, %v4266_v53, %v2015_v8 }
 0x29c   : > { %v3669_v45 = vsel %vm3662_vm10, %v3665_v43, %v3668_v15  ;;  %v2020_v36 = vsel %vm2013_vm12, %v2016_v12, %v2019_v32  ;;  %v2107_v7 = vsel %vm2024_vm7, %v2106_v13, %v2105_v54 }
 0x29d   : > { %v3670_v55 = vsel %vm2010_vm1, nan, %v3669_v45  ;;  %v2021_v3 = vsel %vm2010_vm1, nan, %v2020_v36  ;;  %v2110_v24 = vsel %vm2023_vm8, %v7067_v11, %v2107_v7 }
 0x29e   : > { %3818 = vrot.lane.b32.xlu0 %v3670_v55, %s4344_s28  ;;  %4269 = vcosq.f32 %v2110_v24  ;;  %v3809_v60 = vpop.permute.xlu1 %3808 }
 0x29f   : > { %4271 = vsinq.f32 %v2110_v24  ;;  %v3848_v49 = vsel %vm3838_vm14, %v6263_v28, %v3809_v60 }
 0x2a0   : > { %3864 = vst [vmem:[%s6627_s3 + $0x48] sm:$0xff] %v3848_v49 }
 0x2ab   : > { %v4270_v61 = vpop.eup %4269 }
 0x2ac   : > { %v4272_v18 = vpop.eup %4271  ;;  %v2122_v59 = vxor.u32 2147483648, %v4270_v61 }
 0x2ad   : > { %v2119_v35 = vxor.u32 2147483648, %v4272_v18 }
 0x2ae   : > { %v2123_v26 = vsel %vm2121_vm3, %v2122_v59, %v4272_v18  ;;  %v3771_v37 = vsel %vm3769_vm9, %v2122_v59, %v4272_v18 }
 0x2af   : > { %v2120_v42 = vsel %vm2118_vm11, %v4270_v61, %v2119_v35  ;;  %v3768_v28 = vsel %vm3766_vm4, %v4270_v61, %v2119_v35 }
 0x2b0   : > { %v2124_v9 = vsel %vm2117_vm5, %v2120_v42, %v2123_v26  ;;  %v3772_v41 = vsel %vm3765_vm15, %v3768_v28, %v3771_v37 }
 0x2b1   : > { %v2125_v27 = vsel %vm2114_vm0, nan, %v2124_v9  ;;  %v3773_v63 = vsel %vm2114_vm0, nan, %v3772_v41 }
 0x2b2   : > { %3820 = vrot.lane.b32.xlu1 %v3773_v63, %s4344_s28 }
 0x2b3   : > { %v3811_v40 = vpop.permute.xlu0 %3810 }
 0x2b4   : > { %v3849_v6 = vsel %vm3838_vm14, %v6367_v17, %v3811_v40 }
 0x2b5   : > { %3865 = vst [vmem:[%s6627_s3 + $0x50] sm:$0xff] %v3849_v6 }
 0x2cd   : > { %v3813_v38 = vpop.permute.xlu1 %3812 }
 0x2ce   : > { %v3850_v34 = vsel %vm3838_vm14, %v6505_v2, %v3813_v38 }
 0x2cf   : > { %3866 = vst [vmem:[%s6627_s3 + $0x58] sm:$0xff] %v3850_v34 }
 0x2e3   : > { %v3815_v11 = vpop.permute.xlu0 %3814 }
 0x2e4   : > { %v3851_v23 = vsel %vm3838_vm14, %v6638_v5, %v3815_v11 }
 0x2e5   : > { %3867 = vst [vmem:[%s6627_s3 + $0x60] sm:$0xff] %v3851_v23 }
 0x2f9   : > { %v3817_v39 = vpop.permute.xlu1 %3816 }
 0x2fa   : > { %v3852_v44 = vsel %vm3838_vm14, %v6704_v30, %v3817_v39 }
 0x2fb   : > { %3868 = vst [vmem:[%s6627_s3 + $0x68] sm:$0xff] %v3852_v44 }
 0x310   : > { %v3819_v17 = vpop.permute.xlu0 %3818 }
 0x311   : > { %v3853_v20 = vsel %vm3838_vm14, %v2021_v3, %v3819_v17 }
 0x312   : > { %3869 = vst [vmem:[%s6627_s3 + $0x70] sm:$0xff] %v3853_v20 }
 0x324   : > { %v3821_v2 = vpop.permute.xlu1 %3820 }
 0x325   : > { %v3854_v5 = vsel %vm3838_vm14, %v2125_v27, %v3821_v2 }
 0x326   : > { %3870 = vst [vmem:[%s6627_s3 + $0x78] sm:$0xff] %v3854_v5 }
 0x327   : > { %4286 = shalt.err (!%p4283_p3)
}
 0x328   : > { %s4287_s22 = scalar_lea.hbm %s6750_s8, 2048  ;;  %s4291_s25 = scalar_lea.hbm %s6800_s2, 4096 }
 0x329   : > { %p4288_p4 = scmp.ne.s32.totalorder %s6750_s8, %s4287_s22  ;;  %p4292_p9 = scmp.lt.s32.totalorder %s6750_s8, %s6800_s2 }
 0x32a   : > { %p4293_p10 = scmp.lt.s32.totalorder %s4291_s25, %s4287_s22 }
 0x32b   : > { %p4289_p7 = pnand %p4288_p4, %p4401_p5 }
 0x32c   : > { %p4294_p11 = por %p4293_p10, %p4292_p9 }
 0x32d   : > { %p4290_p8 = pneg %p4289_p7 }
 0x32f   : > { %p4295_p12 = pnand %p4294_p11, %p4290_p8 }
 0x331   : > { %4298 = shalt.err (!%p4295_p12)
}
 0x332   : > { %s4346_s28 = smov 128   ;;  %s4347_s29 = smov 8  }
 0x333   : > { %4152 = dma.vmem_to_hbm [thread:$0]  (%p4401_p5), %s6752_s5, 2048, %s6750_s8, %s6758_s14, %s4346_s28, %s4346_s28, %s4347_s29  }
 0x334 PF: > { %p4158_p13 = scmp.ge.s32.totalorder %s4333_s12, 2  ;;  %s3900_s30 = sand.u32 1, %s4321_s9  }
 0x335   : > { %s3901_s3 = scalar_lea.sflag [#allocation3], %s3900_s30 }
 0x336   : > { %p4155_p0 = pnand %p4158_p13, %p4405_p6 }
 0x338   : > { %p4156_p1 = pneg %p4155_p0 }
 0x33a   : > { %4316 = dma.done.wait (%p4156_p1), %s3901_s3, 2048  }
 0x33b   : > { %4318 = vsyncadd (%p4156_p1), %s3901_s3, 4294965248  ;;  %p12_p2 = scmp.ge.s32.totalorder %s4388_s15, 4   ;;  %s7075_s9 = smov %s4325_s10 }
 0x33c   : > { %s7076_s10 = smov %s4329_s11  ;;  %s7077_s11 = smov %s4399_s18 }
 0x33d   : > { %s7078_s12 = smov %s4388_s15  ;;  %14 = sbr.rel (!%p12_p2) target bundleno = 3 (0x3), region = 63 }
 0x342   :  { %3906 = vsyncpa [#allocation3], 1 }
 0x343   :  { %3908 = vsyncpa [#allocation3 + $0x1], 1 }

</bundles_post_ra>
